<compile_context>
chip_gen: v5e
topology: v5e:2x2
jax: 0.10.0
libtpu: 0.0.40
codegen_flags: <defaults>
</compile_context>

<pallas_src>
import functools

import numpy as np

import jax
import jax.numpy as jnp
from jax.experimental import pallas as pl
from jax.experimental.pallas import tpu as pltpu

D_MODEL = 32
NUM_HEADS = 4
D_HEAD = D_MODEL // NUM_HEADS
LN_EPS = 1e-5          # torch.nn.LayerNorm default
NEG_INF = -1e30        # additive mask value (exp underflows to exactly 0.0)

# dot_general dims for A @ B.T without materializing the transpose.
_TRANS_B_DIMS = (((1,), (1,)), ((), ()))

_N_FIXED_INPUTS = 9    # f0, f1, e0, e1, head_mask, vmask2, mask_self, mask_01, mask_10
_N_SELF_PARAMS = 10
_N_CROSS_PARAMS = 11


def _layer_norm(x, gamma, beta):
    mean = jnp.mean(x, axis=-1, keepdims=True)
    var = jnp.mean((x - mean) ** 2, axis=-1, keepdims=True)
    return (x - mean) * jax.lax.rsqrt(var + LN_EPS) * gamma + beta


def _fused_transformer_kernel(blocks, *refs):
    """Runs ALL layers for the whole batch + both streams entirely in VMEM."""
    (f0_ref, f1_ref, e0_ref, e1_ref,
     hm_ref, vm2_ref, ms_ref, m01_ref, m10_ref) = refs[:_N_FIXED_INPUTS]
    out0_ref, out1_ref = refs[-2:]
    prefs = refs[_N_FIXED_INPUTS:-2]

    f0 = f0_ref[...].astype(jnp.float32)      # (B*N0, D)
    f1 = f1_ref[...].astype(jnp.float32)      # (B*N1, D)
    e0 = e0_ref[...].astype(jnp.float32)
    e1 = e1_ref[...].astype(jnp.float32)
    hm = hm_ref[...]                          # (H, D)   0/1 per-head lane mask
    vm2 = vm2_ref[...]                        # (H, 2D)  0/1 mask selecting v-half head lanes
    ms = ms_ref[...]                          # (R, R)   block-diag additive mask (self layers)
    m01 = m01_ref[...]                        # (B*N0, B*N1)
    m10 = m10_ref[...]                        # (B*N1, B*N0)

    R0 = f0.shape[0]

    def attention(q, k, v, vmask, wo, bo, amask):
        # q: (Rq, D) (scale already folded into Wq/bq), k: (Rkv, D),
        # v: (Rkv, W) with head h living at columns selected by vmask[h].
        ctx = None
        for h in range(NUM_HEADS):
            qh = q * hm[h:h + 1, :]                              # head select (VPU)
            s = jax.lax.dot_general(qh, k, _TRANS_B_DIMS,
                                    preferred_element_type=jnp.float32)
            s = s + amask                                        # batch/stream block-diag mask
            s = s - jnp.max(s, axis=-1, keepdims=True)
            p = jnp.exp(s)
            p = p / jnp.sum(p, axis=-1, keepdims=True)           # exact division
            part = jnp.dot(p, v * vmask[h:h + 1, :],
                           preferred_element_type=jnp.float32)   # head lands in its own cols
            ctx = part if ctx is None else ctx + part
        return jnp.dot(ctx, wo, preferred_element_type=jnp.float32) + bo

    def ffn_norm(x1, we, be, ws, bs, g2, b2):
        h = jnp.dot(x1, we, preferred_element_type=jnp.float32) + be
        h = jnp.maximum(h, 0.0)
        h = jnp.dot(h, ws, preferred_element_type=jnp.float32) + bs
        return _layer_norm(x1 + h, g2, b2)

    idx = 0
    # Static unroll (2 layers); switch to lax.fori_loop + dynamic first-axis
    # weight indexing only if the block list grows.
    for blk in blocks:
        if blk == "self":
            wq, wk, wv, wo, b4, ln, we, be, ws, bs = [r[...] for r in prefs[idx:idx + _N_SELF_PARAMS]]
            idx += _N_SELF_PARAMS
            # Merge both streams and the whole batch into one row axis.
            x = jnp.concatenate([f0, f1], axis=0)                # (R, D), V input (no PE)
            xe = jnp.concatenate([f0 + e0, f1 + e1], axis=0)     # (R, D), Q/K input (with PE)
            q = jnp.dot(xe, wq, preferred_element_type=jnp.float32) + b4[0:1]
            k = jnp.dot(xe, wk, preferred_element_type=jnp.float32) + b4[1:2]
            v = jnp.dot(x, wv, preferred_element_type=jnp.float32) + b4[2:3]
            hidden = attention(q, k, v, hm, wo, b4[3:4], ms)
            x1 = _layer_norm(hidden + x, ln[0:1], ln[1:2])
            x2 = ffn_norm(x1, we, be, ws, bs, ln[2:3], ln[3:4])
            f0 = x2[:R0]
            f1 = x2[R0:]
        else:  # cross
            wq, wkv, wo2, bq, bkv, bo, ln, we, be, ws, bs = [r[...] for r in prefs[idx:idx + _N_CROSS_PARAMS]]
            idx += _N_CROSS_PARAMS

            def cross_call(x, mem, amask):
                q = jnp.dot(x, wq, preferred_element_type=jnp.float32) + bq
                kv = jnp.dot(mem, wkv, preferred_element_type=jnp.float32) + bkv  # [k | v]
                k = kv[:, :D_MODEL]                   # lanes 0..31: free slice, no relayout
                hidden = attention(q, k, kv, vm2, wo2, bo, amask)
                x1 = _layer_norm(hidden + x, ln[0:1], ln[1:2])
                return ffn_norm(x1, we, be, ws, bs, ln[2:3], ln[3:4])

            # Matches torch: feats1 attends to the *updated* feats0.
            f0 = cross_call(f0, f1, m01)
            f1 = cross_call(f1, f0, m10)

    out0_ref[...] = f0.astype(out0_ref.dtype)
    out1_ref[...] = f1.astype(out1_ref.dtype)


def _build_masks(B, N0, N1):
    """Constant per-head lane masks and batch/stream block-diagonal softmax masks."""
    lane = np.arange(D_MODEL)
    hm = np.stack([((lane >= h * D_HEAD) & (lane < (h + 1) * D_HEAD)).astype(np.float32)
                   for h in range(NUM_HEADS)])                              # (H, D)
    lane2 = np.arange(2 * D_MODEL)
    vm2 = np.stack([((lane2 >= D_MODEL + h * D_HEAD) &
                     (lane2 < D_MODEL + (h + 1) * D_HEAD)).astype(np.float32)
                    for h in range(NUM_HEADS)])                             # (H, 2D)

    b0 = np.repeat(np.arange(B), N0)          # batch id of each f0 row
    b1 = np.repeat(np.arange(B), N1)          # batch id of each f1 row
    seg = np.concatenate([b0, b1 + B])        # stream-1 segments offset so streams never mix
    ms = np.where(seg[:, None] == seg[None, :], 0.0, NEG_INF).astype(np.float32)
    m01 = np.where(b0[:, None] == b1[None, :], 0.0, NEG_INF).astype(np.float32)
    m10 = np.where(b1[:, None] == b0[None, :], 0.0, NEG_INF).astype(np.float32)
    return (jnp.asarray(hm), jnp.asarray(vm2),
            jnp.asarray(ms), jnp.asarray(m01), jnp.asarray(m10))


def pe_conditional_transformer_forward(feats0, feats1, embeddings0, embeddings1,
                                        flat_params, masks, *, blocks):
    """Single grid-less pallas_call running the full forward pass."""
    B, N0, D = feats0.shape
    N1 = feats1.shape[1]
    expected = sum(_N_SELF_PARAMS if b == "self" else _N_CROSS_PARAMS for b in blocks)
    assert len(flat_params) == expected

    # Batch folded into rows in the wrapper (pure layout plumbing, free in XLA).
    f0 = feats0.reshape(B * N0, D)
    f1 = feats1.reshape(B * N1, D)
    e0 = embeddings0.reshape(B * N0, D)
    e1 = embeddings1.reshape(B * N1, D)

    inputs = (f0, f1, e0, e1) + tuple(masks) + tuple(flat_params)
    vspec = pl.BlockSpec(memory_space=pltpu.MemorySpace.VMEM)   # whole array, VMEM-resident

    out0, out1 = pl.pallas_call(
        functools.partial(_fused_transformer_kernel, tuple(blocks)),
        out_shape=(jax.ShapeDtypeStruct((B * N0, D), feats0.dtype),
                   jax.ShapeDtypeStruct((B * N1, D), feats1.dtype)),
        in_specs=[vspec] * len(inputs),
        out_specs=(vspec, vspec),
    )(*inputs)

    return out0.reshape(B, N0, D), out1.reshape(B, N1, D)


def init_raw_params(key, d_model, num_layers):
    """Deterministic synthetic init of the raw (torch-like) per-layer parameters."""
    layers = []
    for lk in jax.random.split(key, num_layers):
        ks = jax.random.split(lk, 12)

        def lin(kw, kb, din, dout):
            w = jax.random.normal(kw, (din, dout), jnp.float32) * (1.0 / (din ** 0.5))
            b = jax.random.normal(kb, (dout,), jnp.float32) * 0.02
            return w, b

        wq, bq = lin(ks[0], ks[1], d_model, d_model)
        wk, bk = lin(ks[2], ks[3], d_model, d_model)
        wv, bv = lin(ks[4], ks[5], d_model, d_model)
        wo, bo = lin(ks[6], ks[7], d_model, d_model)
        we, be = lin(ks[8], ks[9], d_model, 2 * d_model)
        ws, bs = lin(ks[10], ks[11], 2 * d_model, d_model)
        g1 = jnp.ones((d_model,), jnp.float32)
        b1 = jnp.zeros((d_model,), jnp.float32)
        g2 = jnp.ones((d_model,), jnp.float32)
        b2 = jnp.zeros((d_model,), jnp.float32)
        layers.append((wq, bq, wk, bk, wv, bv, wo, bo, g1, b1, g2, b2, we, be, ws, bs))
    return layers


def pack_params(raw_layers, blocks):
    """Kernel-side packing:
       * 1/sqrt(d_head) folded into Wq/bq,
       * biases / LN params packed as dense (4, D) / (1, D) tiles,
       * cross layers: fused Wkv (D, 2D), zero-padded Wo2 (2D, D), fused bkv (1, 2D)."""
    scale = 1.0 / (D_HEAD ** 0.5)
    flat = []
    for blk, p in zip(blocks, raw_layers):
        (wq, bq, wk, bk, wv, bv, wo, bo, g1, b1, g2, b2, we, be, ws, bs) = p
        ln = jnp.stack([g1, b1, g2, b2])                         # (4, D)
        ffn = (we, be.reshape(1, -1), ws, bs.reshape(1, -1))
        if blk == "self":
            b4 = jnp.stack([bq * scale, bk, bv, bo])             # (4, D)
            flat += [wq * scale, wk, wv, wo, b4, ln, *ffn]
        else:
            wkv = jnp.concatenate([wk, wv], axis=1)              # (D, 2D) = [Wk | Wv]
            wo2 = jnp.concatenate([jnp.zeros_like(wo), wo], 0)   # (2D, D): top half multiplies zeros
            bkv = jnp.concatenate([bk, bv]).reshape(1, -1)       # (1, 2D)
            flat += [wq * scale, wkv, wo2, (bq * scale).reshape(1, -1), bkv,
                     bo.reshape(1, -1), ln, *ffn]
    return tuple(flat)


class PEConditionalTransformerPallas:
    """Mirror of PEConditionalTransformer.forward (masks=None, no attention scores)."""

    def __init__(self, blocks, d_model, num_heads, key):
        for blk in blocks:
            if blk not in ("self", "cross"):
                raise ValueError('Unsupported block type "{}".'.format(blk))
        assert d_model == D_MODEL and num_heads == NUM_HEADS
        self.blocks = tuple(blocks)
        self.raw_params = init_raw_params(key, d_model, len(self.blocks))
        self.packed_params = pack_params(self.raw_params, self.blocks)
        self._forward = jax.jit(
            functools.partial(pe_conditional_transformer_forward, blocks=self.blocks))

    def __call__(self, feats0, feats1, embeddings0, embeddings1):
        B, N0, _ = feats0.shape
        N1 = feats1.shape[1]
        masks = _build_masks(B, N0, N1)
        return self._forward(feats0, feats1, embeddings0, embeddings1,
                             self.packed_params, masks)


def _reference_forward(feats0, feats1, e0, e1, raw_layers, blocks):
    """Pure-JAX reference (no Pallas, raw unpacked params) for correctness checking."""

    def ln_fn(x, g, b):
        m = jnp.mean(x, axis=-1, keepdims=True)
        v = jnp.mean((x - m) ** 2, axis=-1, keepdims=True)
        return (x - m) / jnp.sqrt(v + LN_EPS) * g + b

    def layer(p, x, mem, qa=None, ka=None):
        (wq, bq, wk, bk, wv, bv, wo, bo, g1, b1, g2, b2, we, be, ws, bs) = p
        qin = x + qa if qa is not None else x
        kin = mem + ka if ka is not None else mem
        q = qin @ wq + bq
        k = kin @ wk + bk
        v = mem @ wv + bv
        Bb, nq, D = q.shape
        nkv = k.shape[1]
        H, dh = NUM_HEADS, D_HEAD
        qh = q.reshape(Bb, nq, H, dh).transpose(0, 2, 1, 3)
        kh = k.reshape(Bb, nkv, H, dh).transpose(0, 2, 1, 3)
        vh = v.reshape(Bb, nkv, H, dh).transpose(0, 2, 1, 3)
        s = jnp.einsum("bhqd,bhkd->bhqk", qh, kh) / (dh ** 0.5)
        pr = jax.nn.softmax(s, axis=-1)
        o = jnp.einsum("bhqk,bhkd->bhqd", pr, vh).transpose(0, 2, 1, 3).reshape(Bb, nq, D)
        hidden = o @ wo + bo
        x1 = ln_fn(hidden + x, g1, b1)
        hf = jnp.maximum(x1 @ we + be, 0.0)
        hf = hf @ ws + bs
        return ln_fn(x1 + hf, g2, b2)

    f0, f1 = feats0, feats1
    for blk, p in zip(blocks, raw_layers):
        if blk == "self":
            f0 = layer(p, f0, f0, e0, e0)
            f1 = layer(p, f1, f1, e1, e1)
        else:
            f0 = layer(p, f0, f1)
            f1 = layer(p, f1, f0)
    return f0, f1


if __name__ == "__main__":
    key = jax.random.PRNGKey(0)
    k_f0, k_f1, k_e0, k_e1, k_params = jax.random.split(key, 5)

    B, N0, N1 = 2, 16, 8
    feats0 = jax.random.normal(k_f0, (B, N0, D_MODEL), jnp.float32)
    feats1 = jax.random.normal(k_f1, (B, N1, D_MODEL), jnp.float32)
    embeddings0 = jax.random.normal(k_e0, (B, N0, D_MODEL), jnp.float32)
    embeddings1 = jax.random.normal(k_e1, (B, N1, D_MODEL), jnp.float32)

    model = PEConditionalTransformerPallas(
        blocks=["self", "cross"], d_model=D_MODEL, num_heads=NUM_HEADS, key=k_params
    )

    out0, out1 = model(feats0, feats1, embeddings0, embeddings1)
    jax.block_until_ready((out0, out1))

    assert out0.shape == (B, N0, D_MODEL) and out1.shape == (B, N1, D_MODEL)
    assert bool(jnp.all(jnp.isfinite(out0))) and bool(jnp.all(jnp.isfinite(out1)))

    ref0, ref1 = _reference_forward(feats0, feats1, embeddings0, embeddings1,
                                    model.raw_params, model.blocks)
    # Exact softmax division + exact 0/1 head masks -> tight agreement.
    assert jnp.allclose(out0, ref0, atol=1e-3, rtol=1e-3)
    assert jnp.allclose(out1, ref1, atol=1e-3, rtol=1e-3)

    print("KERNEL_OK")
</pallas_src>

<mosaic_0001>
module attributes {stable_mosaic.version = 11 : i64} {
  func.func @_fused_transformer_kernel(%arg0: memref<32x32xf32, #tpu.memory_space<vmem>>, %arg1: memref<16x32xf32, #tpu.memory_space<vmem>>, %arg2: memref<32x32xf32, #tpu.memory_space<vmem>>, %arg3: memref<16x32xf32, #tpu.memory_space<vmem>>, %arg4: memref<4x32xf32, #tpu.memory_space<vmem>>, %arg5: memref<4x64xf32, #tpu.memory_space<vmem>>, %arg6: memref<48x48xf32, #tpu.memory_space<vmem>>, %arg7: memref<32x16xf32, #tpu.memory_space<vmem>>, %arg8: memref<16x32xf32, #tpu.memory_space<vmem>>, %arg9: memref<32x32xf32, #tpu.memory_space<vmem>>, %arg10: memref<32x32xf32, #tpu.memory_space<vmem>>, %arg11: memref<32x32xf32, #tpu.memory_space<vmem>>, %arg12: memref<32x32xf32, #tpu.memory_space<vmem>>, %arg13: memref<4x32xf32, #tpu.memory_space<vmem>>, %arg14: memref<4x32xf32, #tpu.memory_space<vmem>>, %arg15: memref<32x64xf32, #tpu.memory_space<vmem>>, %arg16: memref<1x64xf32, #tpu.memory_space<vmem>>, %arg17: memref<64x32xf32, #tpu.memory_space<vmem>>, %arg18: memref<1x32xf32, #tpu.memory_space<vmem>>, %arg19: memref<32x32xf32, #tpu.memory_space<vmem>>, %arg20: memref<32x64xf32, #tpu.memory_space<vmem>>, %arg21: memref<64x32xf32, #tpu.memory_space<vmem>>, %arg22: memref<1x32xf32, #tpu.memory_space<vmem>>, %arg23: memref<1x64xf32, #tpu.memory_space<vmem>>, %arg24: memref<1x32xf32, #tpu.memory_space<vmem>>, %arg25: memref<4x32xf32, #tpu.memory_space<vmem>>, %arg26: memref<32x64xf32, #tpu.memory_space<vmem>>, %arg27: memref<1x64xf32, #tpu.memory_space<vmem>>, %arg28: memref<64x32xf32, #tpu.memory_space<vmem>>, %arg29: memref<1x32xf32, #tpu.memory_space<vmem>>, %arg30: memref<32x32xf32, #tpu.memory_space<vmem>>, %arg31: memref<16x32xf32, #tpu.memory_space<vmem>>) attributes {dimension_semantics = [], scalar_prefetch = 0 : i64, scratch_operands = 0 : i64, tpu.core_type = #tpu.core_type<tc>} {
    %c0 = arith.constant 0 : index
    %c0_0 = arith.constant 0 : index
    %0 = vector.load %arg0[%c0, %c0_0] : memref<32x32xf32, #tpu.memory_space<vmem>>, vector<32x32xf32>
    %c0_1 = arith.constant 0 : index
    %c0_2 = arith.constant 0 : index
    %1 = vector.load %arg1[%c0_1, %c0_2] : memref<16x32xf32, #tpu.memory_space<vmem>>, vector<16x32xf32>
    %c0_3 = arith.constant 0 : index
    %c0_4 = arith.constant 0 : index
    %2 = vector.load %arg2[%c0_3, %c0_4] : memref<32x32xf32, #tpu.memory_space<vmem>>, vector<32x32xf32>
    %c0_5 = arith.constant 0 : index
    %c0_6 = arith.constant 0 : index
    %3 = vector.load %arg3[%c0_5, %c0_6] : memref<16x32xf32, #tpu.memory_space<vmem>>, vector<16x32xf32>
    %c0_7 = arith.constant 0 : index
    %c0_8 = arith.constant 0 : index
    %4 = vector.load %arg4[%c0_7, %c0_8] : memref<4x32xf32, #tpu.memory_space<vmem>>, vector<4x32xf32>
    %c0_9 = arith.constant 0 : index
    %c0_10 = arith.constant 0 : index
    %5 = vector.load %arg5[%c0_9, %c0_10] : memref<4x64xf32, #tpu.memory_space<vmem>>, vector<4x64xf32>
    %c0_11 = arith.constant 0 : index
    %c0_12 = arith.constant 0 : index
    %6 = vector.load %arg6[%c0_11, %c0_12] : memref<48x48xf32, #tpu.memory_space<vmem>>, vector<48x48xf32>
    %c0_13 = arith.constant 0 : index
    %c0_14 = arith.constant 0 : index
    %7 = vector.load %arg7[%c0_13, %c0_14] : memref<32x16xf32, #tpu.memory_space<vmem>>, vector<32x16xf32>
    %c0_15 = arith.constant 0 : index
    %c0_16 = arith.constant 0 : index
    %8 = vector.load %arg8[%c0_15, %c0_16] : memref<16x32xf32, #tpu.memory_space<vmem>>, vector<16x32xf32>
    %c0_17 = arith.constant 0 : index
    %c0_18 = arith.constant 0 : index
    %9 = vector.load %arg9[%c0_17, %c0_18] : memref<32x32xf32, #tpu.memory_space<vmem>>, vector<32x32xf32>
    %c0_19 = arith.constant 0 : index
    %c0_20 = arith.constant 0 : index
    %10 = vector.load %arg10[%c0_19, %c0_20] : memref<32x32xf32, #tpu.memory_space<vmem>>, vector<32x32xf32>
    %c0_21 = arith.constant 0 : index
    %c0_22 = arith.constant 0 : index
    %11 = vector.load %arg11[%c0_21, %c0_22] : memref<32x32xf32, #tpu.memory_space<vmem>>, vector<32x32xf32>
    %c0_23 = arith.constant 0 : index
    %c0_24 = arith.constant 0 : index
    %12 = vector.load %arg12[%c0_23, %c0_24] : memref<32x32xf32, #tpu.memory_space<vmem>>, vector<32x32xf32>
    %c0_25 = arith.constant 0 : index
    %c0_26 = arith.constant 0 : index
    %13 = vector.load %arg13[%c0_25, %c0_26] : memref<4x32xf32, #tpu.memory_space<vmem>>, vector<4x32xf32>
    %c0_27 = arith.constant 0 : index
    %c0_28 = arith.constant 0 : index
    %14 = vector.load %arg14[%c0_27, %c0_28] : memref<4x32xf32, #tpu.memory_space<vmem>>, vector<4x32xf32>
    %c0_29 = arith.constant 0 : index
    %c0_30 = arith.constant 0 : index
    %15 = vector.load %arg15[%c0_29, %c0_30] : memref<32x64xf32, #tpu.memory_space<vmem>>, vector<32x64xf32>
    %c0_31 = arith.constant 0 : index
    %c0_32 = arith.constant 0 : index
    %16 = vector.load %arg16[%c0_31, %c0_32] : memref<1x64xf32, #tpu.memory_space<vmem>>, vector<1x64xf32>
    %c0_33 = arith.constant 0 : index
    %c0_34 = arith.constant 0 : index
    %17 = vector.load %arg17[%c0_33, %c0_34] : memref<64x32xf32, #tpu.memory_space<vmem>>, vector<64x32xf32>
    %c0_35 = arith.constant 0 : index
    %c0_36 = arith.constant 0 : index
    %18 = vector.load %arg18[%c0_35, %c0_36] : memref<1x32xf32, #tpu.memory_space<vmem>>, vector<1x32xf32>
    %19 = tpu.concatenate %0, %1 in 0 : vector<32x32xf32>, vector<16x32xf32> -> vector<48x32xf32>
    %20 = arith.addf %0, %2 : vector<32x32xf32>
    %21 = arith.addf %1, %3 : vector<16x32xf32>
    %22 = tpu.concatenate %20, %21 in 0 : vector<32x32xf32>, vector<16x32xf32> -> vector<48x32xf32>
    %cst = arith.constant dense<0.000000e+00> : vector<48x32xf32>
    %23 = tpu.matmul %22, %9, %cst {dimension_numbers = #tpu.dot_dimension_numbers<[1], [0], [0], [1], [0, 0, 1, 1], [], []>} : vector<48x32xf32>, vector<32x32xf32>, vector<48x32xf32> -> vector<48x32xf32>
    %24 = vector.extract_strided_slice %13 {offsets = [0, 0], sizes = [1, 32], strides = [1, 1]} : vector<4x32xf32> to vector<1x32xf32>
    %25 = vector.broadcast %24 : vector<1x32xf32> to vector<48x32xf32>
    %26 = arith.addf %23, %25 : vector<48x32xf32>
    %cst_37 = arith.constant dense<0.000000e+00> : vector<48x32xf32>
    %27 = tpu.matmul %22, %10, %cst_37 {dimension_numbers = #tpu.dot_dimension_numbers<[1], [0], [0], [1], [0, 0, 1, 1], [], []>} : vector<48x32xf32>, vector<32x32xf32>, vector<48x32xf32> -> vector<48x32xf32>
    %28 = vector.extract_strided_slice %13 {offsets = [1, 0], sizes = [1, 32], strides = [1, 1]} : vector<4x32xf32> to vector<1x32xf32>
    %29 = vector.broadcast %28 : vector<1x32xf32> to vector<48x32xf32>
    %30 = arith.addf %27, %29 : vector<48x32xf32>
    %cst_38 = arith.constant dense<0.000000e+00> : vector<48x32xf32>
    %31 = tpu.matmul %19, %11, %cst_38 {dimension_numbers = #tpu.dot_dimension_numbers<[1], [0], [0], [1], [0, 0, 1, 1], [], []>} : vector<48x32xf32>, vector<32x32xf32>, vector<48x32xf32> -> vector<48x32xf32>
    %32 = vector.extract_strided_slice %13 {offsets = [2, 0], sizes = [1, 32], strides = [1, 1]} : vector<4x32xf32> to vector<1x32xf32>
    %33 = vector.broadcast %32 : vector<1x32xf32> to vector<48x32xf32>
    %34 = arith.addf %31, %33 : vector<48x32xf32>
    %35 = vector.extract_strided_slice %13 {offsets = [3, 0], sizes = [1, 32], strides = [1, 1]} : vector<4x32xf32> to vector<1x32xf32>
    %36 = vector.extract_strided_slice %4 {offsets = [0, 0], sizes = [1, 32], strides = [1, 1]} : vector<4x32xf32> to vector<1x32xf32>
    %37 = vector.broadcast %36 : vector<1x32xf32> to vector<48x32xf32>
    %38 = arith.mulf %26, %37 : vector<48x32xf32>
    %cst_39 = arith.constant dense<0.000000e+00> : vector<48x48xf32>
    %39 = tpu.matmul %38, %30, %cst_39 {dimension_numbers = #tpu.dot_dimension_numbers<[1], [1], [0], [0], [0, 0, 1, 0], [], []>} : vector<48x32xf32>, vector<48x32xf32>, vector<48x48xf32> -> vector<48x48xf32>
    %40 = arith.addf %39, %6 : vector<48x48xf32>
    %cst_40 = arith.constant dense<0xFF800000> : vector<48xf32>
    %41 = vector.multi_reduction <maximumf>, %40, %cst_40 [1] : vector<48x48xf32> to vector<48xf32>
    %42 = vector.shape_cast %41 : vector<48xf32> to vector<48x1xf32>
    %43 = vector.broadcast %42 : vector<48x1xf32> to vector<48x48xf32>
    %44 = arith.subf %40, %43 : vector<48x48xf32>
    %45 = math.exp %44 : vector<48x48xf32>
    %cst_41 = arith.constant dense<0.000000e+00> : vector<48xf32>
    %46 = vector.multi_reduction <add>, %45, %cst_41 [1] : vector<48x48xf32> to vector<48xf32>
    %47 = vector.shape_cast %46 : vector<48xf32> to vector<48x1xf32>
    %48 = vector.broadcast %47 : vector<48x1xf32> to vector<48x48xf32>
    %49 = arith.divf %45, %48 : vector<48x48xf32>
    %50 = vector.extract_strided_slice %4 {offsets = [0, 0], sizes = [1, 32], strides = [1, 1]} : vector<4x32xf32> to vector<1x32xf32>
    %51 = vector.broadcast %50 : vector<1x32xf32> to vector<48x32xf32>
    %52 = arith.mulf %34, %51 : vector<48x32xf32>
    %cst_42 = arith.constant dense<0.000000e+00> : vector<48x32xf32>
    %53 = tpu.matmul %49, %52, %cst_42 {dimension_numbers = #tpu.dot_dimension_numbers<[1], [0], [0], [1], [0, 0, 1, 1], [], []>} : vector<48x48xf32>, vector<48x32xf32>, vector<48x32xf32> -> vector<48x32xf32>
    %54 = vector.extract_strided_slice %4 {offsets = [1, 0], sizes = [1, 32], strides = [1, 1]} : vector<4x32xf32> to vector<1x32xf32>
    %55 = vector.broadcast %54 : vector<1x32xf32> to vector<48x32xf32>
    %56 = arith.mulf %26, %55 : vector<48x32xf32>
    %cst_43 = arith.constant dense<0.000000e+00> : vector<48x48xf32>
    %57 = tpu.matmul %56, %30, %cst_43 {dimension_numbers = #tpu.dot_dimension_numbers<[1], [1], [0], [0], [0, 0, 1, 0], [], []>} : vector<48x32xf32>, vector<48x32xf32>, vector<48x48xf32> -> vector<48x48xf32>
    %58 = arith.addf %57, %6 : vector<48x48xf32>
    %cst_44 = arith.constant dense<0xFF800000> : vector<48xf32>
    %59 = vector.multi_reduction <maximumf>, %58, %cst_44 [1] : vector<48x48xf32> to vector<48xf32>
    %60 = vector.shape_cast %59 : vector<48xf32> to vector<48x1xf32>
    %61 = vector.broadcast %60 : vector<48x1xf32> to vector<48x48xf32>
    %62 = arith.subf %58, %61 : vector<48x48xf32>
    %63 = math.exp %62 : vector<48x48xf32>
    %cst_45 = arith.constant dense<0.000000e+00> : vector<48xf32>
    %64 = vector.multi_reduction <add>, %63, %cst_45 [1] : vector<48x48xf32> to vector<48xf32>
    %65 = vector.shape_cast %64 : vector<48xf32> to vector<48x1xf32>
    %66 = vector.broadcast %65 : vector<48x1xf32> to vector<48x48xf32>
    %67 = arith.divf %63, %66 : vector<48x48xf32>
    %68 = vector.extract_strided_slice %4 {offsets = [1, 0], sizes = [1, 32], strides = [1, 1]} : vector<4x32xf32> to vector<1x32xf32>
    %69 = vector.broadcast %68 : vector<1x32xf32> to vector<48x32xf32>
    %70 = arith.mulf %34, %69 : vector<48x32xf32>
    %cst_46 = arith.constant dense<0.000000e+00> : vector<48x32xf32>
    %71 = tpu.matmul %67, %70, %cst_46 {dimension_numbers = #tpu.dot_dimension_numbers<[1], [0], [0], [1], [0, 0, 1, 1], [], []>} : vector<48x48xf32>, vector<48x32xf32>, vector<48x32xf32> -> vector<48x32xf32>
    %72 = arith.addf %53, %71 : vector<48x32xf32>
    %73 = vector.extract_strided_slice %4 {offsets = [2, 0], sizes = [1, 32], strides = [1, 1]} : vector<4x32xf32> to vector<1x32xf32>
    %74 = vector.broadcast %73 : vector<1x32xf32> to vector<48x32xf32>
    %75 = arith.mulf %26, %74 : vector<48x32xf32>
    %cst_47 = arith.constant dense<0.000000e+00> : vector<48x48xf32>
    %76 = tpu.matmul %75, %30, %cst_47 {dimension_numbers = #tpu.dot_dimension_numbers<[1], [1], [0], [0], [0, 0, 1, 0], [], []>} : vector<48x32xf32>, vector<48x32xf32>, vector<48x48xf32> -> vector<48x48xf32>
    %77 = arith.addf %76, %6 : vector<48x48xf32>
    %cst_48 = arith.constant dense<0xFF800000> : vector<48xf32>
    %78 = vector.multi_reduction <maximumf>, %77, %cst_48 [1] : vector<48x48xf32> to vector<48xf32>
    %79 = vector.shape_cast %78 : vector<48xf32> to vector<48x1xf32>
    %80 = vector.broadcast %79 : vector<48x1xf32> to vector<48x48xf32>
    %81 = arith.subf %77, %80 : vector<48x48xf32>
    %82 = math.exp %81 : vector<48x48xf32>
    %cst_49 = arith.constant dense<0.000000e+00> : vector<48xf32>
    %83 = vector.multi_reduction <add>, %82, %cst_49 [1] : vector<48x48xf32> to vector<48xf32>
    %84 = vector.shape_cast %83 : vector<48xf32> to vector<48x1xf32>
    %85 = vector.broadcast %84 : vector<48x1xf32> to vector<48x48xf32>
    %86 = arith.divf %82, %85 : vector<48x48xf32>
    %87 = vector.extract_strided_slice %4 {offsets = [2, 0], sizes = [1, 32], strides = [1, 1]} : vector<4x32xf32> to vector<1x32xf32>
    %88 = vector.broadcast %87 : vector<1x32xf32> to vector<48x32xf32>
    %89 = arith.mulf %34, %88 : vector<48x32xf32>
    %cst_50 = arith.constant dense<0.000000e+00> : vector<48x32xf32>
    %90 = tpu.matmul %86, %89, %cst_50 {dimension_numbers = #tpu.dot_dimension_numbers<[1], [0], [0], [1], [0, 0, 1, 1], [], []>} : vector<48x48xf32>, vector<48x32xf32>, vector<48x32xf32> -> vector<48x32xf32>
    %91 = arith.addf %72, %90 : vector<48x32xf32>
    %92 = vector.extract_strided_slice %4 {offsets = [3, 0], sizes = [1, 32], strides = [1, 1]} : vector<4x32xf32> to vector<1x32xf32>
    %93 = vector.broadcast %92 : vector<1x32xf32> to vector<48x32xf32>
    %94 = arith.mulf %26, %93 : vector<48x32xf32>
    %cst_51 = arith.constant dense<0.000000e+00> : vector<48x48xf32>
    %95 = tpu.matmul %94, %30, %cst_51 {dimension_numbers = #tpu.dot_dimension_numbers<[1], [1], [0], [0], [0, 0, 1, 0], [], []>} : vector<48x32xf32>, vector<48x32xf32>, vector<48x48xf32> -> vector<48x48xf32>
    %96 = arith.addf %95, %6 : vector<48x48xf32>
    %cst_52 = arith.constant dense<0xFF800000> : vector<48xf32>
    %97 = vector.multi_reduction <maximumf>, %96, %cst_52 [1] : vector<48x48xf32> to vector<48xf32>
    %98 = vector.shape_cast %97 : vector<48xf32> to vector<48x1xf32>
    %99 = vector.broadcast %98 : vector<48x1xf32> to vector<48x48xf32>
    %100 = arith.subf %96, %99 : vector<48x48xf32>
    %101 = math.exp %100 : vector<48x48xf32>
    %cst_53 = arith.constant dense<0.000000e+00> : vector<48xf32>
    %102 = vector.multi_reduction <add>, %101, %cst_53 [1] : vector<48x48xf32> to vector<48xf32>
    %103 = vector.shape_cast %102 : vector<48xf32> to vector<48x1xf32>
    %104 = vector.broadcast %103 : vector<48x1xf32> to vector<48x48xf32>
    %105 = arith.divf %101, %104 : vector<48x48xf32>
    %106 = vector.extract_strided_slice %4 {offsets = [3, 0], sizes = [1, 32], strides = [1, 1]} : vector<4x32xf32> to vector<1x32xf32>
    %107 = vector.broadcast %106 : vector<1x32xf32> to vector<48x32xf32>
    %108 = arith.mulf %34, %107 : vector<48x32xf32>
    %cst_54 = arith.constant dense<0.000000e+00> : vector<48x32xf32>
    %109 = tpu.matmul %105, %108, %cst_54 {dimension_numbers = #tpu.dot_dimension_numbers<[1], [0], [0], [1], [0, 0, 1, 1], [], []>} : vector<48x48xf32>, vector<48x32xf32>, vector<48x32xf32> -> vector<48x32xf32>
    %110 = arith.addf %91, %109 : vector<48x32xf32>
    %cst_55 = arith.constant dense<0.000000e+00> : vector<48x32xf32>
    %111 = tpu.matmul %110, %12, %cst_55 {dimension_numbers = #tpu.dot_dimension_numbers<[1], [0], [0], [1], [0, 0, 1, 1], [], []>} : vector<48x32xf32>, vector<32x32xf32>, vector<48x32xf32> -> vector<48x32xf32>
    %112 = vector.broadcast %35 : vector<1x32xf32> to vector<48x32xf32>
    %113 = arith.addf %111, %112 : vector<48x32xf32>
    %114 = arith.addf %113, %19 : vector<48x32xf32>
    %115 = vector.extract_strided_slice %14 {offsets = [0, 0], sizes = [1, 32], strides = [1, 1]} : vector<4x32xf32> to vector<1x32xf32>
    %116 = vector.extract_strided_slice %14 {offsets = [1, 0], sizes = [1, 32], strides = [1, 1]} : vector<4x32xf32> to vector<1x32xf32>
    %cst_56 = arith.constant dense<0.000000e+00> : vector<48xf32>
    %117 = vector.multi_reduction <add>, %114, %cst_56 [1] : vector<48x32xf32> to vector<48xf32>
    %118 = vector.shape_cast %117 : vector<48xf32> to vector<48x1xf32>
    %cst_57 = arith.constant 3.200000e+01 : f32
    %119 = vector.broadcast %cst_57 : f32 to vector<48x1xf32>
    %120 = arith.divf %118, %119 : vector<48x1xf32>
    %121 = vector.broadcast %120 : vector<48x1xf32> to vector<48x32xf32>
    %122 = arith.subf %114, %121 : vector<48x32xf32>
    %123 = arith.mulf %122, %122 : vector<48x32xf32>
    %cst_58 = arith.constant dense<0.000000e+00> : vector<48xf32>
    %124 = vector.multi_reduction <add>, %123, %cst_58 [1] : vector<48x32xf32> to vector<48xf32>
    %125 = vector.shape_cast %124 : vector<48xf32> to vector<48x1xf32>
    %cst_59 = arith.constant 3.200000e+01 : f32
    %126 = vector.broadcast %cst_59 : f32 to vector<48x1xf32>
    %127 = arith.divf %125, %126 : vector<48x1xf32>
    %128 = vector.broadcast %120 : vector<48x1xf32> to vector<48x32xf32>
    %129 = arith.subf %114, %128 : vector<48x32xf32>
    %cst_60 = arith.constant 9.99999974E-6 : f32
    %130 = vector.broadcast %cst_60 : f32 to vector<48x1xf32>
    %131 = arith.addf %127, %130 : vector<48x1xf32>
    %132 = math.rsqrt %131 : vector<48x1xf32>
    %133 = vector.broadcast %132 : vector<48x1xf32> to vector<48x32xf32>
    %134 = arith.mulf %129, %133 : vector<48x32xf32>
    %135 = vector.broadcast %115 : vector<1x32xf32> to vector<48x32xf32>
    %136 = arith.mulf %134, %135 : vector<48x32xf32>
    %137 = vector.broadcast %116 : vector<1x32xf32> to vector<48x32xf32>
    %138 = arith.addf %136, %137 : vector<48x32xf32>
    %139 = vector.extract_strided_slice %14 {offsets = [2, 0], sizes = [1, 32], strides = [1, 1]} : vector<4x32xf32> to vector<1x32xf32>
    %140 = vector.extract_strided_slice %14 {offsets = [3, 0], sizes = [1, 32], strides = [1, 1]} : vector<4x32xf32> to vector<1x32xf32>
    %cst_61 = arith.constant dense<0.000000e+00> : vector<48x64xf32>
    %141 = tpu.matmul %138, %15, %cst_61 {dimension_numbers = #tpu.dot_dimension_numbers<[1], [0], [0], [1], [0, 0, 1, 1], [], []>} : vector<48x32xf32>, vector<32x64xf32>, vector<48x64xf32> -> vector<48x64xf32>
    %142 = vector.broadcast %16 : vector<1x64xf32> to vector<48x64xf32>
    %143 = arith.addf %141, %142 : vector<48x64xf32>
    %cst_62 = arith.constant 0.000000e+00 : f32
    %144 = vector.broadcast %cst_62 : f32 to vector<48x64xf32>
    %145 = arith.maximumf %143, %144 : vector<48x64xf32>
    %cst_63 = arith.constant dense<0.000000e+00> : vector<48x32xf32>
    %146 = tpu.matmul %145, %17, %cst_63 {dimension_numbers = #tpu.dot_dimension_numbers<[1], [0], [0], [1], [0, 0, 1, 1], [], []>} : vector<48x64xf32>, vector<64x32xf32>, vector<48x32xf32> -> vector<48x32xf32>
    %147 = vector.broadcast %18 : vector<1x32xf32> to vector<48x32xf32>
    %148 = arith.addf %146, %147 : vector<48x32xf32>
    %149 = arith.addf %138, %148 : vector<48x32xf32>
    %cst_64 = arith.constant dense<0.000000e+00> : vector<48xf32>
    %150 = vector.multi_reduction <add>, %149, %cst_64 [1] : vector<48x32xf32> to vector<48xf32>
    %151 = vector.shape_cast %150 : vector<48xf32> to vector<48x1xf32>
    %cst_65 = arith.constant 3.200000e+01 : f32
    %152 = vector.broadcast %cst_65 : f32 to vector<48x1xf32>
    %153 = arith.divf %151, %152 : vector<48x1xf32>
    %154 = vector.broadcast %153 : vector<48x1xf32> to vector<48x32xf32>
    %155 = arith.subf %149, %154 : vector<48x32xf32>
    %156 = arith.mulf %155, %155 : vector<48x32xf32>
    %cst_66 = arith.constant dense<0.000000e+00> : vector<48xf32>
    %157 = vector.multi_reduction <add>, %156, %cst_66 [1] : vector<48x32xf32> to vector<48xf32>
    %158 = vector.shape_cast %157 : vector<48xf32> to vector<48x1xf32>
    %cst_67 = arith.constant 3.200000e+01 : f32
    %159 = vector.broadcast %cst_67 : f32 to vector<48x1xf32>
    %160 = arith.divf %158, %159 : vector<48x1xf32>
    %161 = vector.broadcast %153 : vector<48x1xf32> to vector<48x32xf32>
    %162 = arith.subf %149, %161 : vector<48x32xf32>
    %cst_68 = arith.constant 9.99999974E-6 : f32
    %163 = vector.broadcast %cst_68 : f32 to vector<48x1xf32>
    %164 = arith.addf %160, %163 : vector<48x1xf32>
    %165 = math.rsqrt %164 : vector<48x1xf32>
    %166 = vector.broadcast %165 : vector<48x1xf32> to vector<48x32xf32>
    %167 = arith.mulf %162, %166 : vector<48x32xf32>
    %168 = vector.broadcast %139 : vector<1x32xf32> to vector<48x32xf32>
    %169 = arith.mulf %167, %168 : vector<48x32xf32>
    %170 = vector.broadcast %140 : vector<1x32xf32> to vector<48x32xf32>
    %171 = arith.addf %169, %170 : vector<48x32xf32>
    %172 = vector.extract_strided_slice %171 {offsets = [0, 0], sizes = [32, 32], strides = [1, 1]} : vector<48x32xf32> to vector<32x32xf32>
    %173 = vector.extract_strided_slice %171 {offsets = [32, 0], sizes = [16, 32], strides = [1, 1]} : vector<48x32xf32> to vector<16x32xf32>
    %c0_69 = arith.constant 0 : index
    %c0_70 = arith.constant 0 : index
    %174 = vector.load %arg19[%c0_69, %c0_70] : memref<32x32xf32, #tpu.memory_space<vmem>>, vector<32x32xf32>
    %c0_71 = arith.constant 0 : index
    %c0_72 = arith.constant 0 : index
    %175 = vector.load %arg20[%c0_71, %c0_72] : memref<32x64xf32, #tpu.memory_space<vmem>>, vector<32x64xf32>
    %c0_73 = arith.constant 0 : index
    %c0_74 = arith.constant 0 : index
    %176 = vector.load %arg21[%c0_73, %c0_74] : memref<64x32xf32, #tpu.memory_space<vmem>>, vector<64x32xf32>
    %c0_75 = arith.constant 0 : index
    %c0_76 = arith.constant 0 : index
    %177 = vector.load %arg22[%c0_75, %c0_76] : memref<1x32xf32, #tpu.memory_space<vmem>>, vector<1x32xf32>
    %c0_77 = arith.constant 0 : index
    %c0_78 = arith.constant 0 : index
    %178 = vector.load %arg23[%c0_77, %c0_78] : memref<1x64xf32, #tpu.memory_space<vmem>>, vector<1x64xf32>
    %c0_79 = arith.constant 0 : index
    %c0_80 = arith.constant 0 : index
    %179 = vector.load %arg24[%c0_79, %c0_80] : memref<1x32xf32, #tpu.memory_space<vmem>>, vector<1x32xf32>
    %c0_81 = arith.constant 0 : index
    %c0_82 = arith.constant 0 : index
    %180 = vector.load %arg25[%c0_81, %c0_82] : memref<4x32xf32, #tpu.memory_space<vmem>>, vector<4x32xf32>
    %c0_83 = arith.constant 0 : index
    %c0_84 = arith.constant 0 : index
    %181 = vector.load %arg26[%c0_83, %c0_84] : memref<32x64xf32, #tpu.memory_space<vmem>>, vector<32x64xf32>
    %c0_85 = arith.constant 0 : index
    %c0_86 = arith.constant 0 : index
    %182 = vector.load %arg27[%c0_85, %c0_86] : memref<1x64xf32, #tpu.memory_space<vmem>>, vector<1x64xf32>
    %c0_87 = arith.constant 0 : index
    %c0_88 = arith.constant 0 : index
    %183 = vector.load %arg28[%c0_87, %c0_88] : memref<64x32xf32, #tpu.memory_space<vmem>>, vector<64x32xf32>
    %c0_89 = arith.constant 0 : index
    %c0_90 = arith.constant 0 : index
    %184 = vector.load %arg29[%c0_89, %c0_90] : memref<1x32xf32, #tpu.memory_space<vmem>>, vector<1x32xf32>
    %cst_91 = arith.constant dense<0.000000e+00> : vector<32x32xf32>
    %185 = tpu.matmul %172, %174, %cst_91 {dimension_numbers = #tpu.dot_dimension_numbers<[1], [0], [0], [1], [0, 0, 1, 1], [], []>} : vector<32x32xf32>, vector<32x32xf32>, vector<32x32xf32> -> vector<32x32xf32>
    %186 = vector.broadcast %177 : vector<1x32xf32> to vector<32x32xf32>
    %187 = arith.addf %185, %186 : vector<32x32xf32>
    %cst_92 = arith.constant dense<0.000000e+00> : vector<16x64xf32>
    %188 = tpu.matmul %173, %175, %cst_92 {dimension_numbers = #tpu.dot_dimension_numbers<[1], [0], [0], [1], [0, 0, 1, 1], [], []>} : vector<16x32xf32>, vector<32x64xf32>, vector<16x64xf32> -> vector<16x64xf32>
    %189 = vector.broadcast %178 : vector<1x64xf32> to vector<16x64xf32>
    %190 = arith.addf %188, %189 : vector<16x64xf32>
    %191 = vector.extract_strided_slice %190 {offsets = [0, 0], sizes = [16, 32], strides = [1, 1]} : vector<16x64xf32> to vector<16x32xf32>
    %192 = vector.extract_strided_slice %4 {offsets = [0, 0], sizes = [1, 32], strides = [1, 1]} : vector<4x32xf32> to vector<1x32xf32>
    %193 = vector.broadcast %192 : vector<1x32xf32> to vector<32x32xf32>
    %194 = arith.mulf %187, %193 : vector<32x32xf32>
    %cst_93 = arith.constant dense<0.000000e+00> : vector<32x16xf32>
    %195 = tpu.matmul %194, %191, %cst_93 {dimension_numbers = #tpu.dot_dimension_numbers<[1], [1], [0], [0], [0, 0, 1, 0], [], []>} : vector<32x32xf32>, vector<16x32xf32>, vector<32x16xf32> -> vector<32x16xf32>
    %196 = arith.addf %195, %7 : vector<32x16xf32>
    %cst_94 = arith.constant dense<0xFF800000> : vector<32xf32>
    %197 = vector.multi_reduction <maximumf>, %196, %cst_94 [1] : vector<32x16xf32> to vector<32xf32>
    %198 = vector.shape_cast %197 : vector<32xf32> to vector<32x1xf32>
    %199 = vector.broadcast %198 : vector<32x1xf32> to vector<32x16xf32>
    %200 = arith.subf %196, %199 : vector<32x16xf32>
    %201 = math.exp %200 : vector<32x16xf32>
    %cst_95 = arith.constant dense<0.000000e+00> : vector<32xf32>
    %202 = vector.multi_reduction <add>, %201, %cst_95 [1] : vector<32x16xf32> to vector<32xf32>
    %203 = vector.shape_cast %202 : vector<32xf32> to vector<32x1xf32>
    %204 = vector.broadcast %203 : vector<32x1xf32> to vector<32x16xf32>
    %205 = arith.divf %201, %204 : vector<32x16xf32>
    %206 = vector.extract_strided_slice %5 {offsets = [0, 0], sizes = [1, 64], strides = [1, 1]} : vector<4x64xf32> to vector<1x64xf32>
    %207 = vector.broadcast %206 : vector<1x64xf32> to vector<16x64xf32>
    %208 = arith.mulf %190, %207 : vector<16x64xf32>
    %cst_96 = arith.constant dense<0.000000e+00> : vector<32x64xf32>
    %209 = tpu.matmul %205, %208, %cst_96 {dimension_numbers = #tpu.dot_dimension_numbers<[1], [0], [0], [1], [0, 0, 1, 1], [], []>} : vector<32x16xf32>, vector<16x64xf32>, vector<32x64xf32> -> vector<32x64xf32>
    %210 = vector.extract_strided_slice %4 {offsets = [1, 0], sizes = [1, 32], strides = [1, 1]} : vector<4x32xf32> to vector<1x32xf32>
    %211 = vector.broadcast %210 : vector<1x32xf32> to vector<32x32xf32>
    %212 = arith.mulf %187, %211 : vector<32x32xf32>
    %cst_97 = arith.constant dense<0.000000e+00> : vector<32x16xf32>
    %213 = tpu.matmul %212, %191, %cst_97 {dimension_numbers = #tpu.dot_dimension_numbers<[1], [1], [0], [0], [0, 0, 1, 0], [], []>} : vector<32x32xf32>, vector<16x32xf32>, vector<32x16xf32> -> vector<32x16xf32>
    %214 = arith.addf %213, %7 : vector<32x16xf32>
    %cst_98 = arith.constant dense<0xFF800000> : vector<32xf32>
    %215 = vector.multi_reduction <maximumf>, %214, %cst_98 [1] : vector<32x16xf32> to vector<32xf32>
    %216 = vector.shape_cast %215 : vector<32xf32> to vector<32x1xf32>
    %217 = vector.broadcast %216 : vector<32x1xf32> to vector<32x16xf32>
    %218 = arith.subf %214, %217 : vector<32x16xf32>
    %219 = math.exp %218 : vector<32x16xf32>
    %cst_99 = arith.constant dense<0.000000e+00> : vector<32xf32>
    %220 = vector.multi_reduction <add>, %219, %cst_99 [1] : vector<32x16xf32> to vector<32xf32>
    %221 = vector.shape_cast %220 : vector<32xf32> to vector<32x1xf32>
    %222 = vector.broadcast %221 : vector<32x1xf32> to vector<32x16xf32>
    %223 = arith.divf %219, %222 : vector<32x16xf32>
    %224 = vector.extract_strided_slice %5 {offsets = [1, 0], sizes = [1, 64], strides = [1, 1]} : vector<4x64xf32> to vector<1x64xf32>
    %225 = vector.broadcast %224 : vector<1x64xf32> to vector<16x64xf32>
    %226 = arith.mulf %190, %225 : vector<16x64xf32>
    %cst_100 = arith.constant dense<0.000000e+00> : vector<32x64xf32>
    %227 = tpu.matmul %223, %226, %cst_100 {dimension_numbers = #tpu.dot_dimension_numbers<[1], [0], [0], [1], [0, 0, 1, 1], [], []>} : vector<32x16xf32>, vector<16x64xf32>, vector<32x64xf32> -> vector<32x64xf32>
    %228 = arith.addf %209, %227 : vector<32x64xf32>
    %229 = vector.extract_strided_slice %4 {offsets = [2, 0], sizes = [1, 32], strides = [1, 1]} : vector<4x32xf32> to vector<1x32xf32>
    %230 = vector.broadcast %229 : vector<1x32xf32> to vector<32x32xf32>
    %231 = arith.mulf %187, %230 : vector<32x32xf32>
    %cst_101 = arith.constant dense<0.000000e+00> : vector<32x16xf32>
    %232 = tpu.matmul %231, %191, %cst_101 {dimension_numbers = #tpu.dot_dimension_numbers<[1], [1], [0], [0], [0, 0, 1, 0], [], []>} : vector<32x32xf32>, vector<16x32xf32>, vector<32x16xf32> -> vector<32x16xf32>
    %233 = arith.addf %232, %7 : vector<32x16xf32>
    %cst_102 = arith.constant dense<0xFF800000> : vector<32xf32>
    %234 = vector.multi_reduction <maximumf>, %233, %cst_102 [1] : vector<32x16xf32> to vector<32xf32>
    %235 = vector.shape_cast %234 : vector<32xf32> to vector<32x1xf32>
    %236 = vector.broadcast %235 : vector<32x1xf32> to vector<32x16xf32>
    %237 = arith.subf %233, %236 : vector<32x16xf32>
    %238 = math.exp %237 : vector<32x16xf32>
    %cst_103 = arith.constant dense<0.000000e+00> : vector<32xf32>
    %239 = vector.multi_reduction <add>, %238, %cst_103 [1] : vector<32x16xf32> to vector<32xf32>
    %240 = vector.shape_cast %239 : vector<32xf32> to vector<32x1xf32>
    %241 = vector.broadcast %240 : vector<32x1xf32> to vector<32x16xf32>
    %242 = arith.divf %238, %241 : vector<32x16xf32>
    %243 = vector.extract_strided_slice %5 {offsets = [2, 0], sizes = [1, 64], strides = [1, 1]} : vector<4x64xf32> to vector<1x64xf32>
    %244 = vector.broadcast %243 : vector<1x64xf32> to vector<16x64xf32>
    %245 = arith.mulf %190, %244 : vector<16x64xf32>
    %cst_104 = arith.constant dense<0.000000e+00> : vector<32x64xf32>
    %246 = tpu.matmul %242, %245, %cst_104 {dimension_numbers = #tpu.dot_dimension_numbers<[1], [0], [0], [1], [0, 0, 1, 1], [], []>} : vector<32x16xf32>, vector<16x64xf32>, vector<32x64xf32> -> vector<32x64xf32>
    %247 = arith.addf %228, %246 : vector<32x64xf32>
    %248 = vector.extract_strided_slice %4 {offsets = [3, 0], sizes = [1, 32], strides = [1, 1]} : vector<4x32xf32> to vector<1x32xf32>
    %249 = vector.broadcast %248 : vector<1x32xf32> to vector<32x32xf32>
    %250 = arith.mulf %187, %249 : vector<32x32xf32>
    %cst_105 = arith.constant dense<0.000000e+00> : vector<32x16xf32>
    %251 = tpu.matmul %250, %191, %cst_105 {dimension_numbers = #tpu.dot_dimension_numbers<[1], [1], [0], [0], [0, 0, 1, 0], [], []>} : vector<32x32xf32>, vector<16x32xf32>, vector<32x16xf32> -> vector<32x16xf32>
    %252 = arith.addf %251, %7 : vector<32x16xf32>
    %cst_106 = arith.constant dense<0xFF800000> : vector<32xf32>
    %253 = vector.multi_reduction <maximumf>, %252, %cst_106 [1] : vector<32x16xf32> to vector<32xf32>
    %254 = vector.shape_cast %253 : vector<32xf32> to vector<32x1xf32>
    %255 = vector.broadcast %254 : vector<32x1xf32> to vector<32x16xf32>
    %256 = arith.subf %252, %255 : vector<32x16xf32>
    %257 = math.exp %256 : vector<32x16xf32>
    %cst_107 = arith.constant dense<0.000000e+00> : vector<32xf32>
    %258 = vector.multi_reduction <add>, %257, %cst_107 [1] : vector<32x16xf32> to vector<32xf32>
    %259 = vector.shape_cast %258 : vector<32xf32> to vector<32x1xf32>
    %260 = vector.broadcast %259 : vector<32x1xf32> to vector<32x16xf32>
    %261 = arith.divf %257, %260 : vector<32x16xf32>
    %262 = vector.extract_strided_slice %5 {offsets = [3, 0], sizes = [1, 64], strides = [1, 1]} : vector<4x64xf32> to vector<1x64xf32>
    %263 = vector.broadcast %262 : vector<1x64xf32> to vector<16x64xf32>
    %264 = arith.mulf %190, %263 : vector<16x64xf32>
    %cst_108 = arith.constant dense<0.000000e+00> : vector<32x64xf32>
    %265 = tpu.matmul %261, %264, %cst_108 {dimension_numbers = #tpu.dot_dimension_numbers<[1], [0], [0], [1], [0, 0, 1, 1], [], []>} : vector<32x16xf32>, vector<16x64xf32>, vector<32x64xf32> -> vector<32x64xf32>
    %266 = arith.addf %247, %265 : vector<32x64xf32>
    %cst_109 = arith.constant dense<0.000000e+00> : vector<32x32xf32>
    %267 = tpu.matmul %266, %176, %cst_109 {dimension_numbers = #tpu.dot_dimension_numbers<[1], [0], [0], [1], [0, 0, 1, 1], [], []>} : vector<32x64xf32>, vector<64x32xf32>, vector<32x32xf32> -> vector<32x32xf32>
    %268 = vector.broadcast %179 : vector<1x32xf32> to vector<32x32xf32>
    %269 = arith.addf %267, %268 : vector<32x32xf32>
    %270 = arith.addf %269, %172 : vector<32x32xf32>
    %271 = vector.extract_strided_slice %180 {offsets = [0, 0], sizes = [1, 32], strides = [1, 1]} : vector<4x32xf32> to vector<1x32xf32>
    %272 = vector.extract_strided_slice %180 {offsets = [1, 0], sizes = [1, 32], strides = [1, 1]} : vector<4x32xf32> to vector<1x32xf32>
    %cst_110 = arith.constant dense<0.000000e+00> : vector<32xf32>
    %273 = vector.multi_reduction <add>, %270, %cst_110 [1] : vector<32x32xf32> to vector<32xf32>
    %274 = vector.shape_cast %273 : vector<32xf32> to vector<32x1xf32>
    %cst_111 = arith.constant 3.200000e+01 : f32
    %275 = vector.broadcast %cst_111 : f32 to vector<32x1xf32>
    %276 = arith.divf %274, %275 : vector<32x1xf32>
    %277 = vector.broadcast %276 : vector<32x1xf32> to vector<32x32xf32>
    %278 = arith.subf %270, %277 : vector<32x32xf32>
    %279 = arith.mulf %278, %278 : vector<32x32xf32>
    %cst_112 = arith.constant dense<0.000000e+00> : vector<32xf32>
    %280 = vector.multi_reduction <add>, %279, %cst_112 [1] : vector<32x32xf32> to vector<32xf32>
    %281 = vector.shape_cast %280 : vector<32xf32> to vector<32x1xf32>
    %cst_113 = arith.constant 3.200000e+01 : f32
    %282 = vector.broadcast %cst_113 : f32 to vector<32x1xf32>
    %283 = arith.divf %281, %282 : vector<32x1xf32>
    %284 = vector.broadcast %276 : vector<32x1xf32> to vector<32x32xf32>
    %285 = arith.subf %270, %284 : vector<32x32xf32>
    %cst_114 = arith.constant 9.99999974E-6 : f32
    %286 = vector.broadcast %cst_114 : f32 to vector<32x1xf32>
    %287 = arith.addf %283, %286 : vector<32x1xf32>
    %288 = math.rsqrt %287 : vector<32x1xf32>
    %289 = vector.broadcast %288 : vector<32x1xf32> to vector<32x32xf32>
    %290 = arith.mulf %285, %289 : vector<32x32xf32>
    %291 = vector.broadcast %271 : vector<1x32xf32> to vector<32x32xf32>
    %292 = arith.mulf %290, %291 : vector<32x32xf32>
    %293 = vector.broadcast %272 : vector<1x32xf32> to vector<32x32xf32>
    %294 = arith.addf %292, %293 : vector<32x32xf32>
    %295 = vector.extract_strided_slice %180 {offsets = [2, 0], sizes = [1, 32], strides = [1, 1]} : vector<4x32xf32> to vector<1x32xf32>
    %296 = vector.extract_strided_slice %180 {offsets = [3, 0], sizes = [1, 32], strides = [1, 1]} : vector<4x32xf32> to vector<1x32xf32>
    %cst_115 = arith.constant dense<0.000000e+00> : vector<32x64xf32>
    %297 = tpu.matmul %294, %181, %cst_115 {dimension_numbers = #tpu.dot_dimension_numbers<[1], [0], [0], [1], [0, 0, 1, 1], [], []>} : vector<32x32xf32>, vector<32x64xf32>, vector<32x64xf32> -> vector<32x64xf32>
    %298 = vector.broadcast %182 : vector<1x64xf32> to vector<32x64xf32>
    %299 = arith.addf %297, %298 : vector<32x64xf32>
    %cst_116 = arith.constant 0.000000e+00 : f32
    %300 = vector.broadcast %cst_116 : f32 to vector<32x64xf32>
    %301 = arith.maximumf %299, %300 : vector<32x64xf32>
    %cst_117 = arith.constant dense<0.000000e+00> : vector<32x32xf32>
    %302 = tpu.matmul %301, %183, %cst_117 {dimension_numbers = #tpu.dot_dimension_numbers<[1], [0], [0], [1], [0, 0, 1, 1], [], []>} : vector<32x64xf32>, vector<64x32xf32>, vector<32x32xf32> -> vector<32x32xf32>
    %303 = vector.broadcast %184 : vector<1x32xf32> to vector<32x32xf32>
    %304 = arith.addf %302, %303 : vector<32x32xf32>
    %305 = arith.addf %294, %304 : vector<32x32xf32>
    %cst_118 = arith.constant dense<0.000000e+00> : vector<32xf32>
    %306 = vector.multi_reduction <add>, %305, %cst_118 [1] : vector<32x32xf32> to vector<32xf32>
    %307 = vector.shape_cast %306 : vector<32xf32> to vector<32x1xf32>
    %cst_119 = arith.constant 3.200000e+01 : f32
    %308 = vector.broadcast %cst_119 : f32 to vector<32x1xf32>
    %309 = arith.divf %307, %308 : vector<32x1xf32>
    %310 = vector.broadcast %309 : vector<32x1xf32> to vector<32x32xf32>
    %311 = arith.subf %305, %310 : vector<32x32xf32>
    %312 = arith.mulf %311, %311 : vector<32x32xf32>
    %cst_120 = arith.constant dense<0.000000e+00> : vector<32xf32>
    %313 = vector.multi_reduction <add>, %312, %cst_120 [1] : vector<32x32xf32> to vector<32xf32>
    %314 = vector.shape_cast %313 : vector<32xf32> to vector<32x1xf32>
    %cst_121 = arith.constant 3.200000e+01 : f32
    %315 = vector.broadcast %cst_121 : f32 to vector<32x1xf32>
    %316 = arith.divf %314, %315 : vector<32x1xf32>
    %317 = vector.broadcast %309 : vector<32x1xf32> to vector<32x32xf32>
    %318 = arith.subf %305, %317 : vector<32x32xf32>
    %cst_122 = arith.constant 9.99999974E-6 : f32
    %319 = vector.broadcast %cst_122 : f32 to vector<32x1xf32>
    %320 = arith.addf %316, %319 : vector<32x1xf32>
    %321 = math.rsqrt %320 : vector<32x1xf32>
    %322 = vector.broadcast %321 : vector<32x1xf32> to vector<32x32xf32>
    %323 = arith.mulf %318, %322 : vector<32x32xf32>
    %324 = vector.broadcast %295 : vector<1x32xf32> to vector<32x32xf32>
    %325 = arith.mulf %323, %324 : vector<32x32xf32>
    %326 = vector.broadcast %296 : vector<1x32xf32> to vector<32x32xf32>
    %327 = arith.addf %325, %326 : vector<32x32xf32>
    %cst_123 = arith.constant dense<0.000000e+00> : vector<16x32xf32>
    %328 = tpu.matmul %173, %174, %cst_123 {dimension_numbers = #tpu.dot_dimension_numbers<[1], [0], [0], [1], [0, 0, 1, 1], [], []>} : vector<16x32xf32>, vector<32x32xf32>, vector<16x32xf32> -> vector<16x32xf32>
    %329 = vector.broadcast %177 : vector<1x32xf32> to vector<16x32xf32>
    %330 = arith.addf %328, %329 : vector<16x32xf32>
    %cst_124 = arith.constant dense<0.000000e+00> : vector<32x64xf32>
    %331 = tpu.matmul %327, %175, %cst_124 {dimension_numbers = #tpu.dot_dimension_numbers<[1], [0], [0], [1], [0, 0, 1, 1], [], []>} : vector<32x32xf32>, vector<32x64xf32>, vector<32x64xf32> -> vector<32x64xf32>
    %332 = vector.broadcast %178 : vector<1x64xf32> to vector<32x64xf32>
    %333 = arith.addf %331, %332 : vector<32x64xf32>
    %334 = vector.extract_strided_slice %333 {offsets = [0, 0], sizes = [32, 32], strides = [1, 1]} : vector<32x64xf32> to vector<32x32xf32>
    %335 = vector.extract_strided_slice %4 {offsets = [0, 0], sizes = [1, 32], strides = [1, 1]} : vector<4x32xf32> to vector<1x32xf32>
    %336 = vector.broadcast %335 : vector<1x32xf32> to vector<16x32xf32>
    %337 = arith.mulf %330, %336 : vector<16x32xf32>
    %cst_125 = arith.constant dense<0.000000e+00> : vector<16x32xf32>
    %338 = tpu.matmul %337, %334, %cst_125 {dimension_numbers = #tpu.dot_dimension_numbers<[1], [1], [0], [0], [0, 0, 1, 0], [], []>} : vector<16x32xf32>, vector<32x32xf32>, vector<16x32xf32> -> vector<16x32xf32>
    %339 = arith.addf %338, %8 : vector<16x32xf32>
    %cst_126 = arith.constant dense<0xFF800000> : vector<16xf32>
    %340 = vector.multi_reduction <maximumf>, %339, %cst_126 [1] : vector<16x32xf32> to vector<16xf32>
    %341 = vector.shape_cast %340 : vector<16xf32> to vector<16x1xf32>
    %342 = vector.broadcast %341 : vector<16x1xf32> to vector<16x32xf32>
    %343 = arith.subf %339, %342 : vector<16x32xf32>
    %344 = math.exp %343 : vector<16x32xf32>
    %cst_127 = arith.constant dense<0.000000e+00> : vector<16xf32>
    %345 = vector.multi_reduction <add>, %344, %cst_127 [1] : vector<16x32xf32> to vector<16xf32>
    %346 = vector.shape_cast %345 : vector<16xf32> to vector<16x1xf32>
    %347 = vector.broadcast %346 : vector<16x1xf32> to vector<16x32xf32>
    %348 = arith.divf %344, %347 : vector<16x32xf32>
    %349 = vector.extract_strided_slice %5 {offsets = [0, 0], sizes = [1, 64], strides = [1, 1]} : vector<4x64xf32> to vector<1x64xf32>
    %350 = vector.broadcast %349 : vector<1x64xf32> to vector<32x64xf32>
    %351 = arith.mulf %333, %350 : vector<32x64xf32>
    %cst_128 = arith.constant dense<0.000000e+00> : vector<16x64xf32>
    %352 = tpu.matmul %348, %351, %cst_128 {dimension_numbers = #tpu.dot_dimension_numbers<[1], [0], [0], [1], [0, 0, 1, 1], [], []>} : vector<16x32xf32>, vector<32x64xf32>, vector<16x64xf32> -> vector<16x64xf32>
    %353 = vector.extract_strided_slice %4 {offsets = [1, 0], sizes = [1, 32], strides = [1, 1]} : vector<4x32xf32> to vector<1x32xf32>
    %354 = vector.broadcast %353 : vector<1x32xf32> to vector<16x32xf32>
    %355 = arith.mulf %330, %354 : vector<16x32xf32>
    %cst_129 = arith.constant dense<0.000000e+00> : vector<16x32xf32>
    %356 = tpu.matmul %355, %334, %cst_129 {dimension_numbers = #tpu.dot_dimension_numbers<[1], [1], [0], [0], [0, 0, 1, 0], [], []>} : vector<16x32xf32>, vector<32x32xf32>, vector<16x32xf32> -> vector<16x32xf32>
    %357 = arith.addf %356, %8 : vector<16x32xf32>
    %cst_130 = arith.constant dense<0xFF800000> : vector<16xf32>
    %358 = vector.multi_reduction <maximumf>, %357, %cst_130 [1] : vector<16x32xf32> to vector<16xf32>
    %359 = vector.shape_cast %358 : vector<16xf32> to vector<16x1xf32>
    %360 = vector.broadcast %359 : vector<16x1xf32> to vector<16x32xf32>
    %361 = arith.subf %357, %360 : vector<16x32xf32>
    %362 = math.exp %361 : vector<16x32xf32>
    %cst_131 = arith.constant dense<0.000000e+00> : vector<16xf32>
    %363 = vector.multi_reduction <add>, %362, %cst_131 [1] : vector<16x32xf32> to vector<16xf32>
    %364 = vector.shape_cast %363 : vector<16xf32> to vector<16x1xf32>
    %365 = vector.broadcast %364 : vector<16x1xf32> to vector<16x32xf32>
    %366 = arith.divf %362, %365 : vector<16x32xf32>
    %367 = vector.extract_strided_slice %5 {offsets = [1, 0], sizes = [1, 64], strides = [1, 1]} : vector<4x64xf32> to vector<1x64xf32>
    %368 = vector.broadcast %367 : vector<1x64xf32> to vector<32x64xf32>
    %369 = arith.mulf %333, %368 : vector<32x64xf32>
    %cst_132 = arith.constant dense<0.000000e+00> : vector<16x64xf32>
    %370 = tpu.matmul %366, %369, %cst_132 {dimension_numbers = #tpu.dot_dimension_numbers<[1], [0], [0], [1], [0, 0, 1, 1], [], []>} : vector<16x32xf32>, vector<32x64xf32>, vector<16x64xf32> -> vector<16x64xf32>
    %371 = arith.addf %352, %370 : vector<16x64xf32>
    %372 = vector.extract_strided_slice %4 {offsets = [2, 0], sizes = [1, 32], strides = [1, 1]} : vector<4x32xf32> to vector<1x32xf32>
    %373 = vector.broadcast %372 : vector<1x32xf32> to vector<16x32xf32>
    %374 = arith.mulf %330, %373 : vector<16x32xf32>
    %cst_133 = arith.constant dense<0.000000e+00> : vector<16x32xf32>
    %375 = tpu.matmul %374, %334, %cst_133 {dimension_numbers = #tpu.dot_dimension_numbers<[1], [1], [0], [0], [0, 0, 1, 0], [], []>} : vector<16x32xf32>, vector<32x32xf32>, vector<16x32xf32> -> vector<16x32xf32>
    %376 = arith.addf %375, %8 : vector<16x32xf32>
    %cst_134 = arith.constant dense<0xFF800000> : vector<16xf32>
    %377 = vector.multi_reduction <maximumf>, %376, %cst_134 [1] : vector<16x32xf32> to vector<16xf32>
    %378 = vector.shape_cast %377 : vector<16xf32> to vector<16x1xf32>
    %379 = vector.broadcast %378 : vector<16x1xf32> to vector<16x32xf32>
    %380 = arith.subf %376, %379 : vector<16x32xf32>
    %381 = math.exp %380 : vector<16x32xf32>
    %cst_135 = arith.constant dense<0.000000e+00> : vector<16xf32>
    %382 = vector.multi_reduction <add>, %381, %cst_135 [1] : vector<16x32xf32> to vector<16xf32>
    %383 = vector.shape_cast %382 : vector<16xf32> to vector<16x1xf32>
    %384 = vector.broadcast %383 : vector<16x1xf32> to vector<16x32xf32>
    %385 = arith.divf %381, %384 : vector<16x32xf32>
    %386 = vector.extract_strided_slice %5 {offsets = [2, 0], sizes = [1, 64], strides = [1, 1]} : vector<4x64xf32> to vector<1x64xf32>
    %387 = vector.broadcast %386 : vector<1x64xf32> to vector<32x64xf32>
    %388 = arith.mulf %333, %387 : vector<32x64xf32>
    %cst_136 = arith.constant dense<0.000000e+00> : vector<16x64xf32>
    %389 = tpu.matmul %385, %388, %cst_136 {dimension_numbers = #tpu.dot_dimension_numbers<[1], [0], [0], [1], [0, 0, 1, 1], [], []>} : vector<16x32xf32>, vector<32x64xf32>, vector<16x64xf32> -> vector<16x64xf32>
    %390 = arith.addf %371, %389 : vector<16x64xf32>
    %391 = vector.extract_strided_slice %4 {offsets = [3, 0], sizes = [1, 32], strides = [1, 1]} : vector<4x32xf32> to vector<1x32xf32>
    %392 = vector.broadcast %391 : vector<1x32xf32> to vector<16x32xf32>
    %393 = arith.mulf %330, %392 : vector<16x32xf32>
    %cst_137 = arith.constant dense<0.000000e+00> : vector<16x32xf32>
    %394 = tpu.matmul %393, %334, %cst_137 {dimension_numbers = #tpu.dot_dimension_numbers<[1], [1], [0], [0], [0, 0, 1, 0], [], []>} : vector<16x32xf32>, vector<32x32xf32>, vector<16x32xf32> -> vector<16x32xf32>
    %395 = arith.addf %394, %8 : vector<16x32xf32>
    %cst_138 = arith.constant dense<0xFF800000> : vector<16xf32>
    %396 = vector.multi_reduction <maximumf>, %395, %cst_138 [1] : vector<16x32xf32> to vector<16xf32>
    %397 = vector.shape_cast %396 : vector<16xf32> to vector<16x1xf32>
    %398 = vector.broadcast %397 : vector<16x1xf32> to vector<16x32xf32>
    %399 = arith.subf %395, %398 : vector<16x32xf32>
    %400 = math.exp %399 : vector<16x32xf32>
    %cst_139 = arith.constant dense<0.000000e+00> : vector<16xf32>
    %401 = vector.multi_reduction <add>, %400, %cst_139 [1] : vector<16x32xf32> to vector<16xf32>
    %402 = vector.shape_cast %401 : vector<16xf32> to vector<16x1xf32>
    %403 = vector.broadcast %402 : vector<16x1xf32> to vector<16x32xf32>
    %404 = arith.divf %400, %403 : vector<16x32xf32>
    %405 = vector.extract_strided_slice %5 {offsets = [3, 0], sizes = [1, 64], strides = [1, 1]} : vector<4x64xf32> to vector<1x64xf32>
    %406 = vector.broadcast %405 : vector<1x64xf32> to vector<32x64xf32>
    %407 = arith.mulf %333, %406 : vector<32x64xf32>
    %cst_140 = arith.constant dense<0.000000e+00> : vector<16x64xf32>
    %408 = tpu.matmul %404, %407, %cst_140 {dimension_numbers = #tpu.dot_dimension_numbers<[1], [0], [0], [1], [0, 0, 1, 1], [], []>} : vector<16x32xf32>, vector<32x64xf32>, vector<16x64xf32> -> vector<16x64xf32>
    %409 = arith.addf %390, %408 : vector<16x64xf32>
    %cst_141 = arith.constant dense<0.000000e+00> : vector<16x32xf32>
    %410 = tpu.matmul %409, %176, %cst_141 {dimension_numbers = #tpu.dot_dimension_numbers<[1], [0], [0], [1], [0, 0, 1, 1], [], []>} : vector<16x64xf32>, vector<64x32xf32>, vector<16x32xf32> -> vector<16x32xf32>
    %411 = vector.broadcast %179 : vector<1x32xf32> to vector<16x32xf32>
    %412 = arith.addf %410, %411 : vector<16x32xf32>
    %413 = arith.addf %412, %173 : vector<16x32xf32>
    %414 = vector.extract_strided_slice %180 {offsets = [0, 0], sizes = [1, 32], strides = [1, 1]} : vector<4x32xf32> to vector<1x32xf32>
    %415 = vector.extract_strided_slice %180 {offsets = [1, 0], sizes = [1, 32], strides = [1, 1]} : vector<4x32xf32> to vector<1x32xf32>
    %cst_142 = arith.constant dense<0.000000e+00> : vector<16xf32>
    %416 = vector.multi_reduction <add>, %413, %cst_142 [1] : vector<16x32xf32> to vector<16xf32>
    %417 = vector.shape_cast %416 : vector<16xf32> to vector<16x1xf32>
    %cst_143 = arith.constant 3.200000e+01 : f32
    %418 = vector.broadcast %cst_143 : f32 to vector<16x1xf32>
    %419 = arith.divf %417, %418 : vector<16x1xf32>
    %420 = vector.broadcast %419 : vector<16x1xf32> to vector<16x32xf32>
    %421 = arith.subf %413, %420 : vector<16x32xf32>
    %422 = arith.mulf %421, %421 : vector<16x32xf32>
    %cst_144 = arith.constant dense<0.000000e+00> : vector<16xf32>
    %423 = vector.multi_reduction <add>, %422, %cst_144 [1] : vector<16x32xf32> to vector<16xf32>
    %424 = vector.shape_cast %423 : vector<16xf32> to vector<16x1xf32>
    %cst_145 = arith.constant 3.200000e+01 : f32
    %425 = vector.broadcast %cst_145 : f32 to vector<16x1xf32>
    %426 = arith.divf %424, %425 : vector<16x1xf32>
    %427 = vector.broadcast %419 : vector<16x1xf32> to vector<16x32xf32>
    %428 = arith.subf %413, %427 : vector<16x32xf32>
    %cst_146 = arith.constant 9.99999974E-6 : f32
    %429 = vector.broadcast %cst_146 : f32 to vector<16x1xf32>
    %430 = arith.addf %426, %429 : vector<16x1xf32>
    %431 = math.rsqrt %430 : vector<16x1xf32>
    %432 = vector.broadcast %431 : vector<16x1xf32> to vector<16x32xf32>
    %433 = arith.mulf %428, %432 : vector<16x32xf32>
    %434 = vector.broadcast %414 : vector<1x32xf32> to vector<16x32xf32>
    %435 = arith.mulf %433, %434 : vector<16x32xf32>
    %436 = vector.broadcast %415 : vector<1x32xf32> to vector<16x32xf32>
    %437 = arith.addf %435, %436 : vector<16x32xf32>
    %438 = vector.extract_strided_slice %180 {offsets = [2, 0], sizes = [1, 32], strides = [1, 1]} : vector<4x32xf32> to vector<1x32xf32>
    %439 = vector.extract_strided_slice %180 {offsets = [3, 0], sizes = [1, 32], strides = [1, 1]} : vector<4x32xf32> to vector<1x32xf32>
    %cst_147 = arith.constant dense<0.000000e+00> : vector<16x64xf32>
    %440 = tpu.matmul %437, %181, %cst_147 {dimension_numbers = #tpu.dot_dimension_numbers<[1], [0], [0], [1], [0, 0, 1, 1], [], []>} : vector<16x32xf32>, vector<32x64xf32>, vector<16x64xf32> -> vector<16x64xf32>
    %441 = vector.broadcast %182 : vector<1x64xf32> to vector<16x64xf32>
    %442 = arith.addf %440, %441 : vector<16x64xf32>
    %cst_148 = arith.constant 0.000000e+00 : f32
    %443 = vector.broadcast %cst_148 : f32 to vector<16x64xf32>
    %444 = arith.maximumf %442, %443 : vector<16x64xf32>
    %cst_149 = arith.constant dense<0.000000e+00> : vector<16x32xf32>
    %445 = tpu.matmul %444, %183, %cst_149 {dimension_numbers = #tpu.dot_dimension_numbers<[1], [0], [0], [1], [0, 0, 1, 1], [], []>} : vector<16x64xf32>, vector<64x32xf32>, vector<16x32xf32> -> vector<16x32xf32>
    %446 = vector.broadcast %184 : vector<1x32xf32> to vector<16x32xf32>
    %447 = arith.addf %445, %446 : vector<16x32xf32>
    %448 = arith.addf %437, %447 : vector<16x32xf32>
    %cst_150 = arith.constant dense<0.000000e+00> : vector<16xf32>
    %449 = vector.multi_reduction <add>, %448, %cst_150 [1] : vector<16x32xf32> to vector<16xf32>
    %450 = vector.shape_cast %449 : vector<16xf32> to vector<16x1xf32>
    %cst_151 = arith.constant 3.200000e+01 : f32
    %451 = vector.broadcast %cst_151 : f32 to vector<16x1xf32>
    %452 = arith.divf %450, %451 : vector<16x1xf32>
    %453 = vector.broadcast %452 : vector<16x1xf32> to vector<16x32xf32>
    %454 = arith.subf %448, %453 : vector<16x32xf32>
    %455 = arith.mulf %454, %454 : vector<16x32xf32>
    %cst_152 = arith.constant dense<0.000000e+00> : vector<16xf32>
    %456 = vector.multi_reduction <add>, %455, %cst_152 [1] : vector<16x32xf32> to vector<16xf32>
    %457 = vector.shape_cast %456 : vector<16xf32> to vector<16x1xf32>
    %cst_153 = arith.constant 3.200000e+01 : f32
    %458 = vector.broadcast %cst_153 : f32 to vector<16x1xf32>
    %459 = arith.divf %457, %458 : vector<16x1xf32>
    %460 = vector.broadcast %452 : vector<16x1xf32> to vector<16x32xf32>
    %461 = arith.subf %448, %460 : vector<16x32xf32>
    %cst_154 = arith.constant 9.99999974E-6 : f32
    %462 = vector.broadcast %cst_154 : f32 to vector<16x1xf32>
    %463 = arith.addf %459, %462 : vector<16x1xf32>
    %464 = math.rsqrt %463 : vector<16x1xf32>
    %465 = vector.broadcast %464 : vector<16x1xf32> to vector<16x32xf32>
    %466 = arith.mulf %461, %465 : vector<16x32xf32>
    %467 = vector.broadcast %438 : vector<1x32xf32> to vector<16x32xf32>
    %468 = arith.mulf %466, %467 : vector<16x32xf32>
    %469 = vector.broadcast %439 : vector<1x32xf32> to vector<16x32xf32>
    %470 = arith.addf %468, %469 : vector<16x32xf32>
    %c0_155 = arith.constant 0 : index
    %c0_156 = arith.constant 0 : index
    %471 = vector.load %arg30[%c0_155, %c0_156] : memref<32x32xf32, #tpu.memory_space<vmem>>, vector<32x32xf32>
    tpu.vector_store %arg30[%c0_155, %c0_156], %327 {strides = array<i32>} : memref<32x32xf32, #tpu.memory_space<vmem>>, vector<32x32xf32>,
    %c0_157 = arith.constant 0 : index
    %c0_158 = arith.constant 0 : index
    %472 = vector.load %arg31[%c0_157, %c0_158] : memref<16x32xf32, #tpu.memory_space<vmem>>, vector<16x32xf32>
    tpu.vector_store %arg31[%c0_157, %c0_158], %470 {strides = array<i32>} : memref<16x32xf32, #tpu.memory_space<vmem>>, vector<16x32xf32>,
    return
  }
}

</mosaic_0001>

<bundles_post_ra>
// kernel: pe_conditional_transformer_forward.1
= control target key start
LH: loop header
LB: loop body
LE: loop exit
PB: predicated region body
PF: predicated region fallthrough
CT: control target
= control target key end

     0   :  { %s5056_s6 = smov 1   ;;  %s5057_s10 = smov 2   ;;  %s7066_s0 = inlined_call_operand.smem [shape: u32[32], index: -1, kind: input, shape index: {}] }
   0x1   :  { %s5114_s5 = sld [smem:[%s7066_s0]]   ;;  %s5058_s14 = smov 3  }
   0x2   :  { %s5119_s9 = sld [smem:[%s7066_s0 + %s5056_s6]]   ;;  %s5059_s18 = smov 4  }
   0x3   :  { %s5124_s13 = sld [smem:[%s7066_s0 + %s5057_s10]]   ;;  %s5060_s22 = smov 5  }
   0x4   :  { %s5129_s17 = sld [smem:[%s7066_s0 + %s5058_s14]]   ;;  %s5061_s26 = smov 6  }
   0x5   :  { %s5134_s21 = sld [smem:[%s7066_s0 + %s5059_s18]]   ;;  %s5062_s30 = smov 7  }
   0x6   :  { %s5139_s25 = sld [smem:[%s7066_s0 + %s5060_s22]]   ;;  %s5063_s4 = smov 8  }
   0x7   :  { %7077 = sst [smem:[#allocation38_spill]] %s5114_s5  ;;  %s5064_s10 = smov 9  }
   0x8   :  { %s5144_s29 = sld [smem:[%s7066_s0 + %s5061_s26]]   ;;  %s5065_s15 = smov 10  }
   0x9   :  { %7078 = sst [smem:[#allocation39_spill]] %s5124_s13  ;;  %s5066_s20 = smov 11  }
   0xa   :  { %s5149_s3 = sld [smem:[%s7066_s0 + %s5062_s30]]   ;;  %s5067_s26 = smov 12  }
   0xb   :  { %7079 = sst [smem:[#allocation40_spill]] %s5134_s21  ;;  %s5068_s1 = smov 13  }
   0xc   :  { %7080 = sst [smem:[#allocation41_spill]] %s5139_s25  ;;  %s5069_s7 = smov 14  }
   0xd   :  { %s5154_s8 = sld [smem:[%s7066_s0 + %s5063_s4]]   ;;  %s5071_s22 = smov 16  }
   0xe   :  { %7081 = sst [smem:[#allocation42_spill]] %s5144_s29  ;;  %s5072_s28 = smov 17  }
   0xf   :  { %s5159_s14 = sld [smem:[%s7066_s0 + %s5064_s10]]  }
  0x10   :  { %7082 = sst [smem:[#allocation43_spill]] %s5149_s3 }
  0x11   :  { %s5164_s19 = sld [smem:[%s7066_s0 + %s5065_s15]]   ;;  %s5070_s15 = smov 15  }
  0x12   :  { %s5169_s24 = sld [smem:[%s7066_s0 + %s5066_s20]]  }
  0x13   :  { %s5174_s30 = sld [smem:[%s7066_s0 + %s5067_s26]]  }
  0x14   :  { %s5179_s6 = sld [smem:[%s7066_s0 + %s5068_s1]]  }
  0x15   :  { %s5184_s12 = sld [smem:[%s7066_s0 + %s5069_s7]]   ;;  %s5073_s7 = smov 18  }
  0x16   :  { %s5189_s20 = sld [smem:[%s7066_s0 + %s5070_s15]]   ;;  %s5074_s15 = smov 19  }
  0x17   :  { %7083 = sst [smem:[#allocation44_spill]] %s5164_s19 }
  0x18   :  { %7084 = sst [smem:[#allocation45_spill]] %s5169_s24 }
  0x19   :  { %7085 = sst [smem:[#allocation46_spill]] %s5174_s30 }
  0x1a   :  { %7086 = sst [smem:[#allocation47_spill]] %s5179_s6 }
  0x1b   :  { %s5194_s27 = sld [smem:[%s7066_s0 + %s5071_s22]]   ;;  %s5075_s22 = smov 20  }
  0x1c   :  { %s5199_s4 = sld [smem:[%s7066_s0 + %s5072_s28]]   ;;  %s5076_s28 = smov 21  }
  0x1d   :  { %s5204_s3 = sld [smem:[%s7066_s0 + %s5073_s7]]   ;;  %s5077_s7 = smov 22  }
  0x1e   :  { %s5209_s25 = sld [smem:[%s7066_s0 + %s5074_s15]]   ;;  %s5078_s15 = smov 23  }
  0x1f   :  { %s5229_s30 = sld [smem:[%s7066_s0 + %s5078_s15]]   ;;  %s5082_s15 = smov 27  }
  0x20   :  { %s5249_s6 = sld [smem:[%s7066_s0 + %s5082_s15]]   ;;  %s5086_s15 = smov 31  }
  0x21   :  { %7087 = sst [smem:[#allocation48_spill]] %s5194_s27 }
  0x22   :  { %7088 = sst [smem:[#allocation49_spill]] %s5199_s4 }
  0x23   :  { %7089 = sst [smem:[#allocation50_spill]] %s5204_s3 }
  0x24   :  { %s5214_s27 = sld [smem:[%s7066_s0 + %s5075_s22]]   ;;  %s5079_s22 = smov 24  }
  0x25   :  { %s5219_s4 = sld [smem:[%s7066_s0 + %s5076_s28]]   ;;  %s5080_s28 = smov 25  }
  0x26   :  { %s5224_s3 = sld [smem:[%s7066_s0 + %s5077_s7]]   ;;  %s5081_s7 = smov 26  }
  0x27   :  { %s5234_s29 = sld [smem:[%s7066_s0 + %s5079_s22]]   ;;  %s5083_s22 = smov 28  }
  0x28   :  { %s5244_s21 = sld [smem:[%s7066_s0 + %s5081_s7]]   ;;  %s5085_s7 = smov 30  }
  0x29   :  { %s5254_s24 = sld [smem:[%s7066_s0 + %s5083_s22]]  }
  0x2a   :  { %s5264_s5 = sld [smem:[%s7066_s0 + %s5085_s7]]  }
  0x2b   :  { %7090 = sst [smem:[#allocation51_spill]] %s5219_s4 }
  0x2c   :  { %s5239_s4 = sld [smem:[%s7066_s0 + %s5080_s28]]   ;;  %s5084_s28 = smov 29  }
  0x2d   :  { %s5259_s13 = sld [smem:[%s7066_s0 + %s5084_s28]]  }
  0x2e   :  { %s5269_s19 = sld [smem:[%s7066_s0 + %s5086_s15]]  }
  0x2f   :  { %69 = vsyncpa [#allocation3], 0 }
  0x30   :  { %70 = vsyncpa [#allocation6], 0 }
  0x31   :  { %71 = vsyncpa [#allocation9], 0 }
  0x32   :  { %72 = vsyncpa [#allocation12], 0 }
  0x33   :  { %73 = vsyncpa [#allocation15], 0 }
  0x34   :  { %74 = vsyncpa [#allocation18], 0 }
  0x35   :  { %75 = vsyncpa [#allocation21], 0 }
  0x36   :  { %76 = vsyncpa [#allocation24], 0 }
  0x37   :  { %77 = vsyncpa [#allocation4], 0 }
  0x38   :  { %78 = vsyncpa [#allocation27], 0  ;;  %s100_s22 = sshll.u32 %s5129_s17, 4  ;;  %s5087_s23 = smov [#allocation5]   ;;  %s101_s22 = int_to_ptr.hbm [resolvable:$true] %s100_s22 }
  0x39   :  { %s102_s26 = sshll.u32 %s5087_s23, 4  ;;  %s145_s0 = sshll.u32 %s5184_s12, 4  ;;  %s103_s26 = int_to_ptr.vmem [resolvable:$true] %s102_s26  ;;  %s146_s0 = int_to_ptr.hbm [resolvable:$true] %s145_s0 }
  0x3a   :  { %s4652_s28 = sshra.s32 %s101_s22, 4  ;;  %s4656_s2 = scalar_lea.hbm %s5129_s17, 16  ;;  %s4653_s28 = int_to_ptr.hbm [resolvable:$true] %s4652_s28 }
  0x3b   :  { %s4654_s1 = scalar_lea.hbm %s4653_s28, 16  ;;  %p4657_p1 = scmp.lt.s32.totalorder %s4653_s28, %s5129_s17 }
  0x3c   :  { %p4655_p0 = scmp.ne.s32.totalorder %s4653_s28, %s4654_s1  ;;  %p4658_p2 = scmp.lt.s32.totalorder %s4656_s2, %s4654_s1 }
  0x3e   :  { %p4659_p3 = por %p4658_p2, %p4657_p1 }
  0x40   :  { %p4660_p4 = pnand %p4659_p3, %p4655_p0 }
  0x42   :  { %4663 = shalt.err (!%p4660_p4)
}
  0x43   :  { %s5088_s7 = smov 128   ;;  %s5089_s10 = smov 8  }
  0x44   :  { %108 = dma.hbm_to_vmem [thread:$0]  %s101_s22, 256, %s103_s26, [#allocation6], %s5088_s7, %s5088_s7, %s5089_s10  }
  0x45   :  { %s5090_s11 = smov [#allocation8]   ;;  %s174_s16 = sshll.u32 %s5209_s25, 4  ;;  %s5279_s16 = int_to_ptr.hbm [resolvable:$true] %s174_s16 }
  0x46   :  { %s147_s15 = sshll.u32 %s5090_s11, 4  ;;  %s4676_s17 = sshra.s32 %s146_s0, 4  ;;  %s148_s15 = int_to_ptr.vmem [resolvable:$true] %s147_s15  ;;  %s4677_s17 = int_to_ptr.hbm [resolvable:$true] %s4676_s17 }
  0x47   :  { %s4678_s18 = scalar_lea.hbm %s4677_s17, 4  ;;  %s4680_s23 = scalar_lea.hbm %s5184_s12, 4 }
  0x48   :  { %p4679_p5 = scmp.ne.s32.totalorder %s4677_s17, %s4678_s18  ;;  %p4681_p6 = scmp.lt.s32.totalorder %s4677_s17, %s5184_s12 }
  0x49   :  { %p4682_p7 = scmp.lt.s32.totalorder %s4680_s23, %s4678_s18 }
  0x4b   :  { %p4683_p8 = por %p4682_p7, %p4681_p6 }
  0x4d   :  { %p4684_p9 = pnand %p4683_p8, %p4679_p5 }
  0x4f   :  { %4687 = shalt.err (!%p4684_p9)
}
  0x50   :  { %150 = dma.hbm_to_vmem [thread:$0]  %s146_s0, 64, %s148_s15, [#allocation9]  }
  0x51   :  { %s203_s22 = sshll.u32 %s5224_s3, 4  ;;  %s5091_s26 = smov [#allocation11]   ;;  %s204_s22 = int_to_ptr.hbm [resolvable:$true] %s203_s22 }
  0x52   :  { %s176_s28 = sshll.u32 %s5091_s26, 4  ;;  %s4700_s1 = sshra.s32 %s5279_s16, 4  ;;  %s177_s28 = int_to_ptr.vmem [resolvable:$true] %s176_s28  ;;  %s4701_s1 = int_to_ptr.hbm [resolvable:$true] %s4700_s1 }
  0x53   :  { %s4702_s2 = scalar_lea.hbm %s4701_s1, 32  ;;  %s4704_s11 = scalar_lea.hbm %s5209_s25, 32 }
  0x54   :  { %p4703_p10 = scmp.ne.s32.totalorder %s4701_s1, %s4702_s2  ;;  %p4705_p11 = scmp.lt.s32.totalorder %s4701_s1, %s5209_s25 }
  0x55   :  { %p4706_p12 = scmp.lt.s32.totalorder %s4704_s11, %s4702_s2 }
  0x57   :  { %p4707_p13 = por %p4706_p12, %p4705_p11 }
  0x59   :  { %p4708_p0 = pnand %p4707_p13, %p4703_p10 }
  0x5b   :  { %4711 = shalt.err (!%p4708_p0)
}
  0x5c   :  { %182 = dma.hbm_to_vmem [thread:$0]  %s5279_s16, 512, %s177_s28, [#allocation12], %s5088_s7, %s5088_s7, %s5089_s10  }
  0x5d   :  { %s5092_s12 = smov [#allocation14]   ;;  %s225_s15 = sshll.u32 %s5234_s29, 4  ;;  %s226_s15 = int_to_ptr.hbm [resolvable:$true] %s225_s15 }
  0x5e   :  { %s205_s0 = sshll.u32 %s5092_s12, 4  ;;  %s4724_s17 = sshra.s32 %s204_s22, 4  ;;  %s206_s0 = int_to_ptr.vmem [resolvable:$true] %s205_s0  ;;  %s4725_s17 = int_to_ptr.hbm [resolvable:$true] %s4724_s17 }
  0x5f   :  { %s4726_s25 = scalar_lea.hbm %s4725_s17, 1  ;;  %s4728_s18 = scalar_lea.hbm %s5224_s3, 1 }
  0x60   :  { %p4727_p1 = scmp.ne.s32.totalorder %s4725_s17, %s4726_s25  ;;  %p4729_p2 = scmp.lt.s32.totalorder %s4725_s17, %s5224_s3 }
  0x61   :  { %p4730_p3 = scmp.lt.s32.totalorder %s4728_s18, %s4726_s25 }
  0x63   :  { %p4731_p4 = por %p4730_p3, %p4729_p2 }
  0x65   :  { %p4732_p5 = pnand %p4731_p4, %p4727_p1 }
  0x67   :  { %4735 = shalt.err (!%p4732_p5)
}
  0x68   :  { %208 = dma.hbm_to_vmem [thread:$0]  %s204_s22, 16, %s206_s0, [#allocation15]  }
  0x69   :  { %s246_s16 = sshll.u32 %s5244_s21, 4  ;;  %s5093_s23 = smov [#allocation17]   ;;  %s5295_s16 = int_to_ptr.hbm [resolvable:$true] %s246_s16 }
  0x6a   :  { %s227_s26 = sshll.u32 %s5093_s23, 4  ;;  %s4748_s28 = sshra.s32 %s226_s15, 4  ;;  %s228_s26 = int_to_ptr.vmem [resolvable:$true] %s227_s26  ;;  %s4749_s28 = int_to_ptr.hbm [resolvable:$true] %s4748_s28 }
  0x6b   :  { %s4750_s1 = scalar_lea.hbm %s4749_s28, 1  ;;  %s4752_s2 = scalar_lea.hbm %s5234_s29, 1 }
  0x6c   :  { %p4751_p6 = scmp.ne.s32.totalorder %s4749_s28, %s4750_s1  ;;  %p4753_p7 = scmp.lt.s32.totalorder %s4749_s28, %s5234_s29 }
  0x6d   :  { %p4754_p8 = scmp.lt.s32.totalorder %s4752_s2, %s4750_s1 }
  0x6f   :  { %p4755_p9 = por %p4754_p8, %p4753_p7 }
  0x71   :  { %p4756_p10 = pnand %p4755_p9, %p4751_p6 }
  0x73   :  { %4759 = shalt.err (!%p4756_p10)
}
  0x74   :  { %230 = dma.hbm_to_vmem [thread:$0]  %s226_s15, 16, %s228_s26, [#allocation18]  }
  0x75   :  { %s5094_s3 = smov [#allocation20]   ;;  %s85_s11 = sshll.u32 %s5119_s9, 4  ;;  %s5300_s11 = int_to_ptr.hbm [resolvable:$true] %s85_s11 }
  0x76   :  { %s248_s22 = sshll.u32 %s5094_s3, 4  ;;  %s4772_s12 = sshra.s32 %s5295_s16, 4  ;;  %s249_s22 = int_to_ptr.vmem [resolvable:$true] %s248_s22  ;;  %s4773_s12 = int_to_ptr.hbm [resolvable:$true] %s4772_s12 }
  0x77   :  { %s4774_s0 = scalar_lea.hbm %s4773_s12, 32  ;;  %s4776_s29 = scalar_lea.hbm %s5244_s21, 32 }
  0x78   :  { %p4775_p11 = scmp.ne.s32.totalorder %s4773_s12, %s4774_s0  ;;  %p4777_p12 = scmp.lt.s32.totalorder %s4773_s12, %s5244_s21 }
  0x79   :  { %p4778_p13 = scmp.lt.s32.totalorder %s4776_s29, %s4774_s0 }
  0x7b   :  { %p4779_p0 = por %p4778_p13, %p4777_p12 }
  0x7d   :  { %p4780_p1 = pnand %p4779_p0, %p4775_p11 }
  0x7f   :  { %4783 = shalt.err (!%p4780_p1)
}
  0x80   :  { %254 = dma.hbm_to_vmem [thread:$0]  %s5295_s16, 512, %s249_s22, [#allocation21], %s5088_s7, %s5088_s7, %s5089_s10  }
  0x81   :  { %s121_s15 = sshll.u32 %s5154_s8, 4  ;;  %s5095_s17 = smov [#allocation2]   ;;  %s5310_s15 = int_to_ptr.hbm [resolvable:$true] %s121_s15 }
  0x82   :  { %s87_s25 = sshll.u32 %s5095_s17, 4  ;;  %s4796_s21 = sshra.s32 %s5300_s11, 4  ;;  %s88_s25 = int_to_ptr.vmem [resolvable:$true] %s87_s25  ;;  %s4797_s21 = int_to_ptr.hbm [resolvable:$true] %s4796_s21 }
  0x83   :  { %s4798_s18 = scalar_lea.hbm %s4797_s21, 16  ;;  %s4800_s23 = scalar_lea.hbm %s5119_s9, 16 }
  0x84   :  { %p4799_p2 = scmp.ne.s32.totalorder %s4797_s21, %s4798_s18  ;;  %p4801_p3 = scmp.lt.s32.totalorder %s4797_s21, %s5119_s9 }
  0x85   :  { %p4802_p4 = scmp.lt.s32.totalorder %s4800_s23, %s4798_s18 }
  0x87   :  { %p4803_p5 = por %p4802_p4, %p4801_p3 }
  0x89   :  { %p4804_p6 = pnand %p4803_p5, %p4799_p2 }
  0x8b   :  { %4807 = shalt.err (!%p4804_p6)
}
  0x8c   :  { %93 = dma.hbm_to_vmem [thread:$0]  %s5300_s11, 256, %s88_s25, [#allocation3], %s5088_s7, %s5088_s7, %s5089_s10  }
  0x8d   :  { %s5096_s16 = smov [#allocation7]   ;;  %s155_s28 = sshll.u32 %s5189_s20, 4  ;;  %s5320_s28 = int_to_ptr.hbm [resolvable:$true] %s155_s28 }
  0x8e   :  { %s123_s26 = sshll.u32 %s5096_s16, 4  ;;  %s4820_s9 = sshra.s32 %s5310_s15, 4  ;;  %s124_s26 = int_to_ptr.vmem [resolvable:$true] %s123_s26  ;;  %s4821_s9 = int_to_ptr.hbm [resolvable:$true] %s4820_s9 }
  0x8f   :  { %s4822_s1 = scalar_lea.hbm %s4821_s9, 16  ;;  %s4824_s2 = scalar_lea.hbm %s5154_s8, 16 }
  0x90   :  { %p4823_p7 = scmp.ne.s32.totalorder %s4821_s9, %s4822_s1  ;;  %p4825_p8 = scmp.lt.s32.totalorder %s4821_s9, %s5154_s8 }
  0x91   :  { %p4826_p9 = scmp.lt.s32.totalorder %s4824_s2, %s4822_s1 }
  0x93   :  { %p4827_p10 = por %p4826_p9, %p4825_p8 }
  0x95   :  { %p4828_p11 = pnand %p4827_p10, %p4823_p7 }
  0x97   :  { %4831 = shalt.err (!%p4828_p11)
}
  0x98   :  { %129 = dma.hbm_to_vmem [thread:$0]  %s5310_s15, 256, %s124_s26, [#allocation6], %s5088_s7, %s5088_s7, %s5089_s10  }
  0x99   :  { %s187_s3 = sshll.u32 %s5214_s27, 4  ;;  %s5097_s22 = smov [#allocation10]   ;;  %s5330_s3 = int_to_ptr.hbm [resolvable:$true] %s187_s3 }
  0x9a   :  { %s157_s11 = sshll.u32 %s5097_s22, 4  ;;  %s4844_s8 = sshra.s32 %s5320_s28, 4  ;;  %s158_s11 = int_to_ptr.vmem [resolvable:$true] %s157_s11  ;;  %s4845_s8 = int_to_ptr.hbm [resolvable:$true] %s4844_s8 }
  0x9b   :  { %s4846_s12 = scalar_lea.hbm %s4845_s8, 32  ;;  %s4848_s0 = scalar_lea.hbm %s5189_s20, 32 }
  0x9c   :  { %p4847_p12 = scmp.ne.s32.totalorder %s4845_s8, %s4846_s12  ;;  %p4849_p13 = scmp.lt.s32.totalorder %s4845_s8, %s5189_s20 }
  0x9d   :  { %p4850_p0 = scmp.lt.s32.totalorder %s4848_s0, %s4846_s12 }
  0x9f   :  { %p4851_p1 = por %p4850_p0, %p4849_p13 }
  0xa1   :  { %p4852_p2 = pnand %p4851_p1, %p4847_p12 }
  0xa3   :  { %4855 = shalt.err (!%p4852_p2)
}
  0xa4   :  { %163 = dma.hbm_to_vmem [thread:$0]  %s5320_s28, 512, %s158_s11, [#allocation9], %s5088_s7, %s5088_s7, %s5089_s10  }
  0xa5   :  { %s5098_s29 = smov [#allocation13]   ;;  %s214_s17 = sshll.u32 %s5229_s30, 4  ;;  %s215_s17 = int_to_ptr.hbm [resolvable:$true] %s214_s17 }
  0xa6   :  { %s189_s15 = sshll.u32 %s5098_s29, 4  ;;  %s4868_s25 = sshra.s32 %s5330_s3, 4  ;;  %s190_s15 = int_to_ptr.vmem [resolvable:$true] %s189_s15  ;;  %s4869_s25 = int_to_ptr.hbm [resolvable:$true] %s4868_s25 }
  0xa7   :  { %s4870_s20 = scalar_lea.hbm %s4869_s25, 32  ;;  %s4872_s21 = scalar_lea.hbm %s5214_s27, 32 }
  0xa8   :  { %p4871_p3 = scmp.ne.s32.totalorder %s4869_s25, %s4870_s20  ;;  %p4873_p4 = scmp.lt.s32.totalorder %s4869_s25, %s5214_s27 }
  0xa9   :  { %p4874_p5 = scmp.lt.s32.totalorder %s4872_s21, %s4870_s20 }
  0xab   :  { %p4875_p6 = por %p4874_p5, %p4873_p4 }
  0xad   :  { %p4876_p7 = pnand %p4875_p6, %p4871_p3 }
  0xaf   :  { %4879 = shalt.err (!%p4876_p7)
}
  0xb0   :  { %195 = dma.hbm_to_vmem [thread:$0]  %s5330_s3, 512, %s190_s15, [#allocation12], %s5088_s7, %s5088_s7, %s5089_s10  }
  0xb1   :  { %s236_s18 = sshll.u32 %s5239_s4, 4  ;;  %s5099_s23 = smov [#allocation16]   ;;  %s237_s18 = int_to_ptr.hbm [resolvable:$true] %s236_s18 }
  0xb2   :  { %s216_s16 = sshll.u32 %s5099_s23, 4  ;;  %s4892_s26 = sshra.s32 %s215_s17, 4  ;;  %s217_s16 = int_to_ptr.vmem [resolvable:$true] %s216_s16  ;;  %s4893_s26 = int_to_ptr.hbm [resolvable:$true] %s4892_s26 }
  0xb3   :  { %s4894_s27 = scalar_lea.hbm %s4893_s26, 1  ;;  %s4896_s28 = scalar_lea.hbm %s5229_s30, 1 }
  0xb4   :  { %p4895_p8 = scmp.ne.s32.totalorder %s4893_s26, %s4894_s27  ;;  %p4897_p9 = scmp.lt.s32.totalorder %s4893_s26, %s5229_s30 }
  0xb5   :  { %p4898_p10 = scmp.lt.s32.totalorder %s4896_s28, %s4894_s27 }
  0xb7   :  { %p4899_p11 = por %p4898_p10, %p4897_p9 }
  0xb9   :  { %p4900_p12 = pnand %p4899_p11, %p4895_p8 }
  0xbb   :  { %4903 = shalt.err (!%p4900_p12)
}
  0xbc   :  { %219 = dma.hbm_to_vmem [thread:$0]  %s215_s17, 16, %s217_s16, [#allocation15]  }
  0xbd   :  { %s5100_s9 = smov [#allocation19]   ;;  %s260_s2 = sshll.u32 %s5249_s6, 4  ;;  %s261_s2 = int_to_ptr.hbm [resolvable:$true] %s260_s2 }
  0xbe   :  { %s238_s1 = sshll.u32 %s5100_s9, 4  ;;  %s4916_s3 = sshra.s32 %s237_s18, 4  ;;  %s239_s1 = int_to_ptr.vmem [resolvable:$true] %s238_s1  ;;  %s4917_s3 = int_to_ptr.hbm [resolvable:$true] %s4916_s3 }
  0xbf   :  { %s4918_s22 = scalar_lea.hbm %s4917_s3, 4  ;;  %s4920_s11 = scalar_lea.hbm %s5239_s4, 4 }
  0xc0   :  { %p4919_p13 = scmp.ne.s32.totalorder %s4917_s3, %s4918_s22  ;;  %p4921_p0 = scmp.lt.s32.totalorder %s4917_s3, %s5239_s4 }
  0xc1   :  { %p4922_p1 = scmp.lt.s32.totalorder %s4920_s11, %s4918_s22 }
  0xc3   :  { %p4923_p2 = por %p4922_p1, %p4921_p0 }
  0xc5   :  { %p4924_p3 = pnand %p4923_p2, %p4919_p13 }
  0xc7   :  { %4927 = shalt.err (!%p4924_p3)
}
  0xc8   :  { %241 = dma.hbm_to_vmem [thread:$0]  %s237_s18, 64, %s239_s1, [#allocation18]  }
  0xc9   :  { %s273_s30 = sshll.u32 %s5259_s13, 4  ;;  %s5101_s8 = smov [#allocation22]   ;;  %s274_s30 = int_to_ptr.hbm [resolvable:$true] %s273_s30 }
  0xca   :  { %s262_s12 = sshll.u32 %s5101_s8, 4  ;;  %s4940_s0 = sshra.s32 %s261_s2, 4  ;;  %s263_s12 = int_to_ptr.vmem [resolvable:$true] %s262_s12  ;;  %s4941_s0 = int_to_ptr.hbm [resolvable:$true] %s4940_s0 }
  0xcb   :  { %s4942_s29 = scalar_lea.hbm %s4941_s0, 1  ;;  %s4944_s15 = scalar_lea.hbm %s5249_s6, 1 }
  0xcc   :  { %p4943_p4 = scmp.ne.s32.totalorder %s4941_s0, %s4942_s29  ;;  %p4945_p5 = scmp.lt.s32.totalorder %s4941_s0, %s5249_s6 }
  0xcd   :  { %p4946_p6 = scmp.lt.s32.totalorder %s4944_s15, %s4942_s29 }
  0xcf   :  { %p4947_p7 = por %p4946_p6, %p4945_p5 }
  0xd1   :  { %p4948_p8 = pnand %p4947_p7, %p4943_p4 }
  0xd3   :  { %4951 = shalt.err (!%p4948_p8)
}
  0xd4   :  { %265 = dma.hbm_to_vmem [thread:$0]  %s261_s2, 16, %s263_s12, [#allocation21]  }
  0xd5   :  { %s5102_s4 = smov [#allocation23]   ;;  %s4964_s25 = sshra.s32 %s274_s30, 4  ;;  %s4965_s25 = int_to_ptr.hbm [resolvable:$true] %s4964_s25 }
  0xd6   :  { %s275_s17 = sshll.u32 %s5102_s4, 4  ;;  %s4966_s20 = scalar_lea.hbm %s4965_s25, 1  ;;  %s276_s17 = int_to_ptr.vmem [resolvable:$true] %s275_s17 }
  0xd7   :  { %p4967_p9 = scmp.ne.s32.totalorder %s4965_s25, %s4966_s20  ;;  %s4968_s21 = scalar_lea.hbm %s5259_s13, 1 }
  0xd8   :  { %p4969_p10 = scmp.lt.s32.totalorder %s4965_s25, %s5259_s13  ;;  %p4970_p11 = scmp.lt.s32.totalorder %s4968_s21, %s4966_s20 }
  0xda   :  { %p4971_p12 = por %p4970_p11, %p4969_p10 }
  0xdc   :  { %p4972_p13 = pnand %p4971_p12, %p4967_p9 }
  0xde   :  { %4975 = shalt.err (!%p4972_p13)
}
  0xdf   :  { %278 = dma.hbm_to_vmem [thread:$0]  %s274_s30, 16, %s276_s17, [#allocation24]  }
  0xe0   :  { %5036 = dma.done.wait [#allocation3], 256  }
  0xe1   :  { %5037 = vsyncadd [#allocation3], 4294967040 }
  0xe2   :  { %5038 = dma.done.wait [#allocation6], 512  }
  0xe3   :  { %5039 = vsyncadd [#allocation6], 4294966784 }
  0xe4   :  { %5040 = dma.done.wait [#allocation9], 576  }
  0xe5   :  { %5041 = vsyncadd [#allocation9], 4294966720 }
  0xe6   :  { %5042 = dma.done.wait [#allocation12], 1024  }
  0xe7   :  { %5043 = vsyncadd [#allocation12], 4294966272 }
  0xe8   :  { %5044 = dma.done.wait [#allocation15], 32  }
  0xe9   :  { %5045 = vsyncadd [#allocation15], 4294967264 }
  0xea   :  { %5046 = dma.done.wait [#allocation18], 80  }
  0xeb   :  { %5047 = vsyncadd [#allocation18], 4294967216 }
  0xec   :  { %5048 = dma.done.wait [#allocation21], 528  }
  0xed   :  { %5049 = vsyncadd [#allocation21], 4294966768 }
  0xee   :  { %5050 = dma.done.wait [#allocation24], 16  }
  0xef   :  { %5051 = vsyncadd [#allocation24], 4294967280  ;;  %s7091_s13 = sld [smem:[#allocation44_spill]]  ;;  %v364_v0 = vld [vmem:[%s5159_s14 + $0x18] sm:$0xff]  ;;  %v363_v2 = vld [vmem:[%s5159_s14 + $0x10] sm:$0xff]  ;;  %vm400_vm0 = vcmask 261120  }
  0xf0   :  { %s7092_s6 = sld [smem:[#allocation38_spill]]  ;;  %4324 = vmatpush.msra.mxu2 %v364_v0  ;;  %v362_v4 = vld [vmem:[%s5159_s14 + $0x8] sm:$0xff]  ;;  %431 = vmatpush.msra.mxu0 %v364_v0  ;;  %v346_v7 = vld [vmem:[#allocation5 + $0x8] sm:$0xff]  ;;  %v361_v10 = vld [vmem:[%s5159_s14] sm:$0xff]  ;;  %vm622_vm1 = vcmask 392192   ;;  %s5104_s11 = smov [#allocation25]  }
  0xf1   :  { %s7093_s18 = sld [smem:[#allocation39_spill]]  ;;  %v340_v6 = vld [vmem:[#allocation2 + $0x8] sm:$0xff]  ;;  %v339_v27 = vld [vmem:[#allocation2] sm:$0xff]  ;;  %v345_v28 = vld [vmem:[#allocation5] sm:$0xff]  ;;  %s4043_s30 = sshll.u32 %s5104_s11, 4  ;;  %s4044_s30 = int_to_ptr.vmem [resolvable:$true] %s4043_s30 }
  0xf2   :  { %s7094_s23 = sld [smem:[#allocation45_spill]]  ;;  %4325 = vmatpush.msra.mxu2 %v363_v2  ;;  %v398_v12 = vadd.f32 %v346_v7, %v340_v6  ;;  %432 = vmatpush.msra.mxu0 %v363_v2  ;;  %v397_v29 = vadd.f32 %v345_v28, %v339_v27  ;;  %s5004_s0 = scalar_lea.hbm %s5264_s5, 32 }
  0xf3   :  { %s7095_s14 = sld [smem:[#allocation47_spill]] }
  0xf4   :  { %4326 = vmatpush.msra.mxu2 %v362_v4  ;;  %433 = vmatpush.msra.mxu0 %v362_v4  ;;  %s7096_s16 = sld [smem:[#allocation40_spill]] }
  0xf5   :  { %v368_v1 = vld [vmem:[%s7091_s13 + $0x18] sm:$0xff]  ;;  %v367_v3 = vld [vmem:[%s7091_s13 + $0x10] sm:$0xff]  ;;  %v366_v5 = vld [vmem:[%s7091_s13 + $0x8] sm:$0xff]  ;;  %s7097_s26 = sld [smem:[#allocation42_spill]] }
  0xf6   :  { %467 = vmatpush.msra.mxu1 %v368_v1  ;;  %v335_v8 = vld [vmem:[%s7092_s6] sm:$0xff]  ;;  %4327 = vmatpush.msra.mxu2 %v361_v10  ;;  %v336_v16 = vld [vmem:[%s7092_s6 + $0x8] sm:$0xff]  ;;  %v337_v21 = vld [vmem:[%s7092_s6 + $0x10] sm:$0xff]  ;;  %s7100_s27 = sld [smem:[#allocation46_spill]] }
  0xf7   :  { %v341_v9 = vld [vmem:[%s7093_s18] sm:$0xff]  ;;  %v342_v17 = vld [vmem:[%s7093_s18 + $0x8] sm:$0xff]  ;;  %4119 = vmatmul.msk.f32.vlgmr.msra.gmra.mxu2 %vm400_vm0, %v398_v12  ;;  %434 = vmatpush.msra.mxu0 %v361_v10  ;;  %v343_v22 = vld [vmem:[%s7093_s18 + $0x10] sm:$0xff]  ;;  %s7105_s28 = sld [smem:[#allocation49_spill]] }
  0xf8   :  { %468 = vmatpush.msra.mxu1 %v367_v3  ;;  %v365_v11 = vld [vmem:[%s7091_s13] sm:$0xff]  ;;  %v393_v13 = vadd.f32 %v341_v9, %v335_v8  ;;  %v372_v14 = vld [vmem:[%s7094_s23 + $0x18] sm:$0xff]  ;;  %v371_v15 = vld [vmem:[%s7094_s23 + $0x10] sm:$0xff]  ;;  %v394_v20 = vadd.f32 %v342_v17, %v336_v16  ;;  %v395_v23 = vadd.f32 %v343_v22, %v337_v21  ;;  %s7106_s9 = sld [smem:[#allocation48_spill]] }
  0xf9   :  { %521 = vmatpush.msrb.mxu2 %v372_v14  ;;  %v370_v18 = vld [vmem:[%s7094_s23 + $0x8] sm:$0xff]  ;;  %v369_v19 = vld [vmem:[%s7094_s23] sm:$0xff]  ;;  %v338_v24 = vld [vmem:[%s7092_s6 + $0x18] sm:$0xff]  ;;  %s7107_s1 = sld [smem:[#allocation50_spill]] }
  0xfa   :  { %469 = vmatpush.msra.mxu1 %v366_v5  ;;  %4114 = vmatmul.msk.f32.vlgmr.msra.gmra.mxu0 %vm400_vm0, %v393_v13  ;;  %v344_v25 = vld [vmem:[%s7093_s18 + $0x18] sm:$0xff]  ;;  %v377_v39 = vld [vmem:[%s7095_s14] sm:$0xf]  ;;  %s7108_s2 = sld [smem:[#allocation41_spill]] }
  0xfb   :  { %522 = vmatpush.msrb.mxu2 %v371_v15  ;;  %v396_v26 = vadd.f32 %v344_v25, %v338_v24  ;;  %v454_v41 = vperm.slane %v377_v39, 1  ;;  %v5414_v48 = vld [vmem:[%s7096_s16] sm:$0xf]  ;;  %v490_v49 = vperm.slane %v377_v39, 2  ;;  %v5425_v52 = vperm.slane %v377_v39, 0  ;;  %s7109_s3 = sld [smem:[#allocation43_spill]] }
  0xfc   :  { %470 = vmatpush.msra.mxu1 %v365_v11  ;;  %v5423_v51 = vperm.slane %v5414_v48, 1  ;;  %v5449_v63 = vperm.slane %v5414_v48, 0  ;;  %s7112_s22 = sld [smem:[#allocation51_spill]] }
  0xfd   :  { %4120 = vmatmul.msk.f32.vlgmr.msra.gmra.mxu1 %vm400_vm0, %v393_v13  ;;  %523 = vmatpush.msrb.mxu2 %v370_v18 }
  0xff   :  { %524 = vmatpush.msrb.mxu2 %v369_v19 }
 0x100   :  { %4126 = vmatmul.msk.f32.vlgmr.msrb.gmra.mxu2 %vm400_vm0, %v335_v8 }
 0x102   :  { %4115 = vmatmul.msk.f32.gmra.mxu0 %vm400_vm0, %v394_v20 }
 0x105   :  { %4121 = vmatmul.msk.f32.gmra.mxu1 %vm400_vm0, %v394_v20 }
 0x108   :  { %4127 = vmatmul.msk.f32.gmra.mxu2 %vm400_vm0, %v336_v16 }
 0x10a   :  { %4116 = vmatmul.msk.f32.gmra.mxu0 %vm400_vm0, %v395_v23 }
 0x10d   :  { %4122 = vmatmul.msk.f32.gmra.mxu1 %vm400_vm0, %v395_v23 }
 0x110   :  { %4128 = vmatmul.msk.f32.gmra.mxu2 %vm400_vm0, %v337_v21 }
 0x112   :  { %4117 = vmatmul.msk.f32.gmra.mxu0 %vm400_vm0, %v396_v26 }
 0x115   :  { %4123 = vmatmul.msk.f32.gmra.mxu1 %vm400_vm0, %v396_v26 }
 0x118   :  { %4129 = vmatmul.msk.f32.gmra.mxu2 %vm400_vm0, %v338_v24 }
 0x11a   :  { %4118 = vmatmul.msk.f32.gmra.mxu0 %vm400_vm0, %v397_v29 }
 0x11d   :  { %4124 = vmatmul.msk.f32.gmra.mxu1 %vm400_vm0, %v397_v29 }
 0x120   :  { %4130 = vmatmul.msk.f32.gmra.mxu2 %vm400_vm0, %v339_v27  ;;  %v5551_v27 = vperm.slane %v5414_v48, 2 }
 0x125   :  { %4125 = vmatmul.msk.f32.gmra.mxu1 %vm400_vm0, %v398_v12 }
 0x128   :  { %4131 = vmatmul.msk.f32.gmra.mxu2 %vm400_vm0, %v340_v6 }
 0x177   :  { %v436_v46 = vpop.f32.mrf.mxu0 }
 0x178   :  { %v5444_v61 = vadd.f32 %v436_v46, %v5425_v52 }
 0x17a   :  { %v472_v30 = vpop.f32.mrf.mxu1  ;;  %v5396_v31 = vpop.f32.mrf.mxu2  ;;  %v545_v5 = vmul.f32 %v5449_v63, %v5444_v61  ;;  %v774_v6 = vmul.f32 %v5423_v51, %v5444_v61  ;;  %v1090_v28 = vmul.f32 %v5551_v27, %v5444_v61 }
 0x17b   :  { %v473_v2 = vadd.f32 %v472_v30, %v454_v41  ;;  %v452_v24 = vadd.f32 %v5396_v31, %v5425_v52 }
 0x17d   :  { %v550_v25 = vmul.f32 %v5449_v63, %v452_v24  ;;  %v779_v26 = vmul.f32 %v5423_v51, %v452_v24 }
 0x17f   :  { %v439_v59 = vpop.f32.mrf.mxu0 }
 0x180   :  { %v5475_v8 = vadd.f32 %v439_v59, %v5425_v52 }
 0x182   :  { %v475_v32 = vpop.f32.mrf.mxu1  ;;  %v546_v11 = vmul.f32 %v5449_v63, %v5475_v8  ;;  %v775_v12 = vmul.f32 %v5423_v51, %v5475_v8  ;;  %v1091_v29 = vmul.f32 %v5551_v27, %v5475_v8 }
 0x183   :  { %v526_v33 = vpop.f32.mrf.mxu2  ;;  %v5437_v57 = vadd.f32 %v475_v32, %v454_v41 }
 0x184   :  { %v5459_v3 = vadd.f32 %v526_v33, %v490_v49  ;;  %v1095_v33 = vmul.f32 %v5551_v27, %v452_v24 }
 0x186   :  { %v977_v9 = vmul.f32 %v5423_v51, %v5459_v3 }
 0x187   :  { %v442_v10 = vpop.f32.mrf.mxu0 }
 0x188   :  { %v5492_v13 = vadd.f32 %v442_v10, %v5425_v52 }
 0x18a   :  { %v478_v34 = vpop.f32.mrf.mxu1  ;;  %v547_v15 = vmul.f32 %v5449_v63, %v5492_v13  ;;  %v776_v16 = vmul.f32 %v5423_v51, %v5492_v13  ;;  %v1092_v30 = vmul.f32 %v5551_v27, %v5492_v13 }
 0x18b   :  { %v529_v35 = vpop.f32.mrf.mxu2  ;;  %v5420_v50 = vadd.f32 %v478_v34, %v454_v41  ;;  %v5571_v34 = vperm.slane %v5414_v48, 3  ;;  %v5591_v48 = vld [vmem:[%s7097_s26 + $0x18] sm:$0xff] }
 0x18c   :  { %v5455_v0 = vadd.f32 %v529_v35, %v490_v49 }
 0x18d   :  { %v1364_v35 = vmul.f32 %v5571_v34, %v452_v24 }
 0x18e   :  { %v978_v7 = vmul.f32 %v5423_v51, %v5455_v0 }
 0x18f   :  { %v445_v14 = vpop.f32.mrf.mxu0 }
 0x190   :  { %v5509_v17 = vadd.f32 %v445_v14, %v5425_v52 }
 0x192   :  { %v481_v36 = vpop.f32.mrf.mxu1  ;;  %v548_v18 = vmul.f32 %v5449_v63, %v5509_v17  ;;  %v777_v19 = vmul.f32 %v5423_v51, %v5509_v17  ;;  %v1093_v31 = vmul.f32 %v5551_v27, %v5509_v17 }
 0x193   :  { %v532_v37 = vpop.f32.mrf.mxu2  ;;  %v5411_v47 = vadd.f32 %v481_v36, %v454_v41  ;;  %v5576_v36 = vld [vmem:[%s7097_s26] sm:$0xff] }
 0x194   :  { %v5441_v60 = vadd.f32 %v532_v37, %v490_v49 }
 0x196   :  { %v979_v4 = vmul.f32 %v5423_v51, %v5441_v60 }
 0x197   :  { %v448_v20 = vpop.f32.mrf.mxu0 }
 0x198   :  { %v5527_v21 = vadd.f32 %v448_v20, %v5425_v52 }
 0x19a   :  { %v484_v38 = vpop.f32.mrf.mxu1  ;;  %v549_v22 = vmul.f32 %v5449_v63, %v5527_v21  ;;  %v778_v23 = vmul.f32 %v5423_v51, %v5527_v21  ;;  %v1094_v32 = vmul.f32 %v5551_v27, %v5527_v21 }
 0x19b   :  { %v535_v40 = vpop.f32.mrf.mxu2  ;;  %v5405_v44 = vadd.f32 %v484_v38, %v454_v41 }
 0x19c   :  { %v5435_v56 = vadd.f32 %v535_v40, %v490_v49  ;;  %v5581_v40 = vld [vmem:[%s7097_s26 + $0x8] sm:$0xff] }
 0x19e   :  { %v980_v1 = vmul.f32 %v5423_v51, %v5435_v56 }
 0x1a2   :  { %v487_v42 = vpop.f32.mrf.mxu1 }
 0x1a3   :  { %v5399_v43 = vadd.f32 %v487_v42, %v454_v41  ;;  %v538_v45 = vpop.f32.mrf.mxu2 }
 0x1a4   :  { %v5427_v53 = vadd.f32 %v538_v45, %v490_v49 }
 0x1a5   :  { %4132 = vmatpush.xpose.msk.msra.mxu3 %vm400_vm0, %v5399_v43  ;;  %4144 = vmatpush.xpose.msk.msrb.mxu0 %vm400_vm0, %v5399_v43 }
 0x1a6   :  { %v981_v62 = vmul.f32 %v5423_v51, %v5427_v53 }
 0x1a9   :  { %4133 = vmatpush.xpose.msk.msra.mxu3 %vm400_vm0, %v5405_v44  ;;  %4145 = vmatpush.xpose.msk.msrb.mxu0 %vm400_vm0, %v5405_v44 }
 0x1ab   :  { %v541_v54 = vpop.f32.mrf.mxu2 }
 0x1ac   :  { %v5429_v55 = vadd.f32 %v541_v54, %v490_v49  ;;  %v5596_v54 = vld [vmem:[%s7097_s26 + $0x20] sm:$0xff] }
 0x1ad   :  { %4134 = vmatpush.xpose.msk.msra.mxu3 %vm400_vm0, %v5411_v47  ;;  %4146 = vmatpush.xpose.msk.msrb.mxu0 %vm400_vm0, %v5411_v47 }
 0x1ae   :  { %v982_v58 = vmul.f32 %v5423_v51, %v5429_v55 }
 0x1b0   :  { %1011 = vmatpush.msrb.mxu1 %v982_v58 }
 0x1b1   :  { %4135 = vmatpush.xpose.msk.msra.mxu3 %vm400_vm0, %v5420_v50  ;;  %4147 = vmatpush.xpose.msk.msrb.mxu0 %vm400_vm0, %v5420_v50 }
 0x1b2   :  { %1012 = vmatpush.msrb.mxu1 %v981_v62  ;;  %v5601_v62 = vld [vmem:[%s7097_s26 + $0x28] sm:$0xff] }
 0x1b4   :  { %1013 = vmatpush.msrb.mxu1 %v980_v1 }
 0x1b5   :  { %4136 = vmatpush.xpose.msk.msra.mxu3 %vm400_vm0, %v5437_v57  ;;  %4148 = vmatpush.xpose.msk.msrb.mxu0 %vm400_vm0, %v5437_v57 }
 0x1b6   :  { %1014 = vmatpush.msrb.mxu1 %v979_v4 }
 0x1b8   :  { %1015 = vmatpush.msrb.mxu1 %v978_v7 }
 0x1b9   :  { %4137 = vmatpush.xpose.msk.msra.mxu3 %vm400_vm0, %v473_v2  ;;  %4149 = vmatpush.xpose.msk.msrb.mxu0 %vm400_vm0, %v473_v2 }
 0x1ba   :  { %1016 = vmatpush.msrb.mxu1 %v977_v9 }
 0x1bc   :  { %4138 = vmatmul.msk.f32.vlgmr.msra.gmra.mxu3 %vm400_vm0, %v545_v5  ;;  %4150 = vmatmul.msk.f32.vlgmr.msrb.gmra.mxu0 %vm400_vm0, %v774_v6 }
 0x1bd   :  { %4168 = vmatpush.xpose.msk.msrb.mxu3 %vm400_vm0, %v5399_v43  ;;  %4186 = vmatpush.xpose.msk.msra.mxu1 %vm400_vm0, %v5399_v43 }
 0x1c1   :  { %4169 = vmatpush.xpose.msk.msrb.mxu3 %vm400_vm0, %v5405_v44  ;;  %4187 = vmatpush.xpose.msk.msra.mxu1 %vm400_vm0, %v5405_v44 }
 0x1c4   :  { %4139 = vmatmul.msk.f32.gmra.mxu3 %vm400_vm0, %v546_v11  ;;  %4151 = vmatmul.msk.f32.gmra.mxu0 %vm400_vm0, %v775_v12 }
 0x1c5   :  { %4170 = vmatpush.xpose.msk.msrb.mxu3 %vm400_vm0, %v5411_v47  ;;  %4188 = vmatpush.xpose.msk.msra.mxu1 %vm400_vm0, %v5411_v47 }
 0x1c9   :  { %4171 = vmatpush.xpose.msk.msrb.mxu3 %vm400_vm0, %v5420_v50  ;;  %4189 = vmatpush.xpose.msk.msra.mxu1 %vm400_vm0, %v5420_v50 }
 0x1cc   :  { %4140 = vmatmul.msk.f32.gmra.mxu3 %vm400_vm0, %v547_v15  ;;  %4152 = vmatmul.msk.f32.gmra.mxu0 %vm400_vm0, %v776_v16 }
 0x1cd   :  { %4172 = vmatpush.xpose.msk.msrb.mxu3 %vm400_vm0, %v5437_v57  ;;  %4190 = vmatpush.xpose.msk.msra.mxu1 %vm400_vm0, %v5437_v57 }
 0x1d1   :  { %4173 = vmatpush.xpose.msk.msrb.mxu3 %vm400_vm0, %v473_v2  ;;  %4191 = vmatpush.xpose.msk.msra.mxu1 %vm400_vm0, %v473_v2 }
 0x1d4   :  { %4141 = vmatmul.msk.f32.gmra.mxu3 %vm400_vm0, %v548_v18  ;;  %4153 = vmatmul.msk.f32.gmra.mxu0 %vm400_vm0, %v777_v19 }
 0x1d5   :  { %4328 = vmatpush.xpose.msk.msra.mxu3 %vm400_vm0, %v5399_v43 }
 0x1d9   :  { %4329 = vmatpush.xpose.msk.msra.mxu3 %vm400_vm0, %v5405_v44  ;;  %v5586_v44 = vld [vmem:[%s7097_s26 + $0x10] sm:$0xff] }
 0x1dc   :  { %4142 = vmatmul.msk.f32.gmra.mxu3 %vm400_vm0, %v549_v22  ;;  %4154 = vmatmul.msk.f32.gmra.mxu0 %vm400_vm0, %v778_v23 }
 0x1dd   :  { %4330 = vmatpush.xpose.msk.msra.mxu3 %vm400_vm0, %v5411_v47 }
 0x1e1   :  { %4331 = vmatpush.xpose.msk.msra.mxu3 %vm400_vm0, %v5420_v50 }
 0x1e4   :  { %4143 = vmatmul.msk.f32.gmra.mxu3 %vm400_vm0, %v550_v25  ;;  %4155 = vmatmul.msk.f32.gmra.mxu0 %vm400_vm0, %v779_v26  ;;  %v772_v25 = vmul.f32 %v5449_v63, %v5429_v55  ;;  %v771_v26 = vmul.f32 %v5449_v63, %v5427_v53 }
 0x1e5   :  { %4332 = vmatpush.xpose.msk.msra.mxu3 %vm400_vm0, %v5437_v57 }
 0x1e6   :  { %1064 = vmatpush.msra.mxu2 %v772_v25 }
 0x1e8   :  { %1065 = vmatpush.msra.mxu2 %v771_v26 }
 0x1e9   :  { %4333 = vmatpush.xpose.msk.msra.mxu3 %vm400_vm0, %v473_v2 }
 0x1ec   :  { %4174 = vmatmul.msk.f32.vlgmr.msrb.gmra.mxu3 %vm400_vm0, %v1090_v28 }
 0x1f4   :  { %4175 = vmatmul.msk.f32.gmra.mxu3 %vm400_vm0, %v1091_v29  ;;  %v770_v29 = vmul.f32 %v5449_v63, %v5435_v56 }
 0x1f6   :  { %1066 = vmatpush.msra.mxu2 %v770_v29 }
 0x1fc   :  { %4176 = vmatmul.msk.f32.gmra.mxu3 %vm400_vm0, %v1092_v30 }
 0x204   :  { %4177 = vmatmul.msk.f32.gmra.mxu3 %vm400_vm0, %v1093_v31 }
 0x20c   :  { %4178 = vmatmul.msk.f32.gmra.mxu3 %vm400_vm0, %v1094_v32 }
 0x214   :  { %4179 = vmatmul.msk.f32.gmra.mxu3 %vm400_vm0, %v1095_v33 }
 0x21c   :  { %4197 = vmatmul.msk.f32.vlgmr.msra.gmra.mxu3 %vm400_vm0, %v1364_v35 }
 0x239   :  { %v815_v37 = vpop.f32.mrf.mxu0 }
 0x23a   :  { %v816_v38 = vadd.f32 %v815_v37, %v5576_v36  ;;  %v769_v37 = vmul.f32 %v5449_v63, %v5441_v60 }
 0x23c   :  { %v833_v39 = vsel %vm622_vm1, %v816_v38, -inf  ;;  %1067 = vmatpush.msra.mxu2 %v769_v37 }
 0x23d   :  { %834 = vmax.xlane.f32.xlu0 %v833_v39  ;;  %v1298_v39 = vmul.f32 %v5551_v27, %v5429_v55 }
 0x23f   :  { %v5608_v5 = vpop.f32.mrf.mxu3  ;;  %1327 = vmatpush.msra.mxu0 %v1298_v39 }
 0x241   :  { %v818_v41 = vpop.f32.mrf.mxu0 }
 0x242   :  { %v819_v42 = vadd.f32 %v818_v41, %v5581_v40  ;;  %v1297_v41 = vmul.f32 %v5551_v27, %v5427_v53 }
 0x244   :  { %v836_v43 = vsel %vm622_vm1, %v819_v42, -inf  ;;  %1328 = vmatpush.msra.mxu0 %v1297_v41 }
 0x245   :  { %837 = vmax.xlane.f32.xlu0 %v836_v43 }
 0x247   :  { %v5610_v11 = vpop.f32.mrf.mxu3 }
 0x249   :  { %v821_v45 = vpop.f32.mrf.mxu0 }
 0x24a   :  { %v822_v46 = vadd.f32 %v821_v45, %v5586_v44  ;;  %v1567_v45 = vmul.f32 %v5571_v34, %v5429_v55  ;;  %v1565_v55 = vmul.f32 %v5571_v34, %v5435_v56 }
 0x24c   :  { %v839_v47 = vsel %vm622_vm1, %v822_v46, -inf }
 0x24d   :  { %840 = vmax.xlane.f32.xlu1 %v839_v47  ;;  %v1566_v47 = vmul.f32 %v5571_v34, %v5427_v53  ;;  %v1564_v53 = vmul.f32 %v5571_v34, %v5441_v60 }
 0x24f   :  { %v5618_v22 = vpop.f32.mrf.mxu3 }
 0x251   :  { %v824_v49 = vpop.f32.mrf.mxu0 }
 0x252   :  { %v825_v50 = vadd.f32 %v824_v49, %v5591_v48 }
 0x254   :  { %v842_v52 = vsel %vm622_vm1, %v825_v50, -inf }
 0x255   :  { %843 = vmax.xlane.f32.xlu1 %v842_v52 }
 0x257   :  { %v613_v35 = vpop.f32.mrf.mxu3 }
 0x259   :  { %v827_v57 = vpop.f32.mrf.mxu0 }
 0x25a   :  { %v828_v58 = vadd.f32 %v827_v57, %v5596_v54  ;;  %v1296_v57 = vmul.f32 %v5551_v27, %v5435_v56  ;;  %v1563_v56 = vmul.f32 %v5571_v34, %v5455_v0 }
 0x25c   :  { %v845_v59 = vsel %vm622_vm1, %v828_v58, -inf  ;;  %1329 = vmatpush.msra.mxu0 %v1296_v57 }
 0x25d   :  { %846 = vmax.xlane.f32.xlu2 %v845_v59 }
 0x25f   :  { %v616_v59 = vpop.f32.mrf.mxu3 }
 0x261   :  { %v830_v1 = vpop.f32.mrf.mxu0 }
 0x262   :  { %v5604_v2 = vadd.f32 %v830_v1, %v5601_v62  ;;  %v1294_v1 = vmul.f32 %v5551_v27, %v5455_v0 }
 0x264   :  { %v848_v4 = vsel %vm622_vm1, %v5604_v2, -inf }
 0x265   :  { %849 = vmax.xlane.f32.xlu2 %v848_v4  ;;  %v5662_v4 = vadd.f32 %v5608_v5, %v5576_v36 }
 0x2b0   :  { %v835_v6 = vpop.xlane.xlu0 %834 }
 0x2b1   :  { %v851_v7 = vsub.f32 %v816_v38, %v835_v6  ;;  %v768_v38 = vmul.f32 %v5449_v63, %v5455_v0  ;;  %v623_v0 = vsel %vm622_vm1, %v5662_v4, -inf }
 0x2b3   :  { %v857_v9 = vmul.f32 1.442695, %v851_v7  ;;  %1068 = vmatpush.msra.mxu2 %v768_v38 }
 0x2b5   :  { %4391 = vpow2.f32 %v857_v9  ;;  %v1562_v9 = vmul.f32 %v5571_v34, %v5459_v3 }
 0x2b8   :  { %v838_v10 = vpop.xlane.xlu0 %837 }
 0x2b9   :  { %v852_v12 = vsub.f32 %v819_v42, %v838_v10  ;;  %v767_v42 = vmul.f32 %v5449_v63, %v5459_v3 }
 0x2bb   :  { %v5612_v14 = vpop.eup %4391  ;;  %v859_v15 = vmul.f32 1.442695, %v852_v12  ;;  %1069 = vmatpush.msra.mxu2 %v767_v42 }
 0x2bc   :  { %v869_v16 = vsel %vm622_vm1, %v5612_v14, 0.0 }
 0x2bd   :  { %4393 = vpow2.f32 %v859_v15  ;;  %870 = vadd.xlane.f32.xlu0 %v869_v16  ;;  %1596 = vmatpush.msrb.mxu2 %v1567_v45  ;;  %v619_v15 = vpop.f32.mrf.mxu3 }
 0x2be   :  { %v5704_v29 = vadd.f32 %v619_v15, %v5601_v62 }
 0x2bf   :  { %1597 = vmatpush.msrb.mxu2 %v1566_v47 }
 0x2c0   :  { %v841_v18 = vpop.xlane.xlu1 %840 }
 0x2c1   :  { %v853_v19 = vsub.f32 %v822_v46, %v841_v18  ;;  %1598 = vmatpush.msrb.mxu2 %v1565_v55 }
 0x2c3   :  { %v5616_v20 = vpop.eup %4393  ;;  %v861_v23 = vmul.f32 1.442695, %v853_v19  ;;  %1599 = vmatpush.msrb.mxu2 %v1564_v53 }
 0x2c4   :  { %v872_v24 = vsel %vm622_vm1, %v5616_v20, 0.0 }
 0x2c5   :  { %4395 = vpow2.f32 %v861_v23  ;;  %873 = vadd.xlane.f32.xlu1 %v872_v24  ;;  %1600 = vmatpush.msrb.mxu2 %v1563_v56  ;;  %v5697_v24 = vadd.f32 %v616_v59, %v5596_v54  ;;  %v1131_v25 = vpop.f32.mrf.mxu3 }
 0x2c7   :  { %1601 = vmatpush.msrb.mxu2 %v1562_v9 }
 0x2c8   :  { %v844_v28 = vpop.xlane.xlu1 %843 }
 0x2c9   :  { %v854_v30 = vsub.f32 %v825_v50, %v844_v28  ;;  %v635_v28 = vsel %vm622_vm1, %v5697_v24, -inf }
 0x2cb   :  { %v5628_v31 = vpop.eup %4395  ;;  %v863_v32 = vmul.f32 1.442695, %v854_v30  ;;  %v638_v30 = vsel %vm622_vm1, %v5704_v29, -inf }
 0x2cc   :  { %v875_v33 = vsel %vm622_vm1, %v5628_v31, 0.0 }
 0x2cd   :  { %4397 = vpow2.f32 %v863_v32  ;;  %876 = vadd.xlane.f32.xlu2 %v875_v33  ;;  %v5709_v32 = vadd.f32 %v1131_v25, %v5576_v36 }
 0x2cf   :  { %v1149_v33 = vsel %vm622_vm1, %v5709_v32, -inf }
 0x2d0   :  { %v847_v43 = vpop.xlane.xlu2 %846 }
 0x2d1   :  { %v855_v46 = vsub.f32 %v828_v58, %v847_v43  ;;  %v1295_v58 = vmul.f32 %v5551_v27, %v5441_v60  ;;  %v1293_v60 = vmul.f32 %v5551_v27, %v5459_v3  ;;  %v5682_v3 = vadd.f32 %v613_v35, %v5591_v48 }
 0x2d3   :  { %v5646_v49 = vpop.eup %4397  ;;  %v865_v50 = vmul.f32 1.442695, %v855_v46  ;;  %1330 = vmatpush.msra.mxu0 %v1295_v58  ;;  %v632_v23 = vsel %vm622_vm1, %v5682_v3, -inf }
 0x2d4   :  { %v878_v52 = vsel %vm622_vm1, %v5646_v49, 0.0 }
 0x2d5   :  { %4399 = vpow2.f32 %v865_v50  ;;  %879 = vadd.xlane.f32.xlu0 %v878_v52  ;;  %1331 = vmatpush.msra.mxu0 %v1294_v1 }
 0x2d7   :  { %1332 = vmatpush.msra.mxu0 %v1293_v60 }
 0x2d8   :  { %v850_v6 = vpop.xlane.xlu2 %849 }
 0x2d9   :  { %v856_v7 = vsub.f32 %v5604_v2, %v850_v6  ;;  %v5679_v2 = vadd.f32 %v5610_v11, %v5581_v40  ;;  %v5694_v11 = vadd.f32 %v5618_v22, %v5586_v44  ;;  %v1134_v22 = vpop.f32.mrf.mxu3 }
 0x2da   :  { %v5714_v37 = vadd.f32 %v1134_v22, %v5581_v40 }
 0x2db   :  { %v5671_v10 = vpop.eup %4399  ;;  %v867_v12 = vmul.f32 1.442695, %v856_v7  ;;  %v626_v19 = vsel %vm622_vm1, %v5679_v2, -inf  ;;  %v629_v26 = vsel %vm622_vm1, %v5694_v11, -inf }
 0x2dc   :  { %v881_v5 = vsel %vm622_vm1, %v5671_v10, 0.0  ;;  %v1152_v38 = vsel %vm622_vm1, %v5714_v37, -inf }
 0x2dd   :  { %4401 = vpow2.f32 %v867_v12  ;;  %882 = vadd.xlane.f32.xlu1 %v881_v5  ;;  %624 = vmax.xlane.f32.xlu0 %v623_v0 }
 0x2e1   :  { %v1137_v35 = vpop.f32.mrf.mxu3 }
 0x2e2   :  { %v5719_v39 = vadd.f32 %v1137_v35, %v5586_v44 }
 0x2e3   :  { %v5684_v16 = vpop.eup %4401 }
 0x2e4   :  { %v884_v18 = vsel %vm622_vm1, %v5684_v16, 0.0  ;;  %v1155_v42 = vsel %vm622_vm1, %v5719_v39, -inf }
 0x2e5   :  { %885 = vadd.xlane.f32.xlu2 %v884_v18  ;;  %627 = vmax.xlane.f32.xlu1 %v626_v19 }
 0x2e6   :  { %633 = vmax.xlane.f32.xlu0 %v632_v23 }
 0x2e9   :  { %v1140_v41 = vpop.f32.mrf.mxu3 }
 0x2ea   :  { %v5724_v43 = vadd.f32 %v1140_v41, %v5591_v48 }
 0x2ec   :  { %v1158_v46 = vsel %vm622_vm1, %v5724_v43, -inf }
 0x2ed   :  { %630 = vmax.xlane.f32.xlu2 %v629_v26  ;;  %636 = vmax.xlane.f32.xlu1 %v635_v28 }
 0x2f1   :  { %v1143_v45 = vpop.f32.mrf.mxu3 }
 0x2f2   :  { %v5729_v47 = vadd.f32 %v1143_v45, %v5596_v54 }
 0x2f4   :  { %v1161_v50 = vsel %vm622_vm1, %v5729_v47, -inf }
 0x2f5   :  { %639 = vmax.xlane.f32.xlu2 %v638_v30 }
 0x2f9   :  { %v1146_v52 = vpop.f32.mrf.mxu3 }
 0x2fa   :  { %v5734_v57 = vadd.f32 %v1146_v52, %v5601_v62 }
 0x2fc   :  { %v1164_v55 = vsel %vm622_vm1, %v5734_v57, -inf }
 0x2fd   :  { %1150 = vmax.xlane.f32.xlu2 %v1149_v33 }
 0x305   :  { %1153 = vmax.xlane.f32.xlu2 %v1152_v38 }
 0x30d   :  { %1156 = vmax.xlane.f32.xlu2 %v1155_v42 }
 0x315   :  { %1159 = vmax.xlane.f32.xlu2 %v1158_v46 }
 0x31d   :  { %1162 = vmax.xlane.f32.xlu2 %v1161_v50 }
 0x325   :  { %1165 = vmax.xlane.f32.xlu2 %v1164_v55 }
 0x330   :  { %v871_v58 = vpop.xlane.xlu0 %870 }
 0x331   :  { %4403 = vrcp.f32 %v871_v58  ;;  %v898_v56 = vand.u32 2147483648, %v871_v58  ;;  %v896_v60 = vand.u32 2147483647, %v871_v58  ;;  %vm892_vm3 = vweird.f32 %v871_v58 }
 0x333   :  { %v899_v5 = vor.u32 1.1754944e-38, %v898_v56  ;;  %vm897_vm5 = vcmp.eq.f32.partialorder %v896_v60, 8.507059e+37 }
 0x337   :  { %v4404_v53 = vpop.eup %4403 }
 0x338   :  { %v888_v59 = vmul.f32 %v4404_v53, %v871_v58  ;;  %v874_v1 = vpop.xlane.xlu1 %873  ;;  %vm893_vm2 = vweird.f32 %v4404_v53 }
 0x339   :  { %4405 = vrcp.f32 %v874_v1  ;;  %vm894_vm4 = vmor %vm892_vm3, %vm893_vm2  ;;  %v913_v26 = vand.u32 2147483648, %v874_v1  ;;  %v911_v30 = vand.u32 2147483647, %v874_v1  ;;  %vm907_vm7 = vweird.f32 %v874_v1 }
 0x33a   :  { %v889_v6 = vsub.f32 1.0, %v888_v59 }
 0x33b   :  { %v914_v35 = vor.u32 1.1754944e-38, %v913_v26  ;;  %vm912_vm9 = vcmp.eq.f32.partialorder %v911_v30, 8.507059e+37 }
 0x33c   :  { %v890_v7 = vmul.f32 %v4404_v53, %v889_v6 }
 0x33e   :  { %v891_v9 = vadd.f32 %v4404_v53, %v890_v7 }
 0x33f   :  { %v4406_v12 = vpop.eup %4405 }
 0x340   :  { %v903_v0 = vmul.f32 %v4406_v12, %v874_v1  ;;  %v877_v15 = vpop.xlane.xlu2 %876  ;;  %v895_v18 = vsel %vm894_vm4, %v4404_v53, %v891_v9  ;;  %vm908_vm6 = vweird.f32 %v4406_v12 }
 0x341   :  { %4407 = vrcp.f32 %v877_v15  ;;  %v900_v19 = vsel %vm897_vm5, %v899_v5, %v895_v18  ;;  %vm909_vm8 = vmor %vm907_vm7, %vm908_vm6  ;;  %v928_v52 = vand.u32 2147483648, %v877_v15  ;;  %v926_v55 = vand.u32 2147483647, %v877_v15 }
 0x342   :  { %v904_v23 = vsub.f32 1.0, %v903_v0  ;;  %v901_v25 = vmul.f32 %v5612_v14, %v900_v19  ;;  %vm922_vm11 = vweird.f32 %v877_v15 }
 0x343   :  { %v929_v59 = vor.u32 1.1754944e-38, %v928_v52  ;;  %vm927_vm13 = vcmp.eq.f32.partialorder %v926_v55, 8.507059e+37 }
 0x344   :  { %v905_v28 = vmul.f32 %v4406_v12, %v904_v23  ;;  %4156 = vmatmul.msk.f32.vlgmr.msrb.gmra.mxu1 %vm622_vm1, %v901_v25 }
 0x346   :  { %v906_v22 = vadd.f32 %v4406_v12, %v905_v28 }
 0x347   :  { %v4408_v33 = vpop.eup %4407 }
 0x348   :  { %v918_v38 = vmul.f32 %v4408_v33, %v877_v15  ;;  %v880_v41 = vpop.xlane.xlu0 %879  ;;  %v910_v42 = vsel %vm909_vm8, %v4406_v12, %v906_v22  ;;  %vm923_vm10 = vweird.f32 %v4408_v33 }
 0x349   :  { %4409 = vrcp.f32 %v880_v41  ;;  %v915_v45 = vsel %vm912_vm9, %v914_v35, %v910_v42  ;;  %vm924_vm12 = vmor %vm922_vm11, %vm923_vm10  ;;  %v943_v18 = vand.u32 2147483648, %v880_v41  ;;  %v941_v15 = vand.u32 2147483647, %v880_v41 }
 0x34a   :  { %v919_v46 = vsub.f32 1.0, %v918_v38  ;;  %v916_v14 = vmul.f32 %v5616_v20, %v915_v45  ;;  %vm937_vm15 = vweird.f32 %v880_v41 }
 0x34b   :  { %v944_v25 = vor.u32 1.1754944e-38, %v943_v18  ;;  %vm942_vm3 = vcmp.eq.f32.partialorder %v941_v15, 8.507059e+37 }
 0x34c   :  { %v920_v50 = vmul.f32 %v4408_v33, %v919_v46  ;;  %4157 = vmatmul.msk.f32.gmra.mxu1 %vm622_vm1, %v916_v14 }
 0x34e   :  { %v921_v58 = vadd.f32 %v4408_v33, %v920_v50 }
 0x34f   :  { %v4410_v53 = vpop.eup %4409 }
 0x350   :  { %v933_v1 = vmul.f32 %v4410_v53, %v880_v41  ;;  %v883_v6 = vpop.xlane.xlu1 %882  ;;  %v625_v56 = vpop.xlane.xlu0 %624  ;;  %v925_v7 = vsel %vm924_vm12, %v4408_v33, %v921_v58  ;;  %vm938_vm14 = vweird.f32 %v4410_v53 }
 0x351   :  { %4411 = vrcp.f32 %v883_v6  ;;  %v641_v60 = vsub.f32 %v5662_v4, %v625_v56  ;;  %v930_v9 = vsel %vm927_vm13, %v929_v59, %v925_v7  ;;  %vm939_vm2 = vmor %vm937_vm15, %vm938_vm14  ;;  %v958_v38 = vand.u32 2147483648, %v883_v6 }
 0x352   :  { %v934_v20 = vsub.f32 1.0, %v933_v1  ;;  %v931_v5 = vmul.f32 %v5628_v31, %v930_v9  ;;  %v956_v14 = vand.u32 2147483647, %v883_v6  ;;  %vm952_vm5 = vweird.f32 %v883_v6 }
 0x353   :  { %v647_v12 = vmul.f32 1.442695, %v641_v60  ;;  %v959_v52 = vor.u32 1.1754944e-38, %v958_v38 }
 0x354   :  { %v935_v0 = vmul.f32 %v4410_v53, %v934_v20  ;;  %4158 = vmatmul.msk.f32.gmra.mxu1 %vm622_vm1, %v931_v5  ;;  %vm957_vm7 = vcmp.eq.f32.partialorder %v956_v14, 8.507059e+37  ;;  %v1361_v14 = vmul.f32 %v5571_v34, %v5492_v13  ;;  %v1363_v13 = vmul.f32 %v5571_v34, %v5527_v21 }
 0x355   :  { %4413 = vpow2.f32 %v647_v12 }
 0x356   :  { %v936_v19 = vadd.f32 %v4410_v53, %v935_v0 }
 0x357   :  { %v4412_v23 = vpop.eup %4411 }
 0x358   :  { %v948_v26 = vmul.f32 %v4412_v23, %v883_v6  ;;  %v886_v4 = vpop.xlane.xlu2 %885  ;;  %v628_v28 = vpop.xlane.xlu1 %627  ;;  %v940_v30 = vsel %vm939_vm2, %v4410_v53, %v936_v19  ;;  %vm953_vm4 = vweird.f32 %v4412_v23 }
 0x359   :  { %4415 = vrcp.f32 %v886_v4  ;;  %v642_v22 = vsub.f32 %v5679_v2, %v628_v28  ;;  %v945_v33 = vsel %vm942_vm3, %v944_v25, %v940_v30  ;;  %vm954_vm6 = vmor %vm952_vm5, %vm953_vm4  ;;  %v634_v58 = vpop.xlane.xlu0 %633  ;;  %v973_v20 = vand.u32 2147483648, %v886_v4 }
 0x35a   :  { %v949_v31 = vsub.f32 1.0, %v948_v26  ;;  %v946_v41 = vmul.f32 %v5646_v49, %v945_v33  ;;  %v644_v6 = vsub.f32 %v5682_v3, %v634_v58  ;;  %v971_v0 = vand.u32 2147483647, %v886_v4 }
 0x35b   :  { %v5746_v35 = vpop.eup %4413  ;;  %v649_v42 = vmul.f32 1.442695, %v642_v22  ;;  %vm967_vm9 = vweird.f32 %v886_v4  ;;  %v974_v18 = vor.u32 1.1754944e-38, %v973_v20 }
 0x35c   :  { %v950_v45 = vmul.f32 %v4412_v23, %v949_v31  ;;  %v659_v46 = vsel %vm622_vm1, %v5746_v35, 0.0  ;;  %4159 = vmatmul.msk.f32.gmra.mxu1 %vm622_vm1, %v946_v41  ;;  %vm972_vm11 = vcmp.eq.f32.partialorder %v971_v0, 8.507059e+37  ;;  %v1359_v31 = vmul.f32 %v5571_v34, %v5444_v61 }
 0x35d   :  { %4417 = vpow2.f32 %v649_v42  ;;  %660 = vadd.xlane.f32.xlu1 %v659_v46 }
 0x35e   :  { %v951_v2 = vadd.f32 %v4412_v23, %v950_v45  ;;  %v1360_v45 = vmul.f32 %v5571_v34, %v5475_v8 }
 0x35f   :  { %v4416_v50 = vpop.eup %4415 }
 0x360   :  { %v963_v55 = vmul.f32 %v4416_v50, %v886_v4  ;;  %v631_v53 = vpop.xlane.xlu2 %630  ;;  %v955_v59 = vsel %vm954_vm6, %v4412_v23, %v951_v2  ;;  %vm968_vm8 = vweird.f32 %v4416_v50  ;;  %v637_v15 = vpop.xlane.xlu1 %636 }
 0x361   :  { %v643_v49 = vsub.f32 %v5694_v11, %v631_v53  ;;  %v960_v1 = vsel %vm957_vm7, %v959_v52, %v955_v59  ;;  %vm969_vm10 = vmor %vm967_vm9, %vm968_vm8  ;;  %v645_v26 = vsub.f32 %v5697_v24, %v637_v15 }
 0x362   :  { %v964_v56 = vsub.f32 1.0, %v963_v55  ;;  %v961_v7 = vmul.f32 %v5671_v10, %v960_v1  ;;  %v653_v10 = vmul.f32 1.442695, %v644_v6 }
 0x363   :  { %v5754_v60 = vpop.eup %4417  ;;  %v651_v9 = vmul.f32 1.442695, %v643_v49  ;;  %v655_v30 = vmul.f32 1.442695, %v645_v26 }
 0x364   :  { %v965_v12 = vmul.f32 %v4416_v50, %v964_v56  ;;  %v662_v5 = vsel %vm622_vm1, %v5754_v60, 0.0  ;;  %4160 = vmatmul.msk.f32.gmra.mxu1 %vm622_vm1, %v961_v7 }
 0x365   :  { %4419 = vpow2.f32 %v651_v9  ;;  %663 = vadd.xlane.f32.xlu1 %v662_v5 }
 0x366   :  { %v966_v11 = vadd.f32 %v4416_v50, %v965_v12  ;;  %4421 = vpow2.f32 %v653_v10 }
 0x367   :  { %4423 = vpow2.f32 %v655_v30 }
 0x368   :  { %v970_v19 = vsel %vm969_vm10, %v4416_v50, %v966_v11  ;;  %v640_v4 = vpop.xlane.xlu2 %639 }
 0x369   :  { %v975_v3 = vsel %vm972_vm11, %v974_v18, %v970_v19 }
 0x36a   :  { %v976_v23 = vmul.f32 %v5684_v16, %v975_v3  ;;  %v646_v16 = vsub.f32 %v5704_v29, %v640_v4 }
 0x36b   :  { %v5761_v25 = vpop.eup %4419 }
 0x36c   :  { %v665_v28 = vsel %vm622_vm1, %v5761_v25, 0.0  ;;  %4161 = vmatmul.msk.f32.gmra.mxu1 %vm622_vm1, %v976_v23  ;;  %v5767_v22 = vpop.eup %4421  ;;  %v657_v24 = vmul.f32 1.442695, %v646_v16 }
 0x36d   :  { %666 = vadd.xlane.f32.xlu1 %v665_v28  ;;  %v668_v33 = vsel %vm622_vm1, %v5767_v22, 0.0  ;;  %v5775_v42 = vpop.eup %4423 }
 0x36e   :  { %4425 = vpow2.f32 %v657_v24  ;;  %v671_v61 = vsel %vm622_vm1, %v5775_v42, 0.0 }
 0x370   :  { %v1151_v38 = vpop.xlane.xlu2 %1150 }
 0x371   :  { %v1167_v41 = vsub.f32 %v5709_v32, %v1151_v38  ;;  %v1362_v32 = vmul.f32 %v5571_v34, %v5509_v17 }
 0x373   :  { %v1173_v29 = vmul.f32 1.442695, %v1167_v41 }
 0x374   :  { %4192 = vmatmul.msk.f32.vlgmr.msra.gmra.mxu1 %vm400_vm0, %v1359_v31  ;;  %v5783_v46 = vpop.eup %4425 }
 0x375   :  { %669 = vadd.xlane.f32.xlu1 %v668_v33  ;;  %4427 = vpow2.f32 %v1173_v29  ;;  %v674_v2 = vsel %vm622_vm1, %v5783_v46, 0.0 }
 0x37b   :  { %v5790_v8 = vpop.eup %4427 }
 0x37c   :  { %4193 = vmatmul.msk.f32.gmra.mxu1 %vm400_vm0, %v1360_v45  ;;  %v1185_v50 = vsel %vm622_vm1, %v5790_v8, 0.0 }
 0x37d   :  { %672 = vadd.xlane.f32.xlu1 %v671_v61 }
 0x384   :  { %4194 = vmatmul.msk.f32.gmra.mxu1 %vm400_vm0, %v1361_v14 }
 0x385   :  { %675 = vadd.xlane.f32.xlu1 %v674_v2 }
 0x38c   :  { %4195 = vmatmul.msk.f32.gmra.mxu1 %vm400_vm0, %v1362_v32 }
 0x38d   :  { %1186 = vadd.xlane.f32.xlu1 %v1185_v50 }
 0x394   :  { %4196 = vmatmul.msk.f32.gmra.mxu1 %vm400_vm0, %v1363_v13 }
 0x3c1   :  { %v5800_v52 = vpop.f32.mrf.mxu1 }
 0x3c9   :  { %v5802_v55 = vpop.f32.mrf.mxu1 }
 0x3d0   :  { %v661_v58 = vpop.xlane.xlu1 %660 }
 0x3d1   :  { %4429 = vrcp.f32 %v661_v58  ;;  %v5804_v53 = vpop.f32.mrf.mxu1  ;;  %v688_v7 = vand.u32 2147483648, %v661_v58  ;;  %v686_v21 = vand.u32 2147483647, %v661_v58  ;;  %vm682_vm13 = vweird.f32 %v661_v58 }
 0x3d3   :  { %v689_v12 = vor.u32 1.1754944e-38, %v688_v7  ;;  %vm687_vm15 = vcmp.eq.f32.partialorder %v686_v21, 8.507059e+37 }
 0x3d7   :  { %v4430_v17 = vpop.eup %4429 }
 0x3d8   :  { %v678_v59 = vmul.f32 %v4430_v17, %v661_v58  ;;  %v664_v49 = vpop.xlane.xlu1 %663  ;;  %vm683_vm12 = vweird.f32 %v4430_v17 }
 0x3d9   :  { %4431 = vrcp.f32 %v664_v49  ;;  %v5806_v56 = vpop.f32.mrf.mxu1  ;;  %vm684_vm14 = vmor %vm682_vm13, %vm683_vm12  ;;  %v703_v3 = vand.u32 2147483648, %v664_v49  ;;  %v701_v26 = vand.u32 2147483647, %v664_v49  ;;  %vm697_vm3 = vweird.f32 %v664_v49 }
 0x3da   :  { %v679_v1 = vsub.f32 1.0, %v678_v59 }
 0x3db   :  { %v704_v30 = vor.u32 1.1754944e-38, %v703_v3  ;;  %vm702_vm5 = vcmp.eq.f32.partialorder %v701_v26, 8.507059e+37 }
 0x3dc   :  { %v680_v20 = vmul.f32 %v4430_v17, %v679_v1 }
 0x3de   :  { %v681_v6 = vadd.f32 %v4430_v17, %v680_v20 }
 0x3df   :  { %v4432_v9 = vpop.eup %4431 }
 0x3e0   :  { %v685_v5 = vsel %vm684_vm14, %v4430_v17, %v681_v6  ;;  %v693_v0 = vmul.f32 %v4432_v9, %v664_v49  ;;  %v667_v11 = vpop.xlane.xlu1 %666  ;;  %vm698_vm2 = vweird.f32 %v4432_v9 }
 0x3e1   :  { %v690_v18 = vsel %vm687_vm15, %v689_v12, %v685_v5  ;;  %4433 = vrcp.f32 %v667_v11  ;;  %v5808_v15 = vpop.f32.mrf.mxu1  ;;  %vm699_vm4 = vmor %vm697_vm3, %vm698_vm2  ;;  %v718_v45 = vand.u32 2147483648, %v667_v11  ;;  %v716_v29 = vand.u32 2147483647, %v667_v11 }
 0x3e2   :  { %v694_v10 = vsub.f32 1.0, %v693_v0  ;;  %v691_v19 = vmul.f32 %v5746_v35, %v690_v18  ;;  %vm712_vm7 = vweird.f32 %v667_v11 }
 0x3e3   :  { %v719_v32 = vor.u32 1.1754944e-38, %v718_v45  ;;  %vm717_vm9 = vcmp.eq.f32.partialorder %v716_v29, 8.507059e+37 }
 0x3e4   :  { %v695_v23 = vmul.f32 %v4432_v9, %v694_v10  ;;  %4162 = vmatmul.msk.f32.vlgmr.msra.gmra.mxu2 %vm622_vm1, %v691_v19 }
 0x3e6   :  { %v696_v28 = vadd.f32 %v4432_v9, %v695_v23 }
 0x3e7   :  { %v4434_v4 = vpop.eup %4433 }
 0x3e8   :  { %v708_v31 = vmul.f32 %v4434_v4, %v667_v11  ;;  %v670_v16 = vpop.xlane.xlu1 %669  ;;  %v700_v33 = vsel %vm699_vm4, %v4432_v9, %v696_v28  ;;  %vm713_vm6 = vweird.f32 %v4434_v4 }
 0x3e9   :  { %4435 = vrcp.f32 %v670_v16  ;;  %v705_v24 = vsel %vm702_vm5, %v704_v30, %v700_v33  ;;  %v5812_v41 = vpop.f32.mrf.mxu1  ;;  %vm714_vm8 = vmor %vm712_vm7, %vm713_vm6  ;;  %v733_v1 = vand.u32 2147483648, %v670_v16  ;;  %v731_v21 = vand.u32 2147483647, %v670_v16 }
 0x3ea   :  { %v709_v38 = vsub.f32 1.0, %v708_v31  ;;  %v706_v35 = vmul.f32 %v5754_v60, %v705_v24  ;;  %vm727_vm11 = vweird.f32 %v670_v16 }
 0x3eb   :  { %v734_v5 = vor.u32 1.1754944e-38, %v733_v1  ;;  %vm732_vm13 = vcmp.eq.f32.partialorder %v731_v21, 8.507059e+37 }
 0x3ec   :  { %v710_v61 = vmul.f32 %v4434_v4, %v709_v38  ;;  %4163 = vmatmul.msk.f32.gmra.mxu2 %vm622_vm1, %v706_v35 }
 0x3ee   :  { %v711_v14 = vadd.f32 %v4434_v4, %v710_v61 }
 0x3ef   :  { %v4436_v2 = vpop.eup %4435 }
 0x3f0   :  { %v723_v50 = vmul.f32 %v4436_v2, %v670_v16  ;;  %v673_v13 = vpop.xlane.xlu1 %672  ;;  %v715_v58 = vsel %vm714_vm8, %v4434_v4, %v711_v14  ;;  %vm728_vm10 = vweird.f32 %v4436_v2 }
 0x3f1   :  { %4437 = vrcp.f32 %v673_v13  ;;  %v720_v17 = vsel %vm717_vm9, %v719_v32, %v715_v58  ;;  %v1400_v49 = vpop.f32.mrf.mxu1  ;;  %vm729_vm12 = vmor %vm727_vm11, %vm728_vm10  ;;  %v748_v26 = vand.u32 2147483648, %v673_v13  ;;  %v746_v4 = vand.u32 2147483647, %v673_v13 }
 0x3f2   :  { %v724_v59 = vsub.f32 1.0, %v723_v50  ;;  %v721_v60 = vmul.f32 %v5761_v25, %v720_v17  ;;  %v5818_v7 = vadd.f32 %v1400_v49, %v5576_v36  ;;  %vm742_vm15 = vweird.f32 %v673_v13 }
 0x3f3   :  { %v749_v16 = vor.u32 1.1754944e-38, %v748_v26  ;;  %vm747_vm3 = vcmp.eq.f32.partialorder %v746_v4, 8.507059e+37 }
 0x3f4   :  { %v725_v20 = vmul.f32 %v4436_v2, %v724_v59  ;;  %4164 = vmatmul.msk.f32.gmra.mxu2 %vm622_vm1, %v721_v60  ;;  %v1418_v6 = vsel %vm622_vm1, %v5818_v7, -inf }
 0x3f5   :  { %1419 = vmax.xlane.f32.xlu0 %v1418_v6 }
 0x3f6   :  { %v726_v9 = vadd.f32 %v4436_v2, %v725_v20 }
 0x3f7   :  { %v4438_v12 = vpop.eup %4437 }
 0x3f8   :  { %v738_v0 = vmul.f32 %v4438_v12, %v673_v13  ;;  %v676_v25 = vpop.xlane.xlu1 %675  ;;  %v730_v11 = vsel %vm729_vm12, %v4436_v2, %v726_v9  ;;  %vm743_vm14 = vweird.f32 %v4438_v12 }
 0x3f9   :  { %4439 = vrcp.f32 %v676_v25  ;;  %v735_v36 = vsel %vm732_vm13, %v734_v5, %v730_v11  ;;  %v1403_v10 = vpop.f32.mrf.mxu1  ;;  %vm744_vm2 = vmor %vm742_vm15, %vm743_vm14  ;;  %v763_v45 = vand.u32 2147483648, %v676_v25  ;;  %v761_v2 = vand.u32 2147483647, %v676_v25 }
 0x3fa   :  { %v739_v18 = vsub.f32 1.0, %v738_v0  ;;  %v736_v19 = vmul.f32 %v5767_v22, %v735_v36  ;;  %v5825_v3 = vadd.f32 %v1403_v10, %v5581_v40  ;;  %vm757_vm5 = vweird.f32 %v676_v25 }
 0x3fb   :  { %v764_v58 = vor.u32 1.1754944e-38, %v763_v45  ;;  %vm762_vm7 = vcmp.eq.f32.partialorder %v761_v2, 8.507059e+37 }
 0x3fc   :  { %v740_v23 = vmul.f32 %v4438_v12, %v739_v18  ;;  %4165 = vmatmul.msk.f32.gmra.mxu2 %vm622_vm1, %v736_v19  ;;  %v1421_v28 = vsel %vm622_vm1, %v5825_v3, -inf  ;;  %v1415_v18 = vpop.f32.mrf.mxu3 }
 0x3fd   :  { %1422 = vmax.xlane.f32.xlu0 %v1421_v28  ;;  %v5849_v10 = vadd.f32 %v1415_v18, %v5601_v62 }
 0x3fe   :  { %v741_v30 = vadd.f32 %v4438_v12, %v740_v23  ;;  %v1154_v23 = vpop.xlane.xlu2 %1153 }
 0x3ff   :  { %v4440_v31 = vpop.eup %4439  ;;  %v1433_v19 = vsel %vm622_vm1, %v5849_v10, -inf }
 0x400   :  { %v753_v33 = vmul.f32 %v4440_v31, %v676_v25  ;;  %v1187_v22 = vpop.xlane.xlu1 %1186  ;;  %v745_v24 = vsel %vm744_vm2, %v4438_v12, %v741_v30  ;;  %vm758_vm4 = vweird.f32 %v4440_v31 }
 0x401   :  { %4441 = vrcp.f32 %v1187_v22  ;;  %v1406_v38 = vpop.f32.mrf.mxu1  ;;  %v750_v35 = vsel %vm747_vm3, %v749_v16, %v745_v24  ;;  %vm759_vm6 = vmor %vm757_vm5, %vm758_vm4  ;;  %v1214_v1 = vand.u32 2147483648, %v1187_v22  ;;  %v1212_v6 = vand.u32 2147483647, %v1187_v22 }
 0x402   :  { %v754_v40 = vsub.f32 1.0, %v753_v33  ;;  %v5831_v61 = vadd.f32 %v1406_v38, %v5586_v44  ;;  %v751_v29 = vmul.f32 %v5775_v42, %v750_v35  ;;  %vm1208_vm9 = vweird.f32 %v1187_v22 }
 0x403   :  { %v1215_v5 = vor.u32 1.1754944e-38, %v1214_v1  ;;  %vm1213_vm11 = vcmp.eq.f32.partialorder %v1212_v6, 8.507059e+37 }
 0x404   :  { %v755_v14 = vmul.f32 %v4440_v31, %v754_v40  ;;  %4166 = vmatmul.msk.f32.gmra.mxu2 %vm622_vm1, %v751_v29  ;;  %v1424_v32 = vsel %vm622_vm1, %v5831_v61, -inf }
 0x405   :  { %1425 = vmax.xlane.f32.xlu0 %v1424_v32 }
 0x406   :  { %v756_v50 = vadd.f32 %v4440_v31, %v755_v14 }
 0x407   :  { %v4442_v13 = vpop.eup %4441 }
 0x408   :  { %v1204_v17 = vmul.f32 %v4442_v13, %v1187_v22  ;;  %v760_v59 = vsel %vm759_vm6, %v4440_v31, %v756_v50  ;;  %vm1209_vm8 = vweird.f32 %v4442_v13 }
 0x409   :  { %v765_v44 = vsel %vm762_vm7, %v764_v58, %v760_v59  ;;  %v1409_v42 = vpop.f32.mrf.mxu1  ;;  %vm1210_vm10 = vmor %vm1208_vm9, %vm1209_vm8 }
 0x40a   :  { %v1205_v49 = vsub.f32 1.0, %v1204_v17  ;;  %v766_v60 = vmul.f32 %v5783_v46, %v765_v44  ;;  %v5839_v20 = vadd.f32 %v1409_v42, %v5591_v48 }
 0x40c   :  { %v1206_v21 = vmul.f32 %v4442_v13, %v1205_v49  ;;  %4167 = vmatmul.msk.f32.gmra.mxu2 %vm622_vm1, %v766_v60  ;;  %v1427_v9 = vsel %vm622_vm1, %v5839_v20, -inf }
 0x40d   :  { %1428 = vmax.xlane.f32.xlu0 %v1427_v9 }
 0x40e   :  { %v1207_v12 = vadd.f32 %v4442_v13, %v1206_v21 }
 0x410   :  { %v1211_v0 = vsel %vm1210_vm10, %v4442_v13, %v1207_v12 }
 0x411   :  { %v1216_v46 = vsel %vm1213_vm11, %v1215_v5, %v1211_v0  ;;  %v1412_v25 = vpop.f32.mrf.mxu1 }
 0x412   :  { %v1217_v48 = vmul.f32 %v5790_v8, %v1216_v46  ;;  %v1413_v11 = vadd.f32 %v1412_v25, %v5596_v54  ;;  %v1157_v8 = vpop.xlane.xlu2 %1156  ;;  %v1168_v54 = vsub.f32 %v5714_v37, %v1154_v23 }
 0x413   :  { %v1169_v62 = vsub.f32 %v5719_v39, %v1157_v8 }
 0x414   :  { %4180 = vmatmul.msk.f32.vlgmr.msra.gmra.mxu0 %vm622_vm1, %v1217_v48  ;;  %v1430_v36 = vsel %vm622_vm1, %v1413_v11, -inf  ;;  %v1175_v30 = vmul.f32 1.442695, %v1168_v54 }
 0x415   :  { %1431 = vmax.xlane.f32.xlu0 %v1430_v36 }
 0x41a   :  { %v1160_v24 = vpop.xlane.xlu2 %1159 }
 0x41d   :  { %1434 = vmax.xlane.f32.xlu0 %v1433_v19 }
 0x422   :  { %v1163_v2 = vpop.xlane.xlu2 %1162 }
 0x42a   :  { %v1166_v42 = vpop.xlane.xlu2 %1165 }
 0x468   :  { %v1420_v26 = vpop.xlane.xlu0 %1419 }
 0x469   :  { %v1436_v28 = vsub.f32 %v5818_v7, %v1420_v26  ;;  %v1177_v7 = vmul.f32 1.442695, %v1169_v62 }
 0x46b   :  { %v1442_v4 = vmul.f32 1.442695, %v1436_v28 }
 0x46d   :  { %4443 = vpow2.f32 %v1442_v4 }
 0x46e   :  { %4445 = vpow2.f32 %v1175_v30 }
 0x470   :  { %v1423_v31 = vpop.xlane.xlu0 %1422 }
 0x471   :  { %v1437_v16 = vsub.f32 %v5825_v3, %v1423_v31  ;;  %v1170_v3 = vsub.f32 %v5724_v43, %v1160_v24  ;;  %v1171_v43 = vsub.f32 %v5729_v47, %v1163_v2  ;;  %v1172_v47 = vsub.f32 %v5734_v57, %v1166_v42 }
 0x473   :  { %v5856_v33 = vpop.eup %4443  ;;  %v1444_v22 = vmul.f32 1.442695, %v1437_v16  ;;  %v1179_v32 = vmul.f32 1.442695, %v1170_v3  ;;  %v1181_v49 = vmul.f32 1.442695, %v1171_v43 }
 0x474   :  { %v1454_v40 = vsel %vm622_vm1, %v5856_v33, 0.0  ;;  %v5861_v38 = vpop.eup %4445  ;;  %v1183_v5 = vmul.f32 1.442695, %v1172_v47 }
 0x475   :  { %4447 = vpow2.f32 %v1444_v22  ;;  %1455 = vadd.xlane.f32.xlu0 %v1454_v40  ;;  %v1188_v39 = vsel %vm622_vm1, %v5861_v38, 0.0 }
 0x476   :  { %4449 = vpow2.f32 %v1177_v7 }
 0x478   :  { %v1426_v37 = vpop.xlane.xlu0 %1425 }
 0x479   :  { %v1438_v35 = vsub.f32 %v5831_v61, %v1426_v37 }
 0x47b   :  { %v5864_v45 = vpop.eup %4447  ;;  %v1446_v29 = vmul.f32 1.442695, %v1438_v35 }
 0x47c   :  { %v1457_v14 = vsel %vm622_vm1, %v5864_v45, 0.0  ;;  %v5871_v13 = vpop.eup %4449 }
 0x47d   :  { %4451 = vpow2.f32 %v1446_v29  ;;  %1189 = vadd.xlane.f32.xlu0 %v1188_v39  ;;  %1458 = vadd.xlane.f32.xlu2 %v1457_v14  ;;  %v1191_v59 = vsel %vm622_vm1, %v5871_v13, 0.0 }
 0x47e   :  { %4453 = vpow2.f32 %v1179_v32 }
 0x480   :  { %v1429_v50 = vpop.xlane.xlu0 %1428 }
 0x481   :  { %v1439_v61 = vsub.f32 %v5839_v20, %v1429_v50 }
 0x483   :  { %v5874_v58 = vpop.eup %4451  ;;  %v1448_v17 = vmul.f32 1.442695, %v1439_v61 }
 0x484   :  { %v1460_v44 = vsel %vm622_vm1, %v5874_v58, 0.0  ;;  %v5881_v1 = vpop.eup %4453 }
 0x485   :  { %4455 = vpow2.f32 %v1448_v17  ;;  %1192 = vadd.xlane.f32.xlu2 %v1191_v59  ;;  %1461 = vadd.xlane.f32.xlu1 %v1460_v44  ;;  %v1194_v9 = vsel %vm622_vm1, %v5881_v1, 0.0 }
 0x486   :  { %4457 = vpow2.f32 %v1181_v49 }
 0x488   :  { %v1432_v60 = vpop.xlane.xlu0 %1431 }
 0x489   :  { %v1440_v20 = vsub.f32 %v1413_v11, %v1432_v60 }
 0x48b   :  { %v5883_v21 = vpop.eup %4455  ;;  %v1450_v6 = vmul.f32 1.442695, %v1440_v20 }
 0x48c   :  { %v1463_v12 = vsel %vm622_vm1, %v5883_v21, 0.0  ;;  %v5890_v46 = vpop.eup %4457 }
 0x48d   :  { %4459 = vpow2.f32 %v1450_v6  ;;  %1195 = vadd.xlane.f32.xlu1 %v1194_v9  ;;  %1464 = vadd.xlane.f32.xlu0 %v1463_v12  ;;  %v1197_v11 = vsel %vm622_vm1, %v5890_v46, 0.0 }
 0x48e   :  { %4461 = vpow2.f32 %v1183_v5 }
 0x490   :  { %v1435_v0 = vpop.xlane.xlu0 %1434 }
 0x491   :  { %v1441_v25 = vsub.f32 %v5849_v10, %v1435_v0 }
 0x493   :  { %v5893_v48 = vpop.eup %4459  ;;  %v1452_v57 = vmul.f32 1.442695, %v1441_v25 }
 0x494   :  { %v1466_v36 = vsel %vm622_vm1, %v5893_v48, 0.0  ;;  %v5899_v18 = vpop.eup %4461 }
 0x495   :  { %4463 = vpow2.f32 %v1452_v57  ;;  %1198 = vadd.xlane.f32.xlu0 %v1197_v11  ;;  %1467 = vadd.xlane.f32.xlu2 %v1466_v36  ;;  %v1200_v10 = vsel %vm622_vm1, %v5899_v18, 0.0 }
 0x49b   :  { %v5901_v19 = vpop.eup %4463 }
 0x49c   :  { %v1469_v23 = vsel %vm622_vm1, %v5901_v19, 0.0 }
 0x49d   :  { %1201 = vadd.xlane.f32.xlu2 %v1200_v10  ;;  %1470 = vadd.xlane.f32.xlu1 %v1469_v23 }
 0x4e8   :  { %v1456_v26 = vpop.xlane.xlu0 %1455 }
 0x4e9   :  { %4465 = vrcp.f32 %v1456_v26  ;;  %v1483_v31 = vand.u32 2147483648, %v1456_v26  ;;  %v1481_v62 = vand.u32 2147483647, %v1456_v26  ;;  %vm1477_vm13 = vweird.f32 %v1456_v26 }
 0x4eb   :  { %v1484_v40 = vor.u32 1.1754944e-38, %v1483_v31  ;;  %vm1482_vm15 = vcmp.eq.f32.partialorder %v1481_v62, 8.507059e+37 }
 0x4ef   :  { %v4466_v28 = vpop.eup %4465 }
 0x4f0   :  { %v1473_v8 = vmul.f32 %v4466_v28, %v1456_v26  ;;  %v1459_v54 = vpop.xlane.xlu2 %1458  ;;  %v1190_v4 = vpop.xlane.xlu0 %1189  ;;  %vm1478_vm12 = vweird.f32 %v4466_v28 }
 0x4f1   :  { %4467 = vrcp.f32 %v1459_v54  ;;  %vm1479_vm14 = vmor %vm1477_vm13, %vm1478_vm12  ;;  %v1498_v43 = vand.u32 2147483648, %v1459_v54  ;;  %v1229_v59 = vand.u32 2147483648, %v1190_v4  ;;  %vm1492_vm3 = vweird.f32 %v1459_v54 }
 0x4f2   :  { %v1474_v30 = vsub.f32 1.0, %v1473_v8  ;;  %4469 = vrcp.f32 %v1190_v4  ;;  %v1227_v44 = vand.u32 2147483647, %v1190_v4  ;;  %v1496_v42 = vand.u32 2147483647, %v1459_v54 }
 0x4f3   :  { %vm1223_vm6 = vweird.f32 %v1190_v4  ;;  %v1499_v0 = vor.u32 1.1754944e-38, %v1498_v43  ;;  %v1230_v25 = vor.u32 1.1754944e-38, %v1229_v59 }
 0x4f4   :  { %v1475_v16 = vmul.f32 %v4466_v28, %v1474_v30  ;;  %vm1228_vm8 = vcmp.eq.f32.partialorder %v1227_v44, 8.507059e+37  ;;  %vm1497_vm9 = vcmp.eq.f32.partialorder %v1496_v42, 8.507059e+37 }
 0x4f6   :  { %v1476_v22 = vadd.f32 %v4466_v28, %v1475_v16 }
 0x4f7   :  { %v4468_v24 = vpop.eup %4467 }
 0x4f8   :  { %v4470_v7 = vpop.eup %4469  ;;  %v1480_v37 = vsel %vm1479_vm14, %v4466_v28, %v1476_v22  ;;  %v1488_v35 = vmul.f32 %v4468_v24, %v1459_v54  ;;  %v5907_v3 = vpop.xlane.xlu2 %1192  ;;  %vm1493_vm2 = vweird.f32 %v4468_v24 }
 0x4f9   :  { %v5909_v29 = vpop.xlane.xlu1 %1461  ;;  %v1485_v39 = vsel %vm1482_vm15, %v1484_v40, %v1480_v37  ;;  %v1219_v14 = vmul.f32 %v4470_v7, %v1190_v4  ;;  %4471 = vrcp.f32 %v5907_v3  ;;  %vm1224_vm4 = vweird.f32 %v4470_v7  ;;  %vm5917_vm5 = vmor %vm1492_vm3, %vm1493_vm2  ;;  %v376_v40 = vld [vmem:[%s7100_s27 + $0x18] sm:$0xff] }
 0x4fa   :  { %v1489_v2 = vsub.f32 1.0, %v1488_v35  ;;  %4473 = vrcp.f32 %v5909_v29  ;;  %v1486_v50 = vmul.f32 %v5856_v33, %v1485_v39  ;;  %vm1225_vm7 = vmor %vm1223_vm6, %vm1224_vm4  ;;  %v1244_v36 = vand.u32 2147483648, %v5907_v3  ;;  %1658 = vmatpush.msrb.mxu3 %v376_v40 }
 0x4fb   :  { %v1220_v32 = vsub.f32 1.0, %v1219_v14  ;;  %v1513_v30 = vand.u32 2147483648, %v5909_v29  ;;  %v1242_v16 = vand.u32 2147483647, %v5907_v3  ;;  %vm1238_vm11 = vweird.f32 %v5907_v3 }
 0x4fc   :  { %v1490_v61 = vmul.f32 %v4468_v24, %v1489_v2  ;;  %4198 = vmatmul.msk.f32.vlgmr.msrb.gmra.mxu2 %vm622_vm1, %v1486_v50  ;;  %v1511_v22 = vand.u32 2147483647, %v5909_v29  ;;  %v1245_v35 = vor.u32 1.1754944e-38, %v1244_v36  ;;  %vm1507_vm14 = vweird.f32 %v5909_v29 }
 0x4fd   :  { %v1221_v17 = vmul.f32 %v4470_v7, %v1220_v32  ;;  %v1514_v32 = vor.u32 1.1754944e-38, %v1513_v30  ;;  %vm1243_vm15 = vcmp.eq.f32.partialorder %v1242_v16, 8.507059e+37 }
 0x4fe   :  { %v1491_v49 = vadd.f32 %v4468_v24, %v1490_v61  ;;  %vm1512_vm3 = vcmp.eq.f32.partialorder %v1511_v22, 8.507059e+37 }
 0x4ff   :  { %v5915_v60 = vpop.eup %4471  ;;  %v1222_v20 = vadd.f32 %v4470_v7, %v1221_v17 }
 0x500   :  { %v5921_v33 = vpop.eup %4473  ;;  %v1234_v6 = vmul.f32 %v5915_v60, %v5907_v3  ;;  %v5927_v12 = vpop.xlane.xlu0 %1464  ;;  %v1495_v5 = vsel %vm5917_vm5, %v4468_v24, %v1491_v49  ;;  %vm1239_vm10 = vweird.f32 %v5915_v60 }
 0x501   :  { %v5925_v9 = vpop.xlane.xlu1 %1195  ;;  %v1503_v57 = vmul.f32 %v5921_v33, %v5909_v29  ;;  %v1226_v23 = vsel %vm1225_vm7, %v4470_v7, %v1222_v20  ;;  %v1500_v26 = vsel %vm1497_vm9, %v1499_v0, %v1495_v5  ;;  %vm5950_vm12 = vmor %vm1238_vm11, %vm1239_vm10  ;;  %vm1508_vm13 = vweird.f32 %v5921_v33  ;;  %v375_v7 = vld [vmem:[%s7100_s27 + $0x10] sm:$0xff] }
 0x502   :  { %4475 = vrcp.f32 %v5925_v9  ;;  %v1235_v11 = vsub.f32 1.0, %v1234_v6  ;;  %v1231_v8 = vsel %vm1228_vm8, %v1230_v25, %v1226_v23  ;;  %v1501_v54 = vmul.f32 %v5864_v45, %v1500_v26  ;;  %vm1509_vm2 = vmor %vm1507_vm14, %vm1508_vm13  ;;  %1659 = vmatpush.msrb.mxu3 %v375_v7 }
 0x503   :  { %4477 = vrcp.f32 %v5927_v12  ;;  %v1504_v10 = vsub.f32 1.0, %v1503_v57  ;;  %v1232_v31 = vmul.f32 %v5861_v38, %v1231_v8  ;;  %v1259_v61 = vand.u32 2147483648, %v5925_v9 }
 0x504   :  { %v1236_v28 = vmul.f32 %v5915_v60, %v1235_v11  ;;  %4199 = vmatmul.msk.f32.gmra.mxu2 %vm622_vm1, %v1501_v54  ;;  %v1528_v17 = vand.u32 2147483648, %v5927_v12  ;;  %v1257_v6 = vand.u32 2147483647, %v5925_v9  ;;  %v1526_v5 = vand.u32 2147483647, %v5927_v12 }
 0x505   :  { %v1505_v4 = vmul.f32 %v5921_v33, %v1504_v10  ;;  %4181 = vmatmul.msk.f32.gmra.mxu0 %vm622_vm1, %v1232_v31  ;;  %vm1253_vm5 = vweird.f32 %v5925_v9  ;;  %vm1522_vm6 = vweird.f32 %v5927_v12  ;;  %v1260_v57 = vor.u32 1.1754944e-38, %v1259_v61 }
 0x506   :  { %v1237_v62 = vadd.f32 %v5915_v60, %v1236_v28  ;;  %vm1258_vm9 = vcmp.eq.f32.partialorder %v1257_v6, 8.507059e+37  ;;  %vm1527_vm10 = vcmp.eq.f32.partialorder %v1526_v5, 8.507059e+37 }
 0x507   :  { %v1506_v38 = vadd.f32 %v5921_v33, %v1505_v4 }
 0x508   :  { %v5947_v45 = vpop.eup %4475  ;;  %v5963_v39 = vpop.xlane.xlu2 %1467  ;;  %v1241_v2 = vsel %vm5950_vm12, %v5915_v60, %v1237_v62 }
 0x509   :  { %v5958_v37 = vpop.eup %4477  ;;  %v1249_v3 = vmul.f32 %v5947_v45, %v5925_v9  ;;  %v5965_v14 = vpop.xlane.xlu0 %1198  ;;  %4479 = vrcp.f32 %v5963_v39  ;;  %v1246_v59 = vsel %vm1243_vm15, %v1245_v35, %v1241_v2  ;;  %v1510_v44 = vsel %vm1509_vm2, %v5921_v33, %v1506_v38 }
 0x50a   :  { %v1518_v50 = vmul.f32 %v5958_v37, %v5927_v12  ;;  %4481 = vrcp.f32 %v5965_v14  ;;  %v1247_v42 = vmul.f32 %v5871_v13, %v1246_v59  ;;  %v1515_v60 = vsel %vm1512_vm3, %v1514_v32, %v1510_v44 }
 0x50b   :  { %v1250_v29 = vsub.f32 1.0, %v1249_v3  ;;  %vm1254_vm4 = vweird.f32 %v5947_v45  ;;  %v1516_v47 = vmul.f32 %v5874_v58, %v1515_v60  ;;  %vm1523_vm8 = vweird.f32 %v5958_v37 }
 0x50c   :  { %v1519_v43 = vsub.f32 1.0, %v1518_v50  ;;  %vm5991_vm7 = vmor %vm1253_vm5, %vm1254_vm4  ;;  %v1529_v9 = vor.u32 1.1754944e-38, %v1528_v17  ;;  %v1543_v8 = vand.u32 2147483648, %v5963_v39  ;;  %v1274_v54 = vand.u32 2147483648, %v5965_v14 }
 0x50d   :  { %v1251_v49 = vmul.f32 %v5947_v45, %v1250_v29  ;;  %4182 = vmatmul.msk.f32.gmra.mxu0 %vm622_vm1, %v1247_v42  ;;  %4200 = vmatmul.msk.f32.gmra.mxu2 %vm622_vm1, %v1516_v47  ;;  %vm1524_vm11 = vmor %vm1522_vm6, %vm1523_vm8  ;;  %v1541_v16 = vand.u32 2147483647, %v5963_v39  ;;  %v1272_v40 = vand.u32 2147483647, %v5965_v14  ;;  %vm1537_vm14 = vweird.f32 %v5963_v39 }
 0x50e   :  { %v1520_v20 = vmul.f32 %v5958_v37, %v1519_v43  ;;  %v1544_v35 = vor.u32 1.1754944e-38, %v1543_v8  ;;  %vm1268_vm15 = vweird.f32 %v5965_v14  ;;  %v1275_v3 = vor.u32 1.1754944e-38, %v1274_v54  ;;  %v1334_v8 = vpop.f32.mrf.mxu0 }
 0x50f   :  { %v1252_v0 = vadd.f32 %v5947_v45, %v1251_v49  ;;  %v4480_v33 = vpop.eup %4479  ;;  %vm1542_vm4 = vcmp.eq.f32.partialorder %v1541_v16, 8.507059e+37  ;;  %vm1273_vm5 = vcmp.eq.f32.partialorder %v1272_v40, 8.507059e+37 }
 0x510   :  { %v1521_v58 = vadd.f32 %v5958_v37, %v1520_v20  ;;  %v4482_v25 = vpop.eup %4481  ;;  %v1533_v11 = vmul.f32 %v4480_v33, %v5963_v39  ;;  %v5998_v36 = vpop.xlane.xlu2 %1201  ;;  %vm1538_vm12 = vweird.f32 %v4480_v33 }
 0x511   :  { %v6000_v10 = vpop.xlane.xlu1 %1470  ;;  %v1256_v23 = vsel %vm5991_vm7, %v5947_v45, %v1252_v0  ;;  %v1264_v26 = vmul.f32 %v4482_v25, %v5965_v14  ;;  %4483 = vrcp.f32 %v5998_v36  ;;  %vm1269_vm13 = vweird.f32 %v4482_v25  ;;  %vm1539_vm2 = vmor %vm1537_vm14, %vm1538_vm12 }
 0x512   :  { %v1534_v28 = vsub.f32 1.0, %v1533_v11  ;;  %4485 = vrcp.f32 %v6000_v10  ;;  %v1261_v30 = vsel %vm1258_vm9, %v1260_v57, %v1256_v23  ;;  %v1525_v31 = vsel %vm1524_vm11, %v5958_v37, %v1521_v58  ;;  %vm1270_vm3 = vmor %vm1268_vm15, %vm1269_vm13  ;;  %v1071_v57 = vpop.f32.mrf.mxu2  ;;  %v373_v23 = vld [vmem:[%s7100_s27] sm:$0xff] }
 0x513   :  { %v1265_v4 = vsub.f32 1.0, %v1264_v26  ;;  %v1262_v22 = vmul.f32 %v5881_v1, %v1261_v30  ;;  %v1530_v45 = vsel %vm1527_vm10, %v1529_v9, %v1525_v31  ;;  %v1289_v61 = vand.u32 2147483648, %v5998_v36 }
 0x514   :  { %v1535_v62 = vmul.f32 %v4480_v33, %v1534_v28  ;;  %v1531_v38 = vmul.f32 %v5883_v21, %v1530_v45  ;;  %v1558_v49 = vand.u32 2147483648, %v6000_v10  ;;  %v1287_v42 = vand.u32 2147483647, %v5998_v36 }
 0x515   :  { %v1266_v24 = vmul.f32 %v4482_v25, %v1265_v4  ;;  %4183 = vmatmul.msk.f32.gmra.mxu0 %vm622_vm1, %v1262_v22  ;;  %v1556_v20 = vand.u32 2147483647, %v6000_v10  ;;  %vm1283_vm8 = vweird.f32 %v5998_v36  ;;  %v1290_v6 = vor.u32 1.1754944e-38, %v1289_v61 }
 0x516   :  { %v1536_v12 = vadd.f32 %v4480_v33, %v1535_v62  ;;  %4201 = vmatmul.msk.f32.gmra.mxu2 %vm622_vm1, %v1531_v38  ;;  %vm1552_vm9 = vweird.f32 %v6000_v10  ;;  %vm1288_vm11 = vcmp.eq.f32.partialorder %v1287_v42, 8.507059e+37  ;;  %v1072_v54 = vadd.f32 %v1071_v57, %v5800_v52 }
 0x517   :  { %v4484_v7 = vpop.eup %4483  ;;  %v1267_v1 = vadd.f32 %v4482_v25, %v1266_v24  ;;  %vm1557_vm13 = vcmp.eq.f32.partialorder %v1556_v20, 8.507059e+37 }
 0x518   :  { %v4486_v37 = vpop.eup %4485  ;;  %v1279_v21 = vmul.f32 %v4484_v7, %v5998_v36  ;;  %v1540_v2 = vsel %vm1539_vm2, %v4480_v33, %v1536_v12  ;;  %vm1284_vm6 = vweird.f32 %v4484_v7  ;;  %v374_v36 = vld [vmem:[%s7100_s27 + $0x8] sm:$0xff] }
 0x519   :  { %v1548_v39 = vmul.f32 %v4486_v37, %v6000_v10  ;;  %v1271_v32 = vsel %vm1270_vm3, %v4482_v25, %v1267_v1  ;;  %v1545_v50 = vsel %vm1542_vm4, %v1544_v35, %v1540_v2  ;;  %vm1553_vm7 = vweird.f32 %v4486_v37  ;;  %vm1285_vm10 = vmor %vm1283_vm8, %vm1284_vm6  ;;  %1660 = vmatpush.msrb.mxu3 %v374_v36 }
 0x51a   :  { %v1280_v29 = vsub.f32 1.0, %v1279_v21  ;;  %v1276_v14 = vsel %vm1273_vm5, %v1275_v3, %v1271_v32  ;;  %v1546_v59 = vmul.f32 %v5893_v48, %v1545_v50  ;;  %v1559_v48 = vor.u32 1.1754944e-38, %v1558_v49  ;;  %vm1554_vm12 = vmor %vm1552_vm9, %vm1553_vm7  ;;  %v1074_v9 = vpop.f32.mrf.mxu2 }
 0x51b   :  { %v1549_v43 = vsub.f32 1.0, %v1548_v39  ;;  %v1277_v17 = vmul.f32 %v5890_v46, %v1276_v14  ;;  %1661 = vmatpush.msrb.mxu3 %v373_v23  ;;  %v1075_v31 = vadd.f32 %v1074_v9, %v5802_v55  ;;  %v4633_v14 = vld [vmem:[%s7095_s14] sm:$0xf] }
 0x51c   :  { %v1281_v44 = vmul.f32 %v4484_v7, %v1280_v29  ;;  %v1627_v61 = vperm.slane %v4633_v14, 3 }
 0x51d   :  { %v1550_v60 = vmul.f32 %v4486_v37, %v1549_v43  ;;  %4184 = vmatmul.msk.f32.gmra.mxu0 %vm622_vm1, %v1277_v17 }
 0x51e   :  { %v1282_v47 = vadd.f32 %v4484_v7, %v1281_v44  ;;  %4202 = vmatmul.msk.f32.gmra.mxu2 %vm622_vm1, %v1546_v59 }
 0x51f   :  { %v1551_v46 = vadd.f32 %v4486_v37, %v1550_v60  ;;  %v4635_v60 = vld [vmem:[%s7092_s6 + $0x8] sm:$0xff] }
 0x520   :  { %v1286_v5 = vsel %vm1285_vm10, %v4484_v7, %v1282_v47 }
 0x521   :  { %v1291_v0 = vsel %vm1288_vm11, %v1290_v6, %v1286_v5  ;;  %v1555_v33 = vsel %vm1554_vm12, %v4486_v37, %v1551_v46  ;;  %v4636_v46 = vld [vmem:[%s7092_s6 + $0x10] sm:$0xff] }
 0x522   :  { %v1560_v13 = vsel %vm1557_vm13, %v1559_v48, %v1555_v33  ;;  %v1292_v58 = vmul.f32 %v5899_v18, %v1291_v0  ;;  %v1077_v11 = vpop.f32.mrf.mxu2  ;;  %v1352_v18 = vadd.f32 %v1334_v8, %v1072_v54 }
 0x523   :  { %v1561_v25 = vmul.f32 %v5901_v19, %v1560_v13  ;;  %v1078_v24 = vadd.f32 %v1077_v11, %v5804_v53  ;;  %v4637_v13 = vld [vmem:[%s7092_s6 + $0x18] sm:$0xff]  ;;  %v4638_v11 = vld [vmem:[#allocation2] sm:$0xff] }
 0x525   :  { %4185 = vmatmul.msk.f32.gmra.mxu0 %vm622_vm1, %v1292_v58 }
 0x526   :  { %4203 = vmatmul.msk.f32.gmra.mxu2 %vm622_vm1, %v1561_v25 }
 0x52a   :  { %v1080_v10 = vpop.f32.mrf.mxu2 }
 0x52b   :  { %v1081_v7 = vadd.f32 %v1080_v10, %v5806_v56 }
 0x532   :  { %v1083_v26 = vpop.f32.mrf.mxu2 }
 0x533   :  { %v1084_v3 = vadd.f32 %v1083_v26, %v5808_v15  ;;  %v4634_v15 = vld [vmem:[%s7092_s6] sm:$0xff] }
 0x53a   :  { %v1086_v28 = vpop.f32.mrf.mxu2 }
 0x53b   :  { %v1087_v32 = vadd.f32 %v1086_v28, %v5812_v41  ;;  %v4639_v28 = vld [vmem:[#allocation2 + $0x8] sm:$0xff] }
 0x57f   :  { %v1603_v4 = vpop.f32.mrf.mxu2 }
 0x580   :  { %v1621_v19 = vadd.f32 %v1603_v4, %v1352_v18  ;;  %v5103_v18 = vmov 32.0  }
 0x581   :  { %4487 = vrcp.f32 %v5103_v18 }
 0x582   :  { %4204 = vmatmul.msk.f32.vlgmr.msrb.gmra.mxu3 %vm400_vm0, %v1621_v19  ;;  %v1337_v30 = vpop.f32.mrf.mxu0 }
 0x583   :  { %v1353_v16 = vadd.f32 %v1337_v30, %v1075_v31 }
 0x587   :  { %v1606_v62 = vpop.f32.mrf.mxu2  ;;  %v4488_v4 = vpop.eup %4487 }
 0x588   :  { %v1622_v22 = vadd.f32 %v1606_v62, %v1353_v16  ;;  %v1706_v19 = vmul.f32 32.0, %v4488_v4  ;;  %vm1710_vm1 = vweird.f32 %v4488_v4 }
 0x58a   :  { %v1340_v45 = vpop.f32.mrf.mxu0  ;;  %4205 = vmatmul.msk.f32.gmra.mxu3 %vm400_vm0, %v1622_v22  ;;  %v1707_v30 = vsub.f32 1.0, %v1706_v19 }
 0x58b   :  { %v1354_v38 = vadd.f32 %v1340_v45, %v1078_v24 }
 0x58c   :  { %v1708_v31 = vmul.f32 %v4488_v4, %v1707_v30 }
 0x58e   :  { %v1709_v16 = vadd.f32 %v4488_v4, %v1708_v31 }
 0x590   :  { %v1609_v40 = vpop.f32.mrf.mxu2  ;;  %v6064_v62 = vsel %vm1710_vm1, %v4488_v4, %v1709_v16 }
 0x591   :  { %v1623_v12 = vadd.f32 %v1609_v40, %v1354_v38 }
 0x592   :  { %v1343_v52 = vpop.f32.mrf.mxu0 }
 0x593   :  { %4206 = vmatmul.msk.f32.gmra.mxu3 %vm400_vm0, %v1623_v12  ;;  %v1355_v35 = vadd.f32 %v1343_v52, %v1081_v7 }
 0x599   :  { %v1612_v1 = vpop.f32.mrf.mxu2 }
 0x59a   :  { %v1624_v55 = vadd.f32 %v1612_v1, %v1355_v35  ;;  %v1346_v37 = vpop.f32.mrf.mxu0 }
 0x59b   :  { %v1356_v21 = vadd.f32 %v1346_v37, %v1084_v3  ;;  %v382_v37 = vld [vmem:[#allocation10 + $0x18] sm:$0xff] }
 0x59c   :  { %4207 = vmatmul.msk.f32.gmra.mxu3 %vm400_vm0, %v1624_v55  ;;  %1873 = vmatpush.msrb.mxu0 %v382_v37 }
 0x5a1   :  { %v1615_v53 = vpop.f32.mrf.mxu2 }
 0x5a2   :  { %v1625_v2 = vadd.f32 %v1615_v53, %v1356_v21  ;;  %v1349_v39 = vpop.f32.mrf.mxu0 }
 0x5a3   :  { %v1357_v56 = vadd.f32 %v1349_v39, %v1087_v32 }
 0x5a4   :  { %4208 = vmatmul.msk.f32.gmra.mxu3 %vm400_vm0, %v1625_v2 }
 0x5a9   :  { %v1618_v50 = vpop.f32.mrf.mxu2 }
 0x5aa   :  { %v1626_v29 = vadd.f32 %v1618_v50, %v1357_v56 }
 0x5ac   :  { %4209 = vmatmul.msk.f32.gmra.mxu3 %vm400_vm0, %v1626_v29 }
 0x605   :  { %v1663_v43 = vpop.f32.mrf.mxu3 }
 0x606   :  { %v1664_v17 = vadd.f32 %v1663_v43, %v1627_v61 }
 0x608   :  { %v1681_v59 = vadd.f32 %v4634_v15, %v1664_v17 }
 0x60a   :  { %v1687_v44 = vsel %vm400_vm0, %v1681_v59, 0.0 }
 0x60b   :  { %1688 = vadd.xlane.f32.xlu0 %v1687_v44 }
 0x60d   :  { %v1666_v49 = vpop.f32.mrf.mxu3 }
 0x60e   :  { %v1667_v42 = vadd.f32 %v1666_v49, %v1627_v61 }
 0x610   :  { %v1682_v41 = vadd.f32 %v4635_v60, %v1667_v42 }
 0x612   :  { %v1690_v20 = vsel %vm400_vm0, %v1682_v41, 0.0 }
 0x613   :  { %1691 = vadd.xlane.f32.xlu1 %v1690_v20  ;;  %v380_v20 = vld [vmem:[#allocation10 + $0x8] sm:$0xff] }
 0x616   :  { %v1669_v47 = vpop.f32.mrf.mxu3 }
 0x617   :  { %v1670_v6 = vadd.f32 %v1669_v47, %v1627_v61  ;;  %v379_v47 = vld [vmem:[#allocation10] sm:$0xff] }
 0x619   :  { %v1683_v48 = vadd.f32 %v4636_v46, %v1670_v6 }
 0x61b   :  { %v1693_v5 = vsel %vm400_vm0, %v1683_v48, 0.0 }
 0x61c   :  { %1694 = vadd.xlane.f32.xlu2 %v1693_v5 }
 0x61f   :  { %v1672_v0 = vpop.f32.mrf.mxu3 }
 0x620   :  { %v1673_v33 = vadd.f32 %v1672_v0, %v1627_v61 }
 0x622   :  { %v1684_v58 = vadd.f32 %v4637_v13, %v1673_v33 }
 0x624   :  { %v1696_v25 = vsel %vm400_vm0, %v1684_v58, 0.0 }
 0x625   :  { %1697 = vadd.xlane.f32.xlu0 %v1696_v25 }
 0x627   :  { %v1675_v57 = vpop.f32.mrf.mxu3 }
 0x628   :  { %v1676_v9 = vadd.f32 %v1675_v57, %v1627_v61 }
 0x62a   :  { %v1685_v36 = vadd.f32 %v4638_v11, %v1676_v9  ;;  %v6104_v9 = vld [vmem:[#allocation8] sm:$0xf] }
 0x62b   :  { %v6112_v30 = vperm.slane %v6104_v9, 1 }
 0x62c   :  { %v1699_v10 = vsel %vm400_vm0, %v1685_v36, 0.0 }
 0x62d   :  { %1700 = vadd.xlane.f32.xlu1 %v1699_v10 }
 0x62f   :  { %v1678_v23 = vpop.f32.mrf.mxu3 }
 0x630   :  { %v1679_v26 = vadd.f32 %v1678_v23, %v1627_v61 }
 0x632   :  { %v1686_v8 = vadd.f32 %v4639_v28, %v1679_v26  ;;  %v6108_v28 = vperm.slane %v6104_v9, 0 }
 0x634   :  { %v1702_v54 = vsel %vm400_vm0, %v1686_v8, 0.0 }
 0x635   :  { %1703 = vadd.xlane.f32.xlu2 %v1702_v54 }
 0x67e   :  { %v1689_v22 = vpop.xlane.xlu0 %1688 }
 0x67f   :  { %v1712_v45 = vmul.f32 %v6064_v62, %v1689_v22 }
 0x681   :  { %v6067_v24 = vsub.f32 %v1681_v59, %v1712_v45 }
 0x683   :  { %v1724_v38 = vmul.f32 %v6067_v24, %v6067_v24 }
 0x685   :  { %v1730_v40 = vsel %vm400_vm0, %v1724_v38, 0.0 }
 0x686   :  { %1731 = vadd.xlane.f32.xlu0 %v1730_v40  ;;  %v1692_v12 = vpop.xlane.xlu1 %1691 }
 0x687   :  { %v1713_v52 = vmul.f32 %v6064_v62, %v1692_v12 }
 0x689   :  { %v6073_v7 = vsub.f32 %v1682_v41, %v1713_v52  ;;  %v381_v41 = vld [vmem:[#allocation10 + $0x10] sm:$0xff] }
 0x68a   :  { %1874 = vmatpush.msrb.mxu0 %v381_v41 }
 0x68b   :  { %v1725_v35 = vmul.f32 %v6073_v7, %v6073_v7 }
 0x68c   :  { %1875 = vmatpush.msrb.mxu0 %v380_v20 }
 0x68d   :  { %v1733_v1 = vsel %vm400_vm0, %v1725_v35, 0.0 }
 0x68e   :  { %1734 = vadd.xlane.f32.xlu1 %v1733_v1  ;;  %1876 = vmatpush.msrb.mxu0 %v379_v47 }
 0x68f   :  { %v1695_v55 = vpop.xlane.xlu2 %1694 }
 0x690   :  { %v1714_v3 = vmul.f32 %v6064_v62, %v1695_v55 }
 0x692   :  { %v6079_v21 = vsub.f32 %v1683_v48, %v1714_v3 }
 0x694   :  { %v1726_v53 = vmul.f32 %v6079_v21, %v6079_v21 }
 0x696   :  { %v1736_v2 = vsel %vm400_vm0, %v1726_v53, 0.0 }
 0x697   :  { %1737 = vadd.xlane.f32.xlu2 %v1736_v2 }
 0x698   :  { %v1698_v39 = vpop.xlane.xlu0 %1697 }
 0x699   :  { %v1715_v32 = vmul.f32 %v6064_v62, %v1698_v39 }
 0x69b   :  { %v6085_v56 = vsub.f32 %v1684_v58, %v1715_v32 }
 0x69d   :  { %v1727_v50 = vmul.f32 %v6085_v56, %v6085_v56 }
 0x69f   :  { %v1739_v29 = vsel %vm400_vm0, %v1727_v50, 0.0 }
 0x6a0   :  { %v1701_v14 = vpop.xlane.xlu1 %1700  ;;  %1740 = vadd.xlane.f32.xlu0 %v1739_v29 }
 0x6a1   :  { %v1716_v61 = vmul.f32 %v6064_v62, %v1701_v14 }
 0x6a3   :  { %v6091_v43 = vsub.f32 %v1685_v36, %v1716_v61 }
 0x6a5   :  { %v1728_v17 = vmul.f32 %v6091_v43, %v6091_v43 }
 0x6a7   :  { %v1742_v15 = vsel %vm400_vm0, %v1728_v17, 0.0 }
 0x6a8   :  { %1743 = vadd.xlane.f32.xlu1 %v1742_v15  ;;  %v1704_v59 = vpop.xlane.xlu2 %1703  ;;  %v390_v15 = vld [vmem:[%s7105_s28 + $0x30] sm:$0xff] }
 0x6a9   :  { %v1717_v44 = vmul.f32 %v6064_v62, %v1704_v59 }
 0x6ab   :  { %v6097_v49 = vsub.f32 %v1686_v8, %v1717_v44 }
 0x6ad   :  { %v1729_v42 = vmul.f32 %v6097_v49, %v6097_v49 }
 0x6af   :  { %v1745_v60 = vsel %vm400_vm0, %v1729_v42, 0.0 }
 0x6b0   :  { %1746 = vadd.xlane.f32.xlu2 %v1745_v60  ;;  %v389_v60 = vld [vmem:[%s7105_s28 + $0x28] sm:$0xff] }
 0x6f9   :  { %v1732_v6 = vpop.xlane.xlu0 %1731 }
 0x6fa   :  { %v1748_v46 = vmul.f32 %v1732_v6, %v6064_v62 }
 0x6fc   :  { %v1754_v48 = vadd.f32 1e-05, %v1748_v46  ;;  %v388_v46 = vld [vmem:[%s7105_s28 + $0x20] sm:$0xff] }
 0x6fe   :  { %4489 = vrsqrt.f32 %v1754_v48  ;;  %vm1766_vm15 = vweird.f32 %v1754_v48 }
 0x701   :  { %v1735_v5 = vpop.xlane.xlu1 %1734 }
 0x702   :  { %v1749_v0 = vmul.f32 %v1735_v5, %v6064_v62 }
 0x704   :  { %v4490_v33 = vpop.eup %4489  ;;  %v1755_v58 = vadd.f32 1e-05, %v1749_v0 }
 0x705   :  { %v1761_v13 = vmul.f32 %v4490_v33, %v1754_v48  ;;  %vm1767_vm14 = vweird.f32 %v4490_v33 }
 0x706   :  { %4491 = vrsqrt.f32 %v1755_v58  ;;  %vm1768_vm2 = vmor %vm1766_vm15, %vm1767_vm14  ;;  %vm1776_vm4 = vweird.f32 %v1755_v58 }
 0x707   :  { %v1762_v25 = vmul.f32 %v4490_v33, %v1761_v13  ;;  %v387_v13 = vld [vmem:[%s7105_s28 + $0x18] sm:$0xff] }
 0x709   :  { %v1763_v57 = vmul.f32 0.5, %v1762_v25 }
 0x70a   :  { %v1738_v36 = vpop.xlane.xlu2 %1737 }
 0x70b   :  { %v1764_v11 = vsub.f32 1.5, %v1763_v57  ;;  %v1750_v10 = vmul.f32 %v1738_v36, %v6064_v62 }
 0x70c   :  { %v4492_v23 = vpop.eup %4491 }
 0x70d   :  { %v1765_v26 = vmul.f32 %v4490_v33, %v1764_v11  ;;  %v1771_v8 = vmul.f32 %v4492_v23, %v1755_v58  ;;  %v1756_v54 = vadd.f32 1e-05, %v1750_v10  ;;  %vm1777_vm3 = vweird.f32 %v4492_v23 }
 0x70e   :  { %vm1778_vm5 = vmor %vm1776_vm4, %vm1777_vm3  ;;  %vm1905_vm3 = vcmask 523264  }
 0x70f   :  { %v1769_v18 = vsel %vm1768_vm2, %v4490_v33, %v1765_v26  ;;  %v1772_v19 = vmul.f32 %v4492_v23, %v1771_v8  ;;  %4493 = vrsqrt.f32 %v1756_v54  ;;  %vm1786_vm7 = vweird.f32 %v1756_v54 }
 0x710   :  { %v1820_v4 = vmul.f32 %v1769_v18, %v6067_v24 }
 0x711   :  { %v1773_v16 = vmul.f32 0.5, %v1772_v19 }
 0x712   :  { %v1827_v31 = vmul.f32 %v6108_v28, %v1820_v4 }
 0x713   :  { %v1741_v22 = vpop.xlane.xlu0 %1740  ;;  %v1774_v45 = vsub.f32 1.5, %v1773_v16 }
 0x714   :  { %v1751_v38 = vmul.f32 %v1741_v22, %v6064_v62  ;;  %v6117_v40 = vadd.f32 %v6112_v30, %v1827_v31 }
 0x715   :  { %v4494_v12 = vpop.eup %4493  ;;  %v1775_v52 = vmul.f32 %v4492_v23, %v1774_v45 }
 0x716   :  { %v1757_v24 = vadd.f32 1e-05, %v1751_v38  ;;  %4210 = vmatmul.msk.f32.vlgmr.msrb.gmra.mxu0 %vm400_vm0, %v6117_v40  ;;  %v1781_v35 = vmul.f32 %v4494_v12, %v1756_v54  ;;  %vm1787_vm6 = vweird.f32 %v4494_v12 }
 0x717   :  { %v1779_v1 = vsel %vm1778_vm5, %v4492_v23, %v1775_v52  ;;  %vm1788_vm8 = vmor %vm1786_vm7, %vm1787_vm6 }
 0x718   :  { %4495 = vrsqrt.f32 %v1757_v24  ;;  %v1782_v55 = vmul.f32 %v4494_v12, %v1781_v35  ;;  %v1821_v37 = vmul.f32 %v1779_v1, %v6073_v7  ;;  %v391_v7 = vld [vmem:[%s7105_s28 + $0x38] sm:$0xff]  ;;  %vm1796_vm10 = vweird.f32 %v1757_v24  ;;  %v386_v35 = vld [vmem:[%s7105_s28 + $0x10] sm:$0xff]  ;;  %v385_v1 = vld [vmem:[%s7105_s28 + $0x8] sm:$0xff] }
 0x719   :  { %1932 = vmatpush.msrb.mxu1 %v391_v7 }
 0x71a   :  { %v1783_v3 = vmul.f32 0.5, %v1782_v55  ;;  %v1828_v2 = vmul.f32 %v6108_v28, %v1821_v37  ;;  %v384_v55 = vld [vmem:[%s7105_s28] sm:$0xff] }
 0x71b   :  { %v1744_v53 = vpop.xlane.xlu1 %1743  ;;  %1933 = vmatpush.msrb.mxu1 %v390_v15  ;;  %v4384_v37 = vld [vmem:[%s7106_s9] ss:$0 sm:$0xff] }
 0x71c   :  { %v1752_v39 = vmul.f32 %v1744_v53, %v6064_v62  ;;  %v1784_v32 = vsub.f32 1.5, %v1783_v3  ;;  %v6125_v50 = vadd.f32 %v6112_v30, %v1828_v2 }
 0x71d   :  { %1934 = vmatpush.msrb.mxu1 %v389_v60 }
 0x71e   :  { %v4496_v29 = vpop.eup %4495  ;;  %v1758_v14 = vadd.f32 1e-05, %v1752_v39  ;;  %v1785_v61 = vmul.f32 %v4494_v12, %v1784_v32  ;;  %4211 = vmatmul.msk.f32.gmra.mxu0 %vm400_vm0, %v6125_v50 }
 0x71f   :  { %v1791_v17 = vmul.f32 %v4496_v29, %v1757_v24  ;;  %vm1797_vm9 = vweird.f32 %v4496_v29  ;;  %1935 = vmatpush.msrb.mxu1 %v388_v46 }
 0x720   :  { %4497 = vrsqrt.f32 %v1758_v14  ;;  %v1789_v59 = vsel %vm1788_vm8, %v4494_v12, %v1785_v61  ;;  %vm1798_vm11 = vmor %vm1796_vm10, %vm1797_vm9  ;;  %vm1806_vm13 = vweird.f32 %v1758_v14 }
 0x721   :  { %v1792_v44 = vmul.f32 %v4496_v29, %v1791_v17  ;;  %v1822_v42 = vmul.f32 %v1789_v59, %v6079_v21  ;;  %1936 = vmatpush.msrb.mxu1 %v387_v13 }
 0x723   :  { %v1793_v41 = vmul.f32 0.5, %v1792_v44  ;;  %v1747_v20 = vpop.xlane.xlu2 %1746  ;;  %v1829_v6 = vmul.f32 %v6108_v28, %v1822_v42  ;;  %1937 = vmatpush.msrb.mxu1 %v386_v35 }
 0x724   :  { %v1753_v47 = vmul.f32 %v1747_v20, %v6064_v62 }
 0x725   :  { %v1794_v48 = vsub.f32 1.5, %v1793_v41  ;;  %v6137_v33 = vadd.f32 %v6112_v30, %v1829_v6  ;;  %1938 = vmatpush.msrb.mxu1 %v385_v1  ;;  %v4385_v41 = vld [vmem:[%s7107_s1] ss:$0 sm:$0xff] }
 0x726   :  { %v4498_v5 = vpop.eup %4497  ;;  %v1759_v0 = vadd.f32 1e-05, %v1753_v47 }
 0x727   :  { %v1795_v58 = vmul.f32 %v4496_v29, %v1794_v48  ;;  %v1801_v21 = vmul.f32 %v4498_v5, %v1758_v14  ;;  %4212 = vmatmul.msk.f32.gmra.mxu0 %vm400_vm0, %v6137_v33  ;;  %vm1807_vm12 = vweird.f32 %v4498_v5  ;;  %1939 = vmatpush.msrb.mxu1 %v384_v55 }
 0x728   :  { %4499 = vrsqrt.f32 %v1759_v0  ;;  %vm1808_vm1 = vmor %vm1806_vm13, %vm1807_vm12  ;;  %vm1816_vm15 = vweird.f32 %v1759_v0 }
 0x729   :  { %v1799_v25 = vsel %vm1798_vm11, %v4496_v29, %v1795_v58  ;;  %v1802_v57 = vmul.f32 %v4498_v5, %v1801_v21 }
 0x72a   :  { %v1823_v11 = vmul.f32 %v1799_v25, %v6085_v56 }
 0x72b   :  { %v1803_v36 = vmul.f32 0.5, %v1802_v57 }
 0x72c   :  { %v1830_v10 = vmul.f32 %v6108_v28, %v1823_v11 }
 0x72d   :  { %v1804_v23 = vsub.f32 1.5, %v1803_v36 }
 0x72e   :  { %v4500_v26 = vpop.eup %4499  ;;  %v6145_v8 = vadd.f32 %v6112_v30, %v1830_v10 }
 0x72f   :  { %v1805_v54 = vmul.f32 %v4498_v5, %v1804_v23  ;;  %v1811_v18 = vmul.f32 %v4500_v26, %v1759_v0  ;;  %vm1817_vm14 = vweird.f32 %v4500_v26 }
 0x730   :  { %4213 = vmatmul.msk.f32.gmra.mxu0 %vm400_vm0, %v6145_v8  ;;  %vm1818_vm2 = vmor %vm1816_vm15, %vm1817_vm14 }
 0x731   :  { %v1809_v4 = vsel %vm1808_vm1, %v4498_v5, %v1805_v54  ;;  %v1812_v19 = vmul.f32 %v4500_v26, %v1811_v18 }
 0x732   :  { %v1824_v56 = vmul.f32 %v1809_v4, %v6091_v43 }
 0x733   :  { %v1813_v31 = vmul.f32 0.5, %v1812_v19 }
 0x734   :  { %v1831_v16 = vmul.f32 %v6108_v28, %v1824_v56 }
 0x735   :  { %v1814_v22 = vsub.f32 1.5, %v1813_v31 }
 0x736   :  { %v1838_v45 = vadd.f32 %v6112_v30, %v1831_v16 }
 0x737   :  { %v1815_v38 = vmul.f32 %v4500_v26, %v1814_v22 }
 0x738   :  { %4214 = vmatmul.msk.f32.gmra.mxu0 %vm400_vm0, %v1838_v45 }
 0x739   :  { %v1819_v12 = vsel %vm1818_vm2, %v4500_v26, %v1815_v38 }
 0x73a   :  { %v1825_v52 = vmul.f32 %v1819_v12, %v6097_v49 }
 0x73c   :  { %v1832_v43 = vmul.f32 %v6108_v28, %v1825_v52 }
 0x73e   :  { %v1839_v24 = vadd.f32 %v6112_v30, %v1832_v43 }
 0x740   :  { %4215 = vmatmul.msk.f32.gmra.mxu0 %vm400_vm0, %v1839_v24 }
 0x793   :  { %v1878_v3 = vpop.f32.mrf.mxu0 }
 0x794   :  { %v1879_v53 = vadd.f32 %v4384_v37, %v1878_v3 }
 0x796   :  { %v1896_v2 = vmax.f32 %v1879_v53, 0.0 }
 0x798   :  { %4216 = vmatmul.msk.f32.vlgmr.msrb.gmra.mxu1 %vm1905_vm3, %v1896_v2 }
 0x79b   :  { %v1881_v49 = vpop.f32.mrf.mxu0 }
 0x79c   :  { %v1882_v39 = vadd.f32 %v4384_v37, %v1881_v49 }
 0x79e   :  { %v1897_v28 = vmax.f32 %v1882_v39, 0.0 }
 0x7a0   :  { %4217 = vmatmul.msk.f32.gmra.mxu1 %vm1905_vm3, %v1897_v28 }
 0x7a4   :  { %v1884_v30 = vpop.f32.mrf.mxu0 }
 0x7a5   :  { %v1885_v32 = vadd.f32 %v4384_v37, %v1884_v30 }
 0x7a7   :  { %v1898_v29 = vmax.f32 %v1885_v32, 0.0 }
 0x7a9   :  { %4218 = vmatmul.msk.f32.gmra.mxu1 %vm1905_vm3, %v1898_v29 }
 0x7ad   :  { %v1887_v14 = vpop.f32.mrf.mxu0 }
 0x7ae   :  { %v1888_v61 = vadd.f32 %v4384_v37, %v1887_v14 }
 0x7b0   :  { %v1899_v17 = vmax.f32 %v1888_v61, 0.0 }
 0x7b2   :  { %4219 = vmatmul.msk.f32.gmra.mxu1 %vm1905_vm3, %v1899_v17 }
 0x7b5   :  { %v1890_v7 = vpop.f32.mrf.mxu0 }
 0x7b6   :  { %v1891_v15 = vadd.f32 %v4384_v37, %v1890_v7 }
 0x7b8   :  { %v1900_v59 = vmax.f32 %v1891_v15, 0.0 }
 0x7ba   :  { %4220 = vmatmul.msk.f32.gmra.mxu1 %vm1905_vm3, %v1900_v59 }
 0x7bd   :  { %v1893_v44 = vpop.f32.mrf.mxu0 }
 0x7be   :  { %v1894_v42 = vadd.f32 %v4384_v37, %v1893_v44  ;;  %v6210_v44 = vld [vmem:[#allocation11 + $0x18] sm:$0xff] }
 0x7bf   :  { %2172 = vmatpush.msra.mxu2 %v6210_v44 }
 0x7c0   :  { %v1901_v60 = vmax.f32 %v1894_v42, 0.0  ;;  %v2113_v42 = vld [vmem:[#allocation11 + $0x10] sm:$0xff] }
 0x7c1   :  { %2173 = vmatpush.msra.mxu2 %v2113_v42 }
 0x7c2   :  { %4221 = vmatmul.msk.f32.gmra.mxu1 %vm1905_vm3, %v1901_v60  ;;  %v2112_v60 = vld [vmem:[#allocation11 + $0x8] sm:$0xff] }
 0x7c3   :  { %2174 = vmatpush.msra.mxu2 %v2112_v60 }
 0x815   :  { %v1941_v20 = vpop.f32.mrf.mxu1 }
 0x816   :  { %v1942_v47 = vadd.f32 %v4385_v41, %v1941_v20 }
 0x818   :  { %v1959_v6 = vadd.f32 %v1942_v47, %v6117_v40 }
 0x81a   :  { %v1965_v46 = vsel %vm400_vm0, %v1959_v6, 0.0 }
 0x81b   :  { %1966 = vadd.xlane.f32.xlu2 %v1965_v46 }
 0x81d   :  { %v1944_v48 = vpop.f32.mrf.mxu1 }
 0x81e   :  { %v1945_v36 = vadd.f32 %v4385_v41, %v1944_v48 }
 0x820   :  { %v1960_v26 = vadd.f32 %v1945_v36, %v6125_v50  ;;  %v6218_v36 = vperm.slane %v6104_v9, 3 }
 0x826   :  { %v1947_v5 = vpop.f32.mrf.mxu1 }
 0x827   :  { %v1948_v18 = vadd.f32 %v4385_v41, %v1947_v5 }
 0x829   :  { %v1961_v19 = vadd.f32 %v1948_v18, %v6137_v33 }
 0x82b   :  { %v1971_v56 = vsel %vm400_vm0, %v1961_v19, 0.0 }
 0x82f   :  { %v1950_v0 = vpop.f32.mrf.mxu1 }
 0x830   :  { %v1951_v13 = vadd.f32 %v4385_v41, %v1950_v0 }
 0x832   :  { %v1962_v58 = vadd.f32 %v1951_v13, %v6145_v8  ;;  %v1968_v8 = vsel %vm400_vm0, %v1960_v26, 0.0  ;;  %v2118_v13 = vld [vmem:[#allocation13 + $0x18] sm:$0xff] }
 0x833   :  { %2210 = vmatpush.msra.mxu3 %v2118_v13 }
 0x834   :  { %v1974_v21 = vsel %vm400_vm0, %v1962_v58, 0.0 }
 0x835   :  { %1975 = vadd.xlane.f32.xlu2 %v1974_v21 }
 0x837   :  { %v1953_v25 = vpop.f32.mrf.mxu1 }
 0x838   :  { %v1954_v57 = vadd.f32 %v4385_v41, %v1953_v25  ;;  %v6215_v25 = vperm.slane %v6104_v9, 2 }
 0x83a   :  { %v1963_v11 = vadd.f32 %v1954_v57, %v1838_v45 }
 0x83c   :  { %v1977_v10 = vsel %vm400_vm0, %v1963_v11, 0.0 }
 0x83d   :  { %1978 = vadd.xlane.f32.xlu0 %v1977_v10 }
 0x83f   :  { %v1956_v40 = vpop.f32.mrf.mxu1 }
 0x840   :  { %v1957_v23 = vadd.f32 %v4385_v41, %v1956_v40  ;;  %v2111_v41 = vld [vmem:[#allocation11] sm:$0xff] }
 0x841   :  { %2175 = vmatpush.msra.mxu2 %v2111_v41 }
 0x842   :  { %v1964_v54 = vadd.f32 %v1957_v23, %v1839_v24  ;;  %v2117_v23 = vld [vmem:[#allocation13 + $0x10] sm:$0xff] }
 0x843   :  { %2211 = vmatpush.msra.mxu3 %v2117_v23 }
 0x844   :  { %v1980_v4 = vsel %vm400_vm0, %v1964_v54, 0.0 }
 0x845   :  { %1981 = vadd.xlane.f32.xlu1 %v1980_v4  ;;  %1969 = vadd.xlane.f32.xlu0 %v1968_v8 }
 0x84d   :  { %1972 = vadd.xlane.f32.xlu1 %v1971_v56 }
 0x88e   :  { %v1967_v31 = vpop.xlane.xlu2 %1966 }
 0x88f   :  { %v1983_v16 = vmul.f32 %v1967_v31, %v6064_v62 }
 0x891   :  { %v1989_v22 = vsub.f32 %v1959_v6, %v1983_v16 }
 0x893   :  { %v1995_v45 = vmul.f32 %v1989_v22, %v1989_v22 }
 0x895   :  { %v2001_v50 = vsel %vm400_vm0, %v1995_v45, 0.0 }
 0x896   :  { %2002 = vadd.xlane.f32.xlu2 %v2001_v50 }
 0x8a8   :  { %v1976_v38 = vpop.xlane.xlu2 %1975 }
 0x8a9   :  { %v1986_v12 = vmul.f32 %v1976_v38, %v6064_v62 }
 0x8ab   :  { %v6181_v52 = vsub.f32 %v1962_v58, %v1986_v12 }
 0x8ad   :  { %v1998_v43 = vmul.f32 %v6181_v52, %v6181_v52 }
 0x8af   :  { %v2010_v33 = vsel %vm400_vm0, %v1998_v43, 0.0 }
 0x8b0   :  { %v1979_v24 = vpop.xlane.xlu0 %1978  ;;  %2011 = vadd.xlane.f32.xlu2 %v2010_v33 }
 0x8b1   :  { %v1987_v35 = vmul.f32 %v1979_v24, %v6064_v62 }
 0x8b3   :  { %v6187_v1 = vsub.f32 %v1963_v11, %v1987_v35 }
 0x8b5   :  { %v1999_v55 = vmul.f32 %v6187_v1, %v6187_v1 }
 0x8b7   :  { %v2013_v37 = vsel %vm400_vm0, %v1999_v55, 0.0 }
 0x8b8   :  { %v1982_v3 = vpop.xlane.xlu1 %1981  ;;  %2014 = vadd.xlane.f32.xlu0 %v2013_v37  ;;  %v1970_v53 = vpop.xlane.xlu0 %1969 }
 0x8b9   :  { %v1988_v2 = vmul.f32 %v1982_v3, %v6064_v62  ;;  %v1984_v49 = vmul.f32 %v1970_v53, %v6064_v62 }
 0x8bb   :  { %v6194_v39 = vsub.f32 %v1964_v54, %v1988_v2  ;;  %v6196_v28 = vsub.f32 %v1960_v26, %v1984_v49  ;;  %v2116_v26 = vld [vmem:[#allocation13 + $0x8] sm:$0xff]  ;;  %v2115_v54 = vld [vmem:[#allocation13] sm:$0xff] }
 0x8bc   :  { %2212 = vmatpush.msra.mxu3 %v2116_v26 }
 0x8bd   :  { %v2000_v30 = vmul.f32 %v6194_v39, %v6194_v39  ;;  %v1996_v32 = vmul.f32 %v6196_v28, %v6196_v28 }
 0x8be   :  { %2213 = vmatpush.msra.mxu3 %v2115_v54 }
 0x8bf   :  { %v2016_v29 = vsel %vm400_vm0, %v2000_v30, 0.0  ;;  %v2004_v14 = vsel %vm400_vm0, %v1996_v32, 0.0 }
 0x8c0   :  { %2017 = vadd.xlane.f32.xlu1 %v2016_v29  ;;  %v1973_v61 = vpop.xlane.xlu1 %1972  ;;  %2005 = vadd.xlane.f32.xlu0 %v2004_v14 }
 0x8c1   :  { %v1985_v17 = vmul.f32 %v1973_v61, %v6064_v62 }
 0x8c3   :  { %v6205_v7 = vsub.f32 %v1961_v19, %v1985_v17 }
 0x8c5   :  { %v1997_v15 = vmul.f32 %v6205_v7, %v6205_v7 }
 0x8c7   :  { %v2007_v59 = vsel %vm400_vm0, %v1997_v15, 0.0 }
 0x8c8   :  { %2008 = vadd.xlane.f32.xlu1 %v2007_v59 }
 0x909   :  { %v2003_v20 = vpop.xlane.xlu2 %2002 }
 0x90a   :  { %v2019_v47 = vmul.f32 %v2003_v20, %v6064_v62 }
 0x90c   :  { %v2025_v6 = vadd.f32 1e-05, %v2019_v47 }
 0x90e   :  { %4501 = vrsqrt.f32 %v2025_v6  ;;  %vm2037_vm5 = vweird.f32 %v2025_v6 }
 0x914   :  { %v4502_v46 = vpop.eup %4501 }
 0x915   :  { %v2032_v48 = vmul.f32 %v4502_v46, %v2025_v6  ;;  %vm2038_vm4 = vweird.f32 %v4502_v46 }
 0x916   :  { %vm2039_vm6 = vmor %vm2037_vm5, %vm2038_vm4 }
 0x917   :  { %v2033_v5 = vmul.f32 %v4502_v46, %v2032_v48 }
 0x919   :  { %v2034_v0 = vmul.f32 0.5, %v2033_v5 }
 0x91b   :  { %v2035_v58 = vsub.f32 1.5, %v2034_v0 }
 0x91d   :  { %v2036_v21 = vmul.f32 %v4502_v46, %v2035_v58 }
 0x91f   :  { %v2040_v57 = vsel %vm2039_vm6, %v4502_v46, %v2036_v21 }
 0x920   :  { %v2091_v11 = vmul.f32 %v2040_v57, %v1989_v22 }
 0x922   :  { %v2098_v10 = vmul.f32 %v6215_v25, %v2091_v11 }
 0x923   :  { %v2012_v4 = vpop.xlane.xlu2 %2011 }
 0x924   :  { %v6222_v40 = vadd.f32 %v6218_v36, %v2098_v10  ;;  %v2022_v19 = vmul.f32 %v2012_v4, %v6064_v62 }
 0x926   :  { %4222 = vmatmul.msk.f32.vlgmr.msra.gmra.mxu2 %vm400_vm0, %v6222_v40  ;;  %v6228_v56 = vadd.f32 1e-05, %v2022_v19 }
 0x928   :  { %vm2067_vm6 = vweird.f32 %v6228_v56 }
 0x92b   :  { %v2015_v18 = vpop.xlane.xlu0 %2014 }
 0x92c   :  { %v2023_v8 = vmul.f32 %v2015_v18, %v6064_v62 }
 0x92e   :  { %v2029_v9 = vadd.f32 1e-05, %v2023_v8 }
 0x930   :  { %4503 = vrsqrt.f32 %v2029_v9  ;;  %vm2077_vm8 = vweird.f32 %v2029_v9 }
 0x931   :  { %4505 = vrsqrt.f32 %v6228_v56 }
 0x933   :  { %v2018_v31 = vpop.xlane.xlu1 %2017  ;;  %v2006_v16 = vpop.xlane.xlu0 %2005 }
 0x934   :  { %v2024_v22 = vmul.f32 %v2018_v31, %v6064_v62  ;;  %v2020_v45 = vmul.f32 %v2006_v16, %v6064_v62 }
 0x936   :  { %v4504_v50 = vpop.eup %4503  ;;  %v2030_v38 = vadd.f32 1e-05, %v2024_v22  ;;  %v2026_v12 = vadd.f32 1e-05, %v2020_v45 }
 0x937   :  { %v2072_v43 = vmul.f32 %v4504_v50, %v2029_v9  ;;  %v6234_v37 = vpop.eup %4505  ;;  %vm2078_vm7 = vweird.f32 %v4504_v50 }
 0x938   :  { %4507 = vrsqrt.f32 %v2030_v38  ;;  %v2062_v29 = vmul.f32 %v6234_v37, %v6228_v56  ;;  %vm2079_vm9 = vmor %vm2077_vm8, %vm2078_vm7  ;;  %vm2087_vm12 = vweird.f32 %v2030_v38  ;;  %vm2047_vm1 = vweird.f32 %v2026_v12 }
 0x939   :  { %v2073_v33 = vmul.f32 %v4504_v50, %v2072_v43  ;;  %4509 = vrsqrt.f32 %v2026_v12  ;;  %vm2068_vm4 = vweird.f32 %v6234_v37  ;;  %v4387_v43 = vld [vmem:[#allocation16] ss:$0 sm:$0xff]  ;;  %vm2272_vm8 = vcmask 130048  }
 0x93a   :  { %v2063_v60 = vmul.f32 %v6234_v37, %v2062_v29  ;;  %vm2069_vm7 = vmor %vm2067_vm6, %vm2068_vm4 }
 0x93b   :  { %v2074_v24 = vmul.f32 0.5, %v2073_v33  ;;  %v2009_v35 = vpop.xlane.xlu1 %2008  ;;  %v348_v33 = vld [vmem:[%s7108_s2] sm:$0xf] }
 0x93c   :  { %v2021_v55 = vmul.f32 %v2009_v35, %v6064_v62  ;;  %v2064_v13 = vmul.f32 0.5, %v2063_v60  ;;  %v4386_v35 = vld [vmem:[#allocation14] ss:$0 sm:$0xff]  ;;  %v6293_v29 = vperm.slane %v348_v33, 3 }
 0x93d   :  { %v2075_v3 = vsub.f32 1.5, %v2074_v24 }
 0x93e   :  { %v4508_v53 = vpop.eup %4507  ;;  %v2027_v2 = vadd.f32 1e-05, %v2021_v55  ;;  %v2065_v26 = vsub.f32 1.5, %v2064_v13 }
 0x93f   :  { %v4510_v49 = vpop.eup %4509  ;;  %v2076_v30 = vmul.f32 %v4504_v50, %v2075_v3  ;;  %v2082_v32 = vmul.f32 %v4508_v53, %v2030_v38  ;;  %vm2088_vm10 = vweird.f32 %v4508_v53 }
 0x940   :  { %v2042_v14 = vmul.f32 %v4510_v49, %v2026_v12  ;;  %4511 = vrsqrt.f32 %v2027_v2  ;;  %vm2048_vm11 = vweird.f32 %v4510_v49  ;;  %vm2089_vm13 = vmor %vm2087_vm12, %vm2088_vm10  ;;  %vm2057_vm2 = vweird.f32 %v2027_v2 }
 0x941   :  { %v2080_v61 = vsel %vm2079_vm9, %v4504_v50, %v2076_v30  ;;  %v2083_v17 = vmul.f32 %v4508_v53, %v2082_v32  ;;  %vm2049_vm14 = vmor %vm2047_vm1, %vm2048_vm11 }
 0x942   :  { %v2095_v15 = vmul.f32 %v2080_v61, %v6187_v1  ;;  %v2043_v59 = vmul.f32 %v4510_v49, %v2042_v14 }
 0x943   :  { %v2084_v42 = vmul.f32 0.5, %v2083_v17 }
 0x944   :  { %v2102_v41 = vmul.f32 %v6215_v25, %v2095_v15  ;;  %v2044_v20 = vmul.f32 0.5, %v2043_v59 }
 0x945   :  { %v2085_v47 = vsub.f32 1.5, %v2084_v42 }
 0x946   :  { %v4512_v6 = vpop.eup %4511  ;;  %v2045_v46 = vsub.f32 1.5, %v2044_v20  ;;  %v6242_v48 = vadd.f32 %v6218_v36, %v2102_v41 }
 0x947   :  { %v2086_v5 = vmul.f32 %v4508_v53, %v2085_v47  ;;  %v2052_v0 = vmul.f32 %v4512_v6, %v2027_v2  ;;  %vm2058_vm15 = vweird.f32 %v4512_v6  ;;  %v6289_v2 = vperm.slane %v348_v33, 2 }
 0x948   :  { %v2046_v1 = vmul.f32 %v4510_v49, %v2045_v46  ;;  %4226 = vmatmul.msk.f32.vlgmr.msra.gmra.mxu3 %vm400_vm0, %v6242_v48  ;;  %vm2059_vm5 = vmor %vm2057_vm2, %vm2058_vm15 }
 0x949   :  { %v2090_v58 = vsel %vm2089_vm13, %v4508_v53, %v2086_v5  ;;  %v2053_v21 = vmul.f32 %v4512_v6, %v2052_v0 }
 0x94a   :  { %v2050_v57 = vsel %vm2049_vm14, %v4510_v49, %v2046_v1  ;;  %v2096_v11 = vmul.f32 %v2090_v58, %v6194_v39  ;;  %v2066_v39 = vmul.f32 %v6234_v37, %v2065_v26 }
 0x94b   :  { %v2054_v10 = vmul.f32 0.5, %v2053_v21  ;;  %v2092_v23 = vmul.f32 %v2050_v57, %v6196_v28 }
 0x94c   :  { %v2103_v54 = vmul.f32 %v6215_v25, %v2096_v11  ;;  %v2070_v16 = vsel %vm2069_vm7, %v6234_v37, %v2066_v39  ;;  %v6279_v37 = vperm.slane %v348_v33, 1 }
 0x94d   :  { %v2055_v18 = vsub.f32 1.5, %v2054_v10  ;;  %v2099_v4 = vmul.f32 %v6215_v25, %v2092_v23  ;;  %v2094_v50 = vmul.f32 %v2070_v16, %v6181_v52  ;;  %v6281_v52 = vperm.slane %v348_v33, 0  ;;  %v6348_v23 = vld [vmem:[%s7109_s3] sm:$0xff] }
 0x94e   :  { %v6251_v8 = vadd.f32 %v6218_v36, %v2103_v54 }
 0x94f   :  { %v2056_v9 = vmul.f32 %v4512_v6, %v2055_v18  ;;  %v6254_v19 = vadd.f32 %v6218_v36, %v2099_v4  ;;  %v2101_v38 = vmul.f32 %v6215_v25, %v2094_v50  ;;  %v6353_v4 = vld [vmem:[%s7109_s3 + $0x8] sm:$0xff] }
 0x950   :  { %4227 = vmatmul.msk.f32.gmra.mxu3 %vm400_vm0, %v6251_v8 }
 0x951   :  { %v2060_v28 = vsel %vm2059_vm5, %v4512_v6, %v2056_v9  ;;  %4223 = vmatmul.msk.f32.gmra.mxu2 %vm400_vm0, %v6254_v19  ;;  %v6274_v12 = vadd.f32 %v6218_v36, %v2101_v38  ;;  %v6363_v38 = vld [vmem:[%s7109_s3 + $0x18] sm:$0xff] }
 0x952   :  { %v2093_v31 = vmul.f32 %v2060_v28, %v6205_v7 }
 0x954   :  { %v2100_v22 = vmul.f32 %v6215_v25, %v2093_v31  ;;  %v6358_v31 = vld [vmem:[%s7109_s3 + $0x10] sm:$0xff] }
 0x956   :  { %v6267_v45 = vadd.f32 %v6218_v36, %v2100_v22 }
 0x959   :  { %4224 = vmatmul.msk.f32.gmra.mxu2 %vm400_vm0, %v6267_v45 }
 0x961   :  { %4225 = vmatmul.msk.f32.gmra.mxu2 %vm400_vm0, %v6274_v12 }
 0x9a9   :  { %v2177_v56 = vpop.f32.mrf.mxu2 }
 0x9aa   :  { %v6287_v53 = vadd.f32 %v4386_v35, %v2177_v56 }
 0x9ac   :  { %v2221_v17 = vmul.f32 %v6287_v53, %v5449_v63  ;;  %v2372_v15 = vmul.f32 %v6287_v53, %v5423_v51  ;;  %v2598_v21 = vmul.f32 %v6287_v53, %v5551_v27 }
 0x9cb   :  { %v2215_v7 = vpop.f32.mrf.mxu3 }
 0x9cc   :  { %v2216_v3 = vadd.f32 %v4387_v43, %v2215_v7 }
 0x9ce   :  { %v2514_v30 = vmul.f32 %v6279_v37, %v2216_v3  ;;  %v2370_v32 = vmul.f32 %v6281_v52, %v2216_v3  ;;  %v2740_v59 = vmul.f32 %v6289_v2, %v2216_v3  ;;  %v2929_v42 = vmul.f32 %v6293_v29, %v2216_v3 }
 0x9d3   :  { %v2218_v24 = vpop.f32.mrf.mxu3 }
 0x9d4   :  { %v2219_v55 = vadd.f32 %v4387_v43, %v2218_v24  ;;  %v2180_v49 = vpop.f32.mrf.mxu2 }
 0x9d5   :  { %v6309_v60 = vadd.f32 %v4386_v35, %v2180_v49 }
 0x9d6   :  { %4228 = vmatpush.xpose.msk.msrb.mxu2 %vm400_vm0, %v2219_v55  ;;  %4234 = vmatpush.xpose.msk.msrb.mxu3 %vm400_vm0, %v2219_v55  ;;  %v2515_v25 = vmul.f32 %v6279_v37, %v2219_v55  ;;  %v2371_v36 = vmul.f32 %v6281_v52, %v2219_v55  ;;  %v2741_v14 = vmul.f32 %v6289_v2, %v2219_v55 }
 0x9d7   :  { %v2930_v61 = vmul.f32 %v6293_v29, %v2219_v55  ;;  %v2222_v20 = vmul.f32 %v6309_v60, %v5449_v63  ;;  %v2373_v47 = vmul.f32 %v6309_v60, %v5423_v51  ;;  %v2599_v57 = vmul.f32 %v6309_v60, %v5551_v27 }
 0x9d8   :  { %2542 = vmatpush.msra.mxu0 %v2515_v25  ;;  %2583 = vmatpush.msra.mxu1 %v2371_v36 }
 0x9da   :  { %4229 = vmatpush.xpose.msk.msrb.mxu2 %vm400_vm0, %v2216_v3  ;;  %4235 = vmatpush.xpose.msk.msrb.mxu3 %vm400_vm0, %v2216_v3 }
 0x9db   :  { %2543 = vmatpush.msra.mxu0 %v2514_v30  ;;  %2584 = vmatpush.msra.mxu1 %v2370_v32 }
 0x9dc   :  { %v2183_v41 = vpop.f32.mrf.mxu2 }
 0x9dd   :  { %4258 = vmatpush.xpose.msk.msrb.mxu0 %vm400_vm0, %v2219_v55  ;;  %2957 = vmatpush.msrb.mxu1 %v2930_v61  ;;  %v6319_v6 = vadd.f32 %v4386_v35, %v2183_v41 }
 0x9de   :  { %4248 = vmatpush.xpose.msk.msra.mxu2 %vm400_vm0, %v2219_v55  ;;  %2768 = vmatpush.msra.mxu3 %v2741_v14 }
 0x9df   :  { %4230 = vmatmul.msk.f32.vlgmr.msrb.gmra.mxu2 %vm400_vm0, %v2221_v17  ;;  %4236 = vmatmul.msk.f32.vlgmr.msrb.gmra.mxu3 %vm400_vm0, %v2372_v15  ;;  %v2223_v46 = vmul.f32 %v6319_v6, %v5449_v63  ;;  %v2374_v5 = vmul.f32 %v6319_v6, %v5423_v51  ;;  %v2600_v11 = vmul.f32 %v6319_v6, %v5551_v27 }
 0x9e0   :  { %2769 = vmatpush.msra.mxu3 %v2740_v59  ;;  %2958 = vmatpush.msrb.mxu1 %v2929_v42 }
 0x9e1   :  { %4259 = vmatpush.xpose.msk.msrb.mxu0 %vm400_vm0, %v2216_v3 }
 0x9e2   :  { %4249 = vmatpush.xpose.msk.msra.mxu2 %vm400_vm0, %v2216_v3 }
 0x9e4   :  { %v2186_v0 = vpop.f32.mrf.mxu2 }
 0x9e5   :  { %v6327_v13 = vadd.f32 %v4386_v35, %v2186_v0 }
 0x9e7   :  { %4231 = vmatmul.msk.f32.gmra.mxu2 %vm400_vm0, %v2222_v20  ;;  %4237 = vmatmul.msk.f32.gmra.mxu3 %vm400_vm0, %v2373_v47  ;;  %v2224_v1 = vmul.f32 %v6327_v13, %v5449_v63  ;;  %v2375_v58 = vmul.f32 %v6327_v13, %v5423_v51  ;;  %v2601_v10 = vmul.f32 %v6327_v13, %v5551_v27 }
 0x9ef   :  { %4232 = vmatmul.msk.f32.gmra.mxu2 %vm400_vm0, %v2223_v46  ;;  %4238 = vmatmul.msk.f32.gmra.mxu3 %vm400_vm0, %v2374_v5 }
 0x9f7   :  { %4233 = vmatmul.msk.f32.gmra.mxu2 %vm400_vm0, %v2224_v1  ;;  %4239 = vmatmul.msk.f32.gmra.mxu3 %vm400_vm0, %v2375_v58 }
 0x9ff   :  { %4250 = vmatmul.msk.f32.vlgmr.msra.gmra.mxu2 %vm400_vm0, %v2598_v21 }
 0xa07   :  { %4251 = vmatmul.msk.f32.gmra.mxu2 %vm400_vm0, %v2599_v57 }
 0xa0f   :  { %4252 = vmatmul.msk.f32.gmra.mxu2 %vm400_vm0, %v2600_v11 }
 0xa17   :  { %4253 = vmatmul.msk.f32.gmra.mxu2 %vm400_vm0, %v2601_v10 }
 0xa62   :  { %v2405_v26 = vpop.f32.mrf.mxu3  ;;  %v2260_v33 = vpop.f32.mrf.mxu2 }
 0xa63   :  { %v2406_v54 = vadd.f32 %v2405_v26, %v6348_v23  ;;  %v6376_v20 = vadd.f32 %v2260_v33, %v6348_v23 }
 0xa65   :  { %v2417_v18 = vsel %vm2272_vm8, %v2406_v54, -inf  ;;  %v2273_v58 = vsel %vm2272_vm8, %v6376_v20, -inf }
 0xa66   :  { %2418 = vmax.xlane.f32.xlu0 %v2417_v18 }
 0xa6a   :  { %v2408_v9 = vpop.f32.mrf.mxu3  ;;  %v2263_v24 = vpop.f32.mrf.mxu2 }
 0xa6b   :  { %v2409_v39 = vadd.f32 %v2408_v9, %v6353_v4  ;;  %v6388_v11 = vadd.f32 %v2263_v24, %v6353_v4 }
 0xa6d   :  { %v2420_v28 = vsel %vm2272_vm8, %v2409_v39, -inf  ;;  %v2276_v9 = vsel %vm2272_vm8, %v6388_v11, -inf }
 0xa6e   :  { %2421 = vmax.xlane.f32.xlu1 %v2420_v28 }
 0xa72   :  { %v2411_v16 = vpop.f32.mrf.mxu3  ;;  %v2266_v25 = vpop.f32.mrf.mxu2 }
 0xa73   :  { %v2412_v22 = vadd.f32 %v2411_v16, %v6358_v31 }
 0xa75   :  { %v2423_v50 = vsel %vm2272_vm8, %v2412_v22, -inf }
 0xa76   :  { %2424 = vmax.xlane.f32.xlu2 %v2423_v50 }
 0xa7a   :  { %v2414_v7 = vpop.f32.mrf.mxu3  ;;  %v2269_v61 = vpop.f32.mrf.mxu2 }
 0xa7b   :  { %v2415_v56 = vadd.f32 %v2414_v7, %v6363_v38  ;;  %v6385_v57 = vadd.f32 %v2269_v61, %v6363_v38 }
 0xa7d   :  { %v2426_v43 = vsel %vm2272_vm8, %v2415_v56, -inf  ;;  %v2282_v18 = vsel %vm2272_vm8, %v6385_v57, -inf }
 0xa7e   :  { %2427 = vmax.xlane.f32.xlu0 %v2426_v43 }
 0xa82   :  { %v2631_v5 = vpop.f32.mrf.mxu2 }
 0xa83   :  { %v6402_v28 = vadd.f32 %v2631_v5, %v6348_v23 }
 0xa8a   :  { %v2634_v26 = vpop.f32.mrf.mxu2 }
 0xa8b   :  { %v6409_v7 = vadd.f32 %v2634_v26, %v6353_v4 }
 0xa8d   :  { %v2646_v43 = vsel %vm2272_vm8, %v6409_v7, -inf }
 0xa92   :  { %v2637_v50 = vpop.f32.mrf.mxu2 }
 0xad9   :  { %v2419_v35 = vpop.xlane.xlu0 %2418 }
 0xada   :  { %v2429_v55 = vsub.f32 %v2406_v54, %v2419_v35 }
 0xadc   :  { %v2433_v3 = vmul.f32 1.442695, %v2429_v55 }
 0xade   :  { %4513 = vpow2.f32 %v2433_v3 }
 0xae1   :  { %v2422_v36 = vpop.xlane.xlu1 %2421 }
 0xae2   :  { %v2430_v49 = vsub.f32 %v2409_v39, %v2422_v36  ;;  %v6399_v39 = vadd.f32 %v2266_v25, %v6358_v31 }
 0xae4   :  { %v6367_v30 = vpop.eup %4513  ;;  %v2435_v32 = vmul.f32 1.442695, %v2430_v49  ;;  %v2279_v16 = vsel %vm2272_vm8, %v6399_v39, -inf }
 0xae5   :  { %v2441_v14 = vsel %vm2272_vm8, %v6367_v30, 0.0 }
 0xae6   :  { %4515 = vpow2.f32 %v2435_v32  ;;  %2442 = vadd.xlane.f32.xlu1 %v2441_v14 }
 0xae9   :  { %v2425_v17 = vpop.xlane.xlu2 %2424 }
 0xaea   :  { %v2431_v15 = vsub.f32 %v2412_v22, %v2425_v17  ;;  %v2643_v22 = vsel %vm2272_vm8, %v6402_v28, -inf }
 0xaec   :  { %v6371_v59 = vpop.eup %4515  ;;  %v2437_v42 = vmul.f32 1.442695, %v2431_v15 }
 0xaed   :  { %v2444_v41 = vsel %vm2272_vm8, %v6371_v59, 0.0 }
 0xaee   :  { %4517 = vpow2.f32 %v2437_v42  ;;  %2445 = vadd.xlane.f32.xlu2 %v2444_v41 }
 0xaf1   :  { %v2428_v47 = vpop.xlane.xlu0 %2427 }
 0xaf2   :  { %v2432_v46 = vsub.f32 %v2415_v56, %v2428_v47  ;;  %v6412_v56 = vadd.f32 %v2637_v50, %v6358_v31 }
 0xaf4   :  { %v6378_v0 = vpop.eup %4517  ;;  %v2439_v1 = vmul.f32 1.442695, %v2432_v46  ;;  %v2649_v33 = vsel %vm2272_vm8, %v6412_v56, -inf }
 0xaf5   :  { %v2447_v21 = vsel %vm2272_vm8, %v6378_v0, 0.0 }
 0xaf6   :  { %4519 = vpow2.f32 %v2439_v1  ;;  %2274 = vmax.xlane.f32.xlu2 %v2273_v58  ;;  %2448 = vadd.xlane.f32.xlu0 %v2447_v21 }
 0xafc   :  { %v6390_v10 = vpop.eup %4519 }
 0xafd   :  { %v2450_v54 = vsel %vm2272_vm8, %v6390_v10, 0.0 }
 0xafe   :  { %2451 = vadd.xlane.f32.xlu1 %v2450_v54  ;;  %2283 = vmax.xlane.f32.xlu2 %v2282_v18 }
 0xaff   :  { %2277 = vmax.xlane.f32.xlu0 %v2276_v9 }
 0xb06   :  { %2280 = vmax.xlane.f32.xlu1 %v2279_v16 }
 0xb07   :  { %2644 = vmax.xlane.f32.xlu0 %v2643_v22 }
 0xb0e   :  { %2647 = vmax.xlane.f32.xlu1 %v2646_v43 }
 0xb0f   :  { %2650 = vmax.xlane.f32.xlu0 %v2649_v33 }
 0xb59   :  { %v2443_v24 = vpop.xlane.xlu1 %2442 }
 0xb5a   :  { %4521 = vrcp.f32 %v2443_v24  ;;  %v2464_v36 = vand.u32 2147483648, %v2443_v24  ;;  %v2462_v32 = vand.u32 2147483647, %v2443_v24  ;;  %vm2458_vm10 = vweird.f32 %v2443_v24 }
 0xb5c   :  { %v2465_v17 = vor.u32 1.1754944e-38, %v2464_v36  ;;  %vm2463_vm12 = vcmp.eq.f32.partialorder %v2462_v32, 8.507059e+37 }
 0xb60   :  { %v4522_v35 = vpop.eup %4521 }
 0xb61   :  { %v2454_v55 = vmul.f32 %v4522_v35, %v2443_v24  ;;  %v2446_v3 = vpop.xlane.xlu2 %2445  ;;  %vm2459_vm9 = vweird.f32 %v4522_v35 }
 0xb62   :  { %4523 = vrcp.f32 %v2446_v3  ;;  %vm2460_vm11 = vmor %vm2458_vm10, %vm2459_vm9  ;;  %v2479_v58 = vand.u32 2147483648, %v2446_v3  ;;  %v2477_v21 = vand.u32 2147483647, %v2446_v3  ;;  %vm2473_vm1 = vweird.f32 %v2446_v3 }
 0xb63   :  { %v2455_v25 = vsub.f32 1.0, %v2454_v55 }
 0xb64   :  { %v2480_v18 = vor.u32 1.1754944e-38, %v2479_v58  ;;  %vm2478_vm15 = vcmp.eq.f32.partialorder %v2477_v21, 8.507059e+37  ;;  %v2789_v58 = vmul.f32 %v6319_v6, %v5571_v34 }
 0xb65   :  { %v2456_v49 = vmul.f32 %v4522_v35, %v2455_v25 }
 0xb67   :  { %v2457_v14 = vadd.f32 %v4522_v35, %v2456_v49 }
 0xb68   :  { %v4524_v61 = vpop.eup %4523 }
 0xb69   :  { %v2461_v15 = vsel %vm2460_vm11, %v4522_v35, %v2457_v14  ;;  %v2469_v42 = vmul.f32 %v4524_v61, %v2446_v3  ;;  %v2449_v41 = vpop.xlane.xlu0 %2448  ;;  %vm2474_vm13 = vweird.f32 %v4524_v61 }
 0xb6a   :  { %v2466_v47 = vsel %vm2463_vm12, %v2465_v17, %v2461_v15  ;;  %4525 = vrcp.f32 %v2449_v41  ;;  %vm2475_vm14 = vmor %vm2473_vm1, %vm2474_vm13  ;;  %v2494_v33 = vand.u32 2147483648, %v2449_v41  ;;  %v2492_v35 = vand.u32 2147483647, %v2449_v41 }
 0xb6b   :  { %v2470_v46 = vsub.f32 1.0, %v2469_v42  ;;  %v2467_v5 = vmul.f32 %v6367_v30, %v2466_v47  ;;  %vm2488_vm4 = vweird.f32 %v2449_v41 }
 0xb6c   :  { %v2495_v25 = vor.u32 1.1754944e-38, %v2494_v33  ;;  %vm2493_vm6 = vcmp.eq.f32.partialorder %v2492_v35, 8.507059e+37 }
 0xb6d   :  { %v2471_v1 = vmul.f32 %v4524_v61, %v2470_v46  ;;  %4240 = vmatmul.msk.f32.vlgmr.msra.gmra.mxu0 %vm2272_vm8, %v2467_v5 }
 0xb6f   :  { %v2472_v26 = vadd.f32 %v4524_v61, %v2471_v1  ;;  %v2788_v1 = vmul.f32 %v6309_v60, %v5571_v34  ;;  %v2275_v60 = vpop.xlane.xlu2 %2274 }
 0xb70   :  { %v4526_v54 = vpop.eup %4525  ;;  %v2285_v6 = vsub.f32 %v6376_v20, %v2275_v60 }
 0xb71   :  { %v2484_v9 = vmul.f32 %v4526_v54, %v2449_v41  ;;  %v2452_v16 = vpop.xlane.xlu1 %2451  ;;  %v2476_v22 = vsel %vm2475_vm14, %v4524_v61, %v2472_v26  ;;  %vm2489_vm2 = vweird.f32 %v4526_v54 }
 0xb72   :  { %4527 = vrcp.f32 %v2452_v16  ;;  %v2481_v43 = vsel %vm2478_vm15, %v2480_v18, %v2476_v22  ;;  %vm2490_vm5 = vmor %vm2488_vm4, %vm2489_vm2  ;;  %v2509_v17 = vand.u32 2147483648, %v2452_v16  ;;  %vm2503_vm9 = vweird.f32 %v2452_v16  ;;  %v2640_v22 = vpop.f32.mrf.mxu2 }
 0xb73   :  { %v2485_v50 = vsub.f32 1.0, %v2484_v9  ;;  %v2482_v30 = vmul.f32 %v6371_v59, %v2481_v43  ;;  %v2507_v59 = vand.u32 2147483647, %v2452_v16  ;;  %v6453_v33 = vadd.f32 %v2640_v22, %v6363_v38 }
 0xb74   :  { %v2510_v41 = vor.u32 1.1754944e-38, %v2509_v17 }
 0xb75   :  { %v2486_v24 = vmul.f32 %v4526_v54, %v2485_v50  ;;  %4241 = vmatmul.msk.f32.gmra.mxu0 %vm2272_vm8, %v2482_v30  ;;  %vm2508_vm11 = vcmp.eq.f32.partialorder %v2507_v59, 8.507059e+37  ;;  %v2289_v50 = vmul.f32 1.442695, %v2285_v6 }
 0xb77   :  { %v2487_v55 = vadd.f32 %v4526_v54, %v2486_v24  ;;  %4529 = vpow2.f32 %v2289_v50 }
 0xb78   :  { %v4528_v3 = vpop.eup %4527 }
 0xb79   :  { %v2499_v36 = vmul.f32 %v4528_v3, %v2452_v16  ;;  %v2491_v49 = vsel %vm2490_vm5, %v4526_v54, %v2487_v55  ;;  %vm2504_vm7 = vweird.f32 %v4528_v3  ;;  %v2278_v16 = vpop.xlane.xlu0 %2277  ;;  %v2281_v43 = vpop.xlane.xlu1 %2280  ;;  %v2652_v55 = vsel %vm2272_vm8, %v6453_v33, -inf }
 0xb7a   :  { %v2496_v32 = vsel %vm2493_vm6, %v2495_v25, %v2491_v49  ;;  %vm2505_vm10 = vmor %vm2503_vm9, %vm2504_vm7  ;;  %v2287_v20 = vsub.f32 %v6399_v39, %v2281_v43 }
 0xb7b   :  { %v2500_v14 = vsub.f32 1.0, %v2499_v36  ;;  %v2497_v61 = vmul.f32 %v6378_v0, %v2496_v32  ;;  %v2787_v0 = vmul.f32 %v6287_v53, %v5571_v34  ;;  %v2284_v36 = vpop.xlane.xlu2 %2283 }
 0xb7c   :  { %v2293_v49 = vmul.f32 1.442695, %v2287_v20 }
 0xb7d   :  { %v2501_v15 = vmul.f32 %v4528_v3, %v2500_v14  ;;  %4242 = vmatmul.msk.f32.gmra.mxu0 %vm2272_vm8, %v2497_v61  ;;  %v6464_v32 = vpop.eup %4529 }
 0xb7e   :  { %v2297_v59 = vsel %vm2272_vm8, %v6464_v32, 0.0 }
 0xb7f   :  { %v2502_v42 = vadd.f32 %v4528_v3, %v2501_v15 }
 0xb81   :  { %v2506_v47 = vsel %vm2505_vm10, %v4528_v3, %v2502_v42  ;;  %v2645_v3 = vpop.xlane.xlu0 %2644 }
 0xb82   :  { %v2511_v46 = vsel %vm2508_vm11, %v2510_v41, %v2506_v47  ;;  %v2655_v61 = vsub.f32 %v6402_v28, %v2645_v3 }
 0xb83   :  { %v2512_v5 = vmul.f32 %v6390_v10, %v2511_v46  ;;  %v2790_v10 = vmul.f32 %v6327_v13, %v5571_v34 }
 0xb84   :  { %v2659_v41 = vmul.f32 1.442695, %v2655_v61 }
 0xb85   :  { %4243 = vmatmul.msk.f32.gmra.mxu0 %vm2272_vm8, %v2512_v5 }
 0xb89   :  { %v2651_v46 = vpop.xlane.xlu0 %2650 }
 0xb8d   :  { %4260 = vmatmul.msk.f32.vlgmr.msrb.gmra.mxu0 %vm400_vm0, %v2787_v0 }
 0xb95   :  { %4261 = vmatmul.msk.f32.gmra.mxu0 %vm400_vm0, %v2788_v1 }
 0xb9d   :  { %4262 = vmatmul.msk.f32.gmra.mxu0 %vm400_vm0, %v2789_v58 }
 0xba5   :  { %4263 = vmatmul.msk.f32.gmra.mxu0 %vm400_vm0, %v2790_v10 }
 0xbea   :  { %v6438_v21 = vpop.f32.mrf.mxu0 }
 0xbf2   :  { %v6440_v53 = vpop.f32.mrf.mxu0 }
 0xbfa   :  { %v6442_v26 = vpop.f32.mrf.mxu0 }
 0xc02   :  { %v6444_v54 = vpop.f32.mrf.mxu0 }
 0xc0a   :  { %v2820_v18 = vpop.f32.mrf.mxu0 }
 0xc0b   :  { %v6447_v9 = vadd.f32 %v2820_v18, %v6348_v23  ;;  %v2286_v23 = vsub.f32 %v6388_v11, %v2278_v16  ;;  %v2288_v11 = vsub.f32 %v6385_v57, %v2284_v36 }
 0xc0d   :  { %v2832_v13 = vsel %vm2272_vm8, %v6447_v9, -inf  ;;  %v2291_v25 = vmul.f32 1.442695, %v2286_v23  ;;  %v2295_v42 = vmul.f32 1.442695, %v2288_v11 }
 0xc0e   :  { %2833 = vmax.xlane.f32.xlu2 %v2832_v13 }
 0xc0f   :  { %4531 = vpow2.f32 %v2291_v25 }
 0xc10   :  { %4533 = vpow2.f32 %v2293_v49 }
 0xc11   :  { %4535 = vpow2.f32 %v2295_v42 }
 0xc12   :  { %v2823_v30 = vpop.f32.mrf.mxu0  ;;  %4537 = vpow2.f32 %v2659_v41 }
 0xc13   :  { %v6456_v24 = vadd.f32 %v2823_v30, %v6353_v4  ;;  %v2648_v4 = vpop.xlane.xlu1 %2647 }
 0xc14   :  { %v2656_v17 = vsub.f32 %v6409_v7, %v2648_v4  ;;  %v2657_v7 = vsub.f32 %v6412_v56, %v2651_v46 }
 0xc15   :  { %v2835_v35 = vsel %vm2272_vm8, %v6456_v24, -inf  ;;  %v6473_v57 = vpop.eup %4531 }
 0xc16   :  { %2836 = vmax.xlane.f32.xlu1 %v2835_v35  ;;  %2653 = vmax.xlane.f32.xlu2 %v2652_v55  ;;  %v2661_v47 = vmul.f32 1.442695, %v2656_v17  ;;  %v6475_v5 = vpop.eup %4533  ;;  %v2300_v0 = vsel %vm2272_vm8, %v6473_v57, 0.0  ;;  %v2663_v10 = vmul.f32 1.442695, %v2657_v7 }
 0xc17   :  { %v2303_v58 = vsel %vm2272_vm8, %v6475_v5, 0.0  ;;  %v6487_v60 = vpop.eup %4535 }
 0xc18   :  { %4539 = vpow2.f32 %v2661_v47  ;;  %v2306_v6 = vsel %vm2272_vm8, %v6487_v60, 0.0 }
 0xc19   :  { %4541 = vpow2.f32 %v2663_v10 }
 0xc1a   :  { %v2826_v14 = vpop.f32.mrf.mxu0 }
 0xc1b   :  { %v2827_v39 = vadd.f32 %v2826_v14, %v6358_v31 }
 0xc1d   :  { %v2838_v15 = vsel %vm2272_vm8, %v2827_v39, -inf }
 0xc1e   :  { %2839 = vmax.xlane.f32.xlu0 %v2838_v15  ;;  %2298 = vadd.xlane.f32.xlu1 %v2297_v59 }
 0xc22   :  { %v2829_v31 = vpop.f32.mrf.mxu0 }
 0xc23   :  { %v6478_v28 = vadd.f32 %v2829_v31, %v6363_v38  ;;  %v6489_v38 = vpop.eup %4537 }
 0xc24   :  { %v6491_v18 = vpop.eup %4539  ;;  %v2667_v56 = vsel %vm2272_vm8, %v6489_v38, 0.0 }
 0xc25   :  { %v2841_v1 = vsel %vm2272_vm8, %v6478_v28, -inf  ;;  %v2670_v16 = vsel %vm2272_vm8, %v6491_v18, 0.0  ;;  %v6499_v13 = vpop.eup %4541 }
 0xc26   :  { %2301 = vadd.xlane.f32.xlu0 %v2300_v0  ;;  %2842 = vmax.xlane.f32.xlu2 %v2841_v1  ;;  %v2673_v22 = vsel %vm2272_vm8, %v6499_v13, 0.0 }
 0xc27   :  { %2304 = vadd.xlane.f32.xlu1 %v2303_v58 }
 0xc2e   :  { %2668 = vadd.xlane.f32.xlu0 %v2667_v56  ;;  %2307 = vadd.xlane.f32.xlu2 %v2306_v6 }
 0xc2f   :  { %2671 = vadd.xlane.f32.xlu1 %v2670_v16 }
 0xc36   :  { %2674 = vadd.xlane.f32.xlu0 %v2673_v22 }
 0xc81   :  { %v2834_v50 = vpop.xlane.xlu2 %2833 }
 0xc82   :  { %v2844_v43 = vsub.f32 %v6447_v9, %v2834_v50 }
 0xc84   :  { %v2848_v30 = vmul.f32 1.442695, %v2844_v43 }
 0xc86   :  { %4543 = vpow2.f32 %v2848_v30 }
 0xc89   :  { %v2837_v23 = vpop.xlane.xlu1 %2836  ;;  %v2654_v20 = vpop.xlane.xlu2 %2653 }
 0xc8a   :  { %v2845_v35 = vsub.f32 %v6456_v24, %v2837_v23  ;;  %v2658_v55 = vsub.f32 %v6453_v33, %v2654_v20 }
 0xc8c   :  { %v6506_v3 = vpop.eup %4543  ;;  %v2850_v25 = vmul.f32 1.442695, %v2845_v35  ;;  %v2665_v36 = vmul.f32 1.442695, %v2658_v55 }
 0xc8d   :  { %v2856_v49 = vsel %vm2272_vm8, %v6506_v3, 0.0 }
 0xc8e   :  { %4545 = vpow2.f32 %v2850_v25  ;;  %2857 = vadd.xlane.f32.xlu2 %v2856_v49 }
 0xc8f   :  { %4547 = vpow2.f32 %v2665_v36 }
 0xc91   :  { %v2840_v4 = vpop.xlane.xlu0 %2839  ;;  %v2299_v9 = vpop.xlane.xlu1 %2298 }
 0xc92   :  { %v2846_v14 = vsub.f32 %v2827_v39, %v2840_v4  ;;  %4549 = vrcp.f32 %v2299_v9  ;;  %v2320_v10 = vand.u32 2147483648, %v2299_v9  ;;  %vm2314_vm13 = vweird.f32 %v2299_v9 }
 0xc93   :  { %v2318_v6 = vand.u32 2147483647, %v2299_v9 }
 0xc94   :  { %v6510_v11 = vpop.eup %4545  ;;  %v2852_v61 = vmul.f32 1.442695, %v2846_v14  ;;  %v2321_v23 = vor.u32 1.1754944e-38, %v2320_v10 }
 0xc95   :  { %v6512_v24 = vpop.eup %4547  ;;  %v2859_v33 = vsel %vm2272_vm8, %v6510_v11, 0.0  ;;  %vm2319_vm14 = vcmp.eq.f32.partialorder %v2318_v6, 8.507059e+37 }
 0xc96   :  { %4551 = vpow2.f32 %v2852_v61  ;;  %2860 = vadd.xlane.f32.xlu1 %v2859_v33  ;;  %v2676_v17 = vsel %vm2272_vm8, %v6512_v24, 0.0 }
 0xc97   :  { %2677 = vadd.xlane.f32.xlu2 %v2676_v17 }
 0xc98   :  { %v4550_v15 = vpop.eup %4549 }
 0xc99   :  { %v2310_v59 = vmul.f32 %v4550_v15, %v2299_v9  ;;  %v2302_v42 = vpop.xlane.xlu0 %2301  ;;  %v2843_v41 = vpop.xlane.xlu2 %2842  ;;  %vm2315_vm12 = vweird.f32 %v4550_v15 }
 0xc9a   :  { %4553 = vrcp.f32 %v2302_v42  ;;  %v6518_v39 = vpop.xlane.xlu1 %2304  ;;  %v2847_v31 = vsub.f32 %v6478_v28, %v2843_v41  ;;  %vm2316_vm1 = vmor %vm2314_vm13, %vm2315_vm12  ;;  %v2335_v49 = vand.u32 2147483648, %v2302_v42  ;;  %v2333_v14 = vand.u32 2147483647, %v2302_v42 }
 0xc9b   :  { %v2311_v47 = vsub.f32 1.0, %v2310_v59  ;;  %4555 = vrcp.f32 %v6518_v39  ;;  %vm2329_vm2 = vweird.f32 %v2302_v42  ;;  %vm2344_vm7 = vweird.f32 %v6518_v39 }
 0xc9c   :  { %v6521_v46 = vpop.eup %4551  ;;  %v2854_v1 = vmul.f32 1.442695, %v2847_v31  ;;  %vm2334_vm5 = vcmp.eq.f32.partialorder %v2333_v14, 8.507059e+37 }
 0xc9d   :  { %v2312_v7 = vmul.f32 %v4550_v15, %v2311_v47  ;;  %v2862_v0 = vsel %vm2272_vm8, %v6521_v46, 0.0  ;;  %v2336_v47 = vor.u32 1.1754944e-38, %v2335_v49  ;;  %v4641_v49 = vld [vmem:[#allocation11 + $0x8] sm:$0xff] }
 0xc9e   :  { %2863 = vadd.xlane.f32.xlu0 %v2862_v0  ;;  %4557 = vpow2.f32 %v2854_v1  ;;  %v2350_v1 = vand.u32 2147483648, %v6518_v39 }
 0xc9f   :  { %v2313_v58 = vadd.f32 %v4550_v15, %v2312_v7 }
 0xca0   :  { %v4554_v56 = vpop.eup %4553  ;;  %v2351_v14 = vor.u32 1.1754944e-38, %v2350_v1 }
 0xca1   :  { %v6526_v16 = vpop.eup %4555  ;;  %v2325_v22 = vmul.f32 %v4554_v56, %v2302_v42  ;;  %v6528_v50 = vpop.xlane.xlu0 %2668  ;;  %v2317_v28 = vsel %vm2316_vm1, %v4550_v15, %v2313_v58  ;;  %vm2330_vm15 = vweird.f32 %v4554_v56 }
 0xca2   :  { %v2340_v43 = vmul.f32 %v6526_v16, %v6518_v39  ;;  %4559 = vrcp.f32 %v6528_v50  ;;  %v6533_v30 = vpop.xlane.xlu1 %2671  ;;  %v6535_v35 = vpop.xlane.xlu2 %2307  ;;  %v2322_v55 = vsel %vm2319_vm14, %v2321_v23, %v2317_v28  ;;  %vm2331_vm4 = vmor %vm2329_vm2, %vm2330_vm15  ;;  %v2688_v58 = vand.u32 2147483647, %v6528_v50  ;;  %v4640_v23 = vld [vmem:[#allocation11 + $0x10] sm:$0xff] }
 0xca3   :  { %v2326_v20 = vsub.f32 1.0, %v2325_v22  ;;  %4561 = vrcp.f32 %v6533_v30  ;;  %v2323_v33 = vmul.f32 %v6464_v32, %v2322_v55  ;;  %v2690_v10 = vand.u32 2147483648, %v6528_v50 }
 0xca4   :  { %v6538_v36 = vpop.eup %4557  ;;  %v2341_v4 = vsub.f32 1.0, %v2340_v43  ;;  %4563 = vrcp.f32 %v6535_v35  ;;  %vm2345_vm9 = vweird.f32 %v6526_v16  ;;  %vm2684_vm10 = vweird.f32 %v6528_v50 }
 0xca5   :  { %v2327_v25 = vmul.f32 %v4554_v56, %v2326_v20  ;;  %v2865_v17 = vsel %vm2272_vm8, %v6538_v36, 0.0  ;;  %4244 = vmatmul.msk.f32.vlgmr.msra.gmra.mxu1 %vm2272_vm8, %v2323_v33  ;;  %vm2689_vm12 = vcmp.eq.f32.partialorder %v2688_v58, 8.507059e+37  ;;  %v2691_v33 = vor.u32 1.1754944e-38, %v2690_v10  ;;  %vm6572_vm13 = vmor %vm2344_vm7, %vm2345_vm9 }
 0xca6   :  { %2866 = vadd.xlane.f32.xlu1 %v2865_v17  ;;  %v2342_v31 = vmul.f32 %v6526_v16, %v2341_v4  ;;  %3328 = vmatpush.msra.mxu1 %v6210_v44  ;;  %vm2699_vm14 = vweird.f32 %v6533_v30 }
 0xca7   :  { %v2328_v9 = vadd.f32 %v4554_v56, %v2327_v25 }
 0xca8   :  { %v4560_v61 = vpop.eup %4559  ;;  %3329 = vmatpush.msra.mxu1 %v4640_v23 }
 0xca9   :  { %v2680_v15 = vmul.f32 %v4560_v61, %v6528_v50  ;;  %v6545_v59 = vpop.xlane.xlu0 %2674  ;;  %v6547_v41 = vpop.eup %4561  ;;  %v2332_v7 = vsel %vm2331_vm4, %v4554_v56, %v2328_v9  ;;  %vm2685_vm6 = vweird.f32 %v4560_v61  ;;  %v2343_v56 = vadd.f32 %v6526_v16, %v2342_v31 }
 0xcaa   :  { %4565 = vrcp.f32 %v6545_v59  ;;  %v2695_v42 = vmul.f32 %v6547_v41, %v6533_v30  ;;  %v6555_v0 = vpop.eup %4563  ;;  %v2337_v6 = vsel %vm2334_vm5, %v2336_v47, %v2332_v7  ;;  %3330 = vmatpush.msra.mxu1 %v4641_v49  ;;  %v2348_v9 = vand.u32 2147483647, %v6518_v39  ;;  %vm2686_vm11 = vmor %vm2684_vm10, %vm2685_vm6  ;;  %v4642_v47 = vld [vmem:[#allocation11] sm:$0xff] }
 0xcab   :  { %v2681_v32 = vsub.f32 1.0, %v2680_v15  ;;  %v2355_v43 = vmul.f32 %v6555_v0, %v6535_v35  ;;  %v2338_v44 = vmul.f32 %v6473_v57, %v2337_v6  ;;  %vm2700_vm1 = vweird.f32 %v6547_v41 }
 0xcac   :  { %v2696_v28 = vsub.f32 1.0, %v2695_v42  ;;  %3331 = vmatpush.msra.mxu1 %v4642_v47  ;;  %v2347_v39 = vsel %vm6572_vm13, %v6526_v16, %v2343_v56  ;;  %v2703_v7 = vand.u32 2147483647, %v6533_v30  ;;  %vm2349_vm15 = vcmp.eq.f32.partialorder %v2348_v9, 8.507059e+37  ;;  %vm2701_vm2 = vmor %vm2699_vm14, %vm2700_vm1 }
 0xcad   :  { %v2682_v22 = vmul.f32 %v4560_v61, %v2681_v32  ;;  %v2356_v25 = vsub.f32 1.0, %v2355_v43  ;;  %v2705_v32 = vand.u32 2147483648, %v6533_v30  ;;  %4245 = vmatmul.msk.f32.gmra.mxu1 %vm2272_vm8, %v2338_v44  ;;  %v2352_v10 = vsel %vm2349_vm15, %v2351_v14, %v2347_v39 }
 0xcae   :  { %v2697_v55 = vmul.f32 %v6547_v41, %v2696_v28  ;;  %vm2360_vm4 = vweird.f32 %v6555_v0  ;;  %vm2704_vm5 = vcmp.eq.f32.partialorder %v2703_v7, 8.507059e+37  ;;  %vm2359_vm6 = vweird.f32 %v6535_v35 }
 0xcaf   :  { %v2683_v20 = vadd.f32 %v4560_v61, %v2682_v22  ;;  %v2357_v42 = vmul.f32 %v6555_v0, %v2356_v25  ;;  %v2706_v22 = vor.u32 1.1754944e-38, %v2705_v32  ;;  %v2363_v16 = vand.u32 2147483647, %v6535_v35  ;;  %vm2361_vm7 = vmor %vm2359_vm6, %vm2360_vm4 }
 0xcb0   :  { %v4566_v4 = vpop.eup %4565  ;;  %v2698_v17 = vadd.f32 %v6547_v41, %v2697_v55  ;;  %v2353_v30 = vmul.f32 %v6475_v5, %v2352_v10  ;;  %vm2714_vm10 = vweird.f32 %v6545_v59 }
 0xcb1   :  { %v2687_v50 = vsel %vm2686_vm11, %v4560_v61, %v2683_v20  ;;  %v2710_v15 = vmul.f32 %v4566_v4, %v6545_v59  ;;  %v2358_v28 = vadd.f32 %v6555_v0, %v2357_v42  ;;  %vm2715_vm9 = vweird.f32 %v4566_v4 }
 0xcb2   :  { %v2692_v31 = vsel %vm2689_vm12, %v2691_v33, %v2687_v50  ;;  %v2702_v6 = vsel %vm2701_vm2, %v6547_v41, %v2698_v17  ;;  %v2720_v41 = vand.u32 2147483648, %v6545_v59  ;;  %v2718_v20 = vand.u32 2147483647, %v6545_v59  ;;  %vm2716_vm12 = vmor %vm2714_vm10, %vm2715_vm9 }
 0xcb3   :  { %v2693_v61 = vmul.f32 %v6489_v38, %v2692_v31  ;;  %v2711_v1 = vsub.f32 1.0, %v2710_v15  ;;  %v2365_v38 = vand.u32 2147483648, %v6535_v35  ;;  %v2707_v43 = vsel %vm2704_vm5, %v2706_v22, %v2702_v6 }
 0xcb4   :  { %v2362_v56 = vsel %vm2361_vm7, %v6555_v0, %v2358_v28  ;;  %v2708_v55 = vmul.f32 %v6491_v18, %v2707_v43  ;;  %vm2364_vm11 = vcmp.eq.f32.partialorder %v2363_v16, 8.507059e+37  ;;  %v2721_v25 = vor.u32 1.1754944e-38, %v2720_v41  ;;  %v4643_v43 = vld [vmem:[#allocation13 + $0x18] sm:$0xff] }
 0xcb5   :  { %v2712_v58 = vmul.f32 %v4566_v4, %v2711_v1  ;;  %4254 = vmatmul.msk.f32.vlgmr.msra.gmra.mxu3 %vm2272_vm8, %v2693_v61  ;;  %4246 = vmatmul.msk.f32.gmra.mxu1 %vm2272_vm8, %v2353_v30  ;;  %v2366_v44 = vor.u32 1.1754944e-38, %v2365_v38  ;;  %vm2719_vm13 = vcmp.eq.f32.partialorder %v2718_v20, 8.507059e+37 }
 0xcb7   :  { %v2713_v23 = vadd.f32 %v4566_v4, %v2712_v58  ;;  %v2367_v5 = vsel %vm2364_vm11, %v2366_v44, %v2362_v56  ;;  %v4644_v44 = vld [vmem:[#allocation13 + $0x10] sm:$0xff] }
 0xcb8   :  { %v2368_v49 = vmul.f32 %v6487_v60, %v2367_v5 }
 0xcb9   :  { %v2717_v35 = vsel %vm2716_vm12, %v4566_v4, %v2713_v23 }
 0xcba   :  { %v2722_v9 = vsel %vm2719_vm13, %v2721_v25, %v2717_v35 }
 0xcbb   :  { %v2723_v0 = vmul.f32 %v6499_v13, %v2722_v9 }
 0xcbd   :  { %4255 = vmatmul.msk.f32.gmra.mxu3 %vm2272_vm8, %v2708_v55  ;;  %4247 = vmatmul.msk.f32.gmra.mxu1 %vm2272_vm8, %v2368_v49  ;;  %v4645_v49 = vld [vmem:[#allocation13 + $0x8] sm:$0xff] }
 0xcc5   :  { %4256 = vmatmul.msk.f32.gmra.mxu3 %vm2272_vm8, %v2723_v0 }
 0xd01   :  { %v2858_v59 = vpop.xlane.xlu2 %2857 }
 0xd02   :  { %4567 = vrcp.f32 %v2858_v59  ;;  %v2879_v4 = vand.u32 2147483648, %v2858_v59  ;;  %v2877_v60 = vand.u32 2147483647, %v2858_v59  ;;  %vm2873_vm14 = vweird.f32 %v2858_v59 }
 0xd04   :  { %v2880_v13 = vor.u32 1.1754944e-38, %v2879_v4  ;;  %vm2878_vm2 = vcmp.eq.f32.partialorder %v2877_v60, 8.507059e+37 }
 0xd08   :  { %v4568_v18 = vpop.eup %4567 }
 0xd09   :  { %v2869_v14 = vmul.f32 %v4568_v18, %v2858_v59  ;;  %v2861_v33 = vpop.xlane.xlu1 %2860  ;;  %vm2874_vm1 = vweird.f32 %v4568_v18 }
 0xd0a   :  { %4569 = vrcp.f32 %v2861_v33  ;;  %v2678_v57 = vpop.xlane.xlu2 %2677  ;;  %vm2875_vm15 = vmor %vm2873_vm14, %vm2874_vm1  ;;  %v2894_v10 = vand.u32 2147483648, %v2861_v33  ;;  %v2892_v28 = vand.u32 2147483647, %v2861_v33  ;;  %vm2888_vm6 = vweird.f32 %v2861_v33 }
 0xd0b   :  { %v2870_v50 = vsub.f32 1.0, %v2869_v14  ;;  %4571 = vrcp.f32 %v2678_v57  ;;  %v2735_v38 = vand.u32 2147483648, %v2678_v57  ;;  %v2733_v30 = vand.u32 2147483647, %v2678_v57 }
 0xd0c   :  { %v2895_v56 = vor.u32 1.1754944e-38, %v2894_v10  ;;  %vm2729_vm9 = vweird.f32 %v2678_v57  ;;  %vm2893_vm10 = vcmp.eq.f32.partialorder %v2892_v28, 8.507059e+37 }
 0xd0d   :  { %v2871_v17 = vmul.f32 %v4568_v18, %v2870_v50  ;;  %v2736_v20 = vor.u32 1.1754944e-38, %v2735_v38  ;;  %vm2734_vm12 = vcmp.eq.f32.partialorder %v2733_v30, 8.507059e+37  ;;  %v6632_v38 = vld [vmem:[%s7112_s22 + $0x18] sm:$0xff]  ;;  %v6646_v30 = vld [vmem:[%s7112_s22 + $0x8] sm:$0xff] }
 0xd0f   :  { %v2872_v15 = vadd.f32 %v4568_v18, %v2871_v17 }
 0xd10   :  { %v4570_v47 = vpop.eup %4569 }
 0xd11   :  { %v4572_v31 = vpop.eup %4571  ;;  %v2876_v32 = vsel %vm2875_vm15, %v4568_v18, %v2872_v15  ;;  %v2884_v42 = vmul.f32 %v4570_v47, %v2861_v33  ;;  %v2864_v39 = vpop.xlane.xlu0 %2863  ;;  %vm2889_vm4 = vweird.f32 %v4570_v47 }
 0xd12   :  { %v2881_v61 = vsel %vm2878_vm2, %v2880_v13, %v2876_v32  ;;  %v2725_v7 = vmul.f32 %v4572_v31, %v2678_v57  ;;  %4573 = vrcp.f32 %v2864_v39  ;;  %vm2730_vm5 = vweird.f32 %v4572_v31  ;;  %vm2890_vm7 = vmor %vm2888_vm6, %vm2889_vm4  ;;  %v4646_v57 = vld [vmem:[#allocation13] sm:$0xff] }
 0xd13   :  { %v2882_v1 = vmul.f32 %v6506_v3, %v2881_v61  ;;  %v2885_v58 = vsub.f32 1.0, %v2884_v42  ;;  %vm2731_vm11 = vmor %vm2729_vm9, %vm2730_vm5  ;;  %v2909_v18 = vand.u32 2147483648, %v2864_v39  ;;  %v2907_v4 = vand.u32 2147483647, %v2864_v39 }
 0xd14   :  { %v2726_v6 = vsub.f32 1.0, %v2725_v7  ;;  %vm2903_vm1 = vweird.f32 %v2864_v39  ;;  %v6619_v7 = vld [vmem:[%s7112_s22 + $0x30] sm:$0xff] }
 0xd15   :  { %v2886_v22 = vmul.f32 %v4570_v47, %v2885_v58  ;;  %4264 = vmatmul.msk.f32.vlgmr.msrb.gmra.mxu1 %vm2272_vm8, %v2882_v1  ;;  %vm2908_vm15 = vcmp.eq.f32.partialorder %v2907_v4, 8.507059e+37  ;;  %v6623_v58 = vld [vmem:[%s7112_s22 + $0x28] sm:$0xff] }
 0xd16   :  { %v2727_v16 = vmul.f32 %v4572_v31, %v2726_v6  ;;  %3363 = vmatpush.msrb.mxu1 %v4643_v43  ;;  %v6649_v43 = vld [vmem:[%s7112_s22] sm:$0xff] }
 0xd17   :  { %v2887_v23 = vadd.f32 %v4570_v47, %v2886_v22  ;;  %v6627_v22 = vld [vmem:[%s7112_s22 + $0x20] sm:$0xff] }
 0xd18   :  { %v4574_v41 = vpop.eup %4573  ;;  %v2728_v3 = vadd.f32 %v4572_v31, %v2727_v16  ;;  %3364 = vmatpush.msrb.mxu1 %v4644_v44  ;;  %v6637_v16 = vld [vmem:[%s7112_s22 + $0x10] sm:$0xff] }
 0xd19   :  { %v2899_v55 = vmul.f32 %v4574_v41, %v2864_v39  ;;  %v2891_v5 = vsel %vm2890_vm7, %v4570_v47, %v2887_v23  ;;  %v2867_v14 = vpop.xlane.xlu1 %2866  ;;  %vm2904_vm13 = vweird.f32 %v4574_v41  ;;  %v6616_v39 = vld [vmem:[%s7112_s22 + $0x38] sm:$0xff] }
 0xd1a   :  { %v2732_v35 = vsel %vm2731_vm11, %v4572_v31, %v2728_v3  ;;  %v2896_v25 = vsel %vm2893_vm10, %v2895_v56, %v2891_v5  ;;  %3365 = vmatpush.msrb.mxu1 %v4645_v49  ;;  %4575 = vrcp.f32 %v2867_v14  ;;  %vm2905_vm14 = vmor %vm2903_vm1, %vm2904_vm13  ;;  %v2924_v32 = vand.u32 2147483648, %v2867_v14  ;;  %2999 = vmatpush.msrb.mxu2 %v6616_v39 }
 0xd1b   :  { %v2900_v9 = vsub.f32 1.0, %v2899_v55  ;;  %v2737_v0 = vsel %vm2734_vm12, %v2736_v20, %v2732_v35  ;;  %v2897_v59 = vmul.f32 %v6510_v11, %v2896_v25  ;;  %v2910_v11 = vor.u32 1.1754944e-38, %v2909_v18 }
 0xd1c   :  { %v2738_v33 = vmul.f32 %v6512_v24, %v2737_v0  ;;  %3366 = vmatpush.msrb.mxu1 %v4646_v57  ;;  %v2922_v61 = vand.u32 2147483647, %v2867_v14  ;;  %vm2918_vm4 = vweird.f32 %v2867_v14  ;;  %3000 = vmatpush.msrb.mxu2 %v6619_v7 }
 0xd1d   :  { %v2901_v50 = vmul.f32 %v4574_v41, %v2900_v9  ;;  %4265 = vmatmul.msk.f32.gmra.mxu1 %vm2272_vm8, %v2897_v59 }
 0xd1e   :  { %4257 = vmatmul.msk.f32.gmra.mxu3 %vm2272_vm8, %v2738_v33  ;;  %vm2923_vm6 = vcmp.eq.f32.partialorder %v2922_v61, 8.507059e+37  ;;  %3001 = vmatpush.msrb.mxu2 %v6623_v58 }
 0xd1f   :  { %v2902_v17 = vadd.f32 %v4574_v41, %v2901_v50 }
 0xd20   :  { %v4576_v24 = vpop.eup %4575  ;;  %3002 = vmatpush.msrb.mxu2 %v6627_v22 }
 0xd21   :  { %v2906_v60 = vsel %vm2905_vm14, %v4574_v41, %v2902_v17  ;;  %v2914_v13 = vmul.f32 %v4576_v24, %v2867_v14  ;;  %vm2919_vm2 = vweird.f32 %v4576_v24 }
 0xd22   :  { %v2911_v15 = vsel %vm2908_vm15, %v2910_v11, %v2906_v60  ;;  %vm2920_vm5 = vmor %vm2918_vm4, %vm2919_vm2  ;;  %3003 = vmatpush.msrb.mxu2 %v6632_v38 }
 0xd23   :  { %v2912_v47 = vmul.f32 %v6521_v46, %v2911_v15  ;;  %v2915_v31 = vsub.f32 1.0, %v2914_v13  ;;  %v2925_v46 = vor.u32 1.1754944e-38, %v2924_v32 }
 0xd24   :  { %3004 = vmatpush.msrb.mxu2 %v6637_v16 }
 0xd25   :  { %4266 = vmatmul.msk.f32.gmra.mxu1 %vm2272_vm8, %v2912_v47  ;;  %v2916_v42 = vmul.f32 %v4576_v24, %v2915_v31 }
 0xd26   :  { %3005 = vmatpush.msrb.mxu2 %v6646_v30 }
 0xd27   :  { %v2917_v1 = vadd.f32 %v4576_v24, %v2916_v42 }
 0xd28   :  { %3006 = vmatpush.msrb.mxu2 %v6649_v43 }
 0xd29   :  { %v2921_v10 = vsel %vm2920_vm5, %v4576_v24, %v2917_v1 }
 0xd2a   :  { %v2926_v6 = vsel %vm2923_vm6, %v2925_v46, %v2921_v10 }
 0xd2b   :  { %v2927_v28 = vmul.f32 %v6538_v36, %v2926_v6  ;;  %v2586_v36 = vpop.f32.mrf.mxu1 }
 0xd2c   :  { %v2587_v44 = vadd.f32 %v2586_v36, %v6438_v21 }
 0xd2d   :  { %4267 = vmatmul.msk.f32.gmra.mxu1 %vm2272_vm8, %v2927_v28 }
 0xd33   :  { %v2589_v23 = vpop.f32.mrf.mxu1 }
 0xd34   :  { %v2590_v25 = vadd.f32 %v2589_v23, %v6440_v53  ;;  %v4388_v53 = vld [vmem:[#allocation17] ss:$0 sm:$0xff] }
 0xd35   :  { %4280 = vmatmul.msk.f32.vlgmr.msra.gmra.mxu1 %vm400_vm0, %v6242_v48 }
 0xd38   :  { %v2771_v56 = vpop.f32.mrf.mxu3 }
 0xd39   :  { %v2783_v20 = vadd.f32 %v2771_v56, %v2587_v44 }
 0xd3b   :  { %v2592_v41 = vpop.f32.mrf.mxu1 }
 0xd3c   :  { %v2593_v18 = vadd.f32 %v2592_v41, %v6442_v26 }
 0xd3d   :  { %4281 = vmatmul.msk.f32.gmra.mxu1 %vm400_vm0, %v6251_v8 }
 0xd40   :  { %v2774_v35 = vpop.f32.mrf.mxu3 }
 0xd41   :  { %v2784_v49 = vadd.f32 %v2774_v35, %v2590_v25 }
 0xd43   :  { %v2595_v3 = vpop.f32.mrf.mxu1 }
 0xd44   :  { %v2596_v50 = vadd.f32 %v2595_v3, %v6444_v54 }
 0xd48   :  { %v2777_v59 = vpop.f32.mrf.mxu3 }
 0xd49   :  { %v2785_v14 = vadd.f32 %v2777_v59, %v2593_v18 }
 0xd92   :  { %v2960_v55 = vpop.f32.mrf.mxu1 }
 0xd93   :  { %v2972_v5 = vadd.f32 %v2960_v55, %v2783_v20 }
 0xd95   :  { %4268 = vmatmul.msk.f32.vlgmr.msrb.gmra.mxu2 %vm1905_vm3, %v2972_v5 }
 0xd9a   :  { %v2963_v9 = vpop.f32.mrf.mxu1 }
 0xd9b   :  { %v2973_v0 = vadd.f32 %v2963_v9, %v2784_v49 }
 0xd9d   :  { %4269 = vmatmul.msk.f32.gmra.mxu2 %vm1905_vm3, %v2973_v0 }
 0xda1   :  { %v2780_v21 = vpop.f32.mrf.mxu3 }
 0xda2   :  { %v2966_v33 = vpop.f32.mrf.mxu1  ;;  %v2786_v4 = vadd.f32 %v2780_v21, %v2596_v50  ;;  %v6698_v50 = vld [vmem:[#allocation20] sm:$0xff] }
 0xda3   :  { %v2974_v57 = vadd.f32 %v2966_v33, %v2785_v14  ;;  %v6689_v14 = vld [vmem:[#allocation20 + $0x18] sm:$0xff]  ;;  %v6692_v33 = vld [vmem:[#allocation20 + $0x10] sm:$0xff] }
 0xda4   :  { %3149 = vmatpush.msrb.mxu3 %v6689_v14 }
 0xda5   :  { %4270 = vmatmul.msk.f32.gmra.mxu2 %vm1905_vm3, %v2974_v57  ;;  %v6695_v57 = vld [vmem:[#allocation20 + $0x8] sm:$0xff] }
 0xda6   :  { %3150 = vmatpush.msrb.mxu3 %v6692_v33 }
 0xda8   :  { %3151 = vmatpush.msrb.mxu3 %v6695_v57 }
 0xdaa   :  { %v2969_v17 = vpop.f32.mrf.mxu1  ;;  %3152 = vmatpush.msrb.mxu3 %v6698_v50 }
 0xdab   :  { %v2975_v11 = vadd.f32 %v2969_v17, %v2786_v4 }
 0xdad   :  { %4271 = vmatmul.msk.f32.gmra.mxu2 %vm1905_vm3, %v2975_v11 }
 0xe18   :  { %v3008_v60 = vpop.f32.mrf.mxu2 }
 0xe19   :  { %v3009_v15 = vadd.f32 %v4388_v53, %v3008_v60 }
 0xe1b   :  { %v3020_v24 = vadd.f32 %v3009_v15, %v6222_v40 }
 0xe1d   :  { %v3024_v26 = vsel %vm400_vm0, %v3020_v24, 0.0 }
 0xe1e   :  { %3025 = vadd.xlane.f32.xlu2 %v3024_v26 }
 0xe20   :  { %v3011_v47 = vpop.f32.mrf.mxu2 }
 0xe21   :  { %v3012_v13 = vadd.f32 %v4388_v53, %v3011_v47 }
 0xe23   :  { %v3021_v31 = vadd.f32 %v3012_v13, %v6254_v19 }
 0xe25   :  { %v3027_v32 = vsel %vm400_vm0, %v3021_v31, 0.0 }
 0xe26   :  { %3028 = vadd.xlane.f32.xlu0 %v3027_v32  ;;  %v6704_v32 = vld [vmem:[#allocation19] sm:$0xf] }
 0xe28   :  { %v3014_v54 = vpop.f32.mrf.mxu2 }
 0xe29   :  { %v3015_v42 = vadd.f32 %v4388_v53, %v3014_v54 }
 0xe2b   :  { %v3022_v61 = vadd.f32 %v3015_v42, %v6267_v45 }
 0xe2d   :  { %v3030_v1 = vsel %vm400_vm0, %v3022_v61, 0.0 }
 0xe2e   :  { %3031 = vadd.xlane.f32.xlu1 %v3030_v1 }
 0xe30   :  { %v3017_v46 = vpop.f32.mrf.mxu2 }
 0xe31   :  { %v3018_v10 = vadd.f32 %v4388_v53, %v3017_v46 }
 0xe33   :  { %v3023_v40 = vadd.f32 %v3018_v10, %v6274_v12  ;;  %v6707_v10 = vperm.slane %v6704_v32, 0 }
 0xe35   :  { %v3033_v6 = vsel %vm400_vm0, %v3023_v40, 0.0 }
 0xe36   :  { %3034 = vadd.xlane.f32.xlu2 %v3033_v6 }
 0xe91   :  { %v3026_v28 = vpop.xlane.xlu2 %3025 }
 0xe92   :  { %v3036_v19 = vmul.f32 %v3026_v28, %v6064_v62  ;;  %v6710_v28 = vperm.slane %v6704_v32, 1 }
 0xe94   :  { %v3040_v36 = vsub.f32 %v3020_v24, %v3036_v19 }
 0xe96   :  { %v3044_v23 = vmul.f32 %v3040_v36, %v3040_v36 }
 0xe98   :  { %v3048_v41 = vsel %vm400_vm0, %v3044_v23, 0.0 }
 0xe99   :  { %v3029_v56 = vpop.xlane.xlu0 %3028  ;;  %3049 = vadd.xlane.f32.xlu0 %v3048_v41  ;;  %v6713_v41 = vld [vmem:[%s5254_s24 + $0x38] sm:$0xff] }
 0xe9a   :  { %v3037_v45 = vmul.f32 %v3029_v56, %v6064_v62  ;;  %v6716_v56 = vld [vmem:[%s5254_s24 + $0x30] sm:$0xff]  ;;  %3193 = vmatpush.msra.mxu0 %v6713_v41 }
 0xe9c   :  { %v6672_v3 = vsub.f32 %v3021_v31, %v3037_v45  ;;  %3194 = vmatpush.msra.mxu0 %v6716_v56 }
 0xe9e   :  { %v3045_v44 = vmul.f32 %v6672_v3, %v6672_v3 }
 0xea0   :  { %v3051_v12 = vsel %vm400_vm0, %v3045_v44, 0.0 }
 0xea1   :  { %3052 = vadd.xlane.f32.xlu1 %v3051_v12  ;;  %v3032_v20 = vpop.xlane.xlu1 %3031  ;;  %v6721_v12 = vld [vmem:[%s5254_s24 + $0x28] sm:$0xff] }
 0xea2   :  { %v3038_v55 = vmul.f32 %v3032_v20, %v6064_v62  ;;  %3195 = vmatpush.msra.mxu0 %v6721_v12 }
 0xea4   :  { %v6678_v5 = vsub.f32 %v3022_v61, %v3038_v55 }
 0xea6   :  { %v3046_v35 = vmul.f32 %v6678_v5, %v6678_v5 }
 0xea8   :  { %v3054_v25 = vsel %vm400_vm0, %v3046_v35, 0.0 }
 0xea9   :  { %3055 = vadd.xlane.f32.xlu2 %v3054_v25  ;;  %v3035_v49 = vpop.xlane.xlu2 %3034 }
 0xeaa   :  { %v3039_v9 = vmul.f32 %v3035_v49, %v6064_v62 }
 0xeac   :  { %v6684_v0 = vsub.f32 %v3023_v40, %v3039_v9  ;;  %v6729_v9 = vld [vmem:[%s5254_s24 + $0x20] sm:$0xff] }
 0xead   :  { %3196 = vmatpush.msra.mxu0 %v6729_v9 }
 0xeae   :  { %v3047_v59 = vmul.f32 %v6684_v0, %v6684_v0 }
 0xeb0   :  { %v3057_v18 = vsel %vm400_vm0, %v3047_v59, 0.0 }
 0xeb1   :  { %3058 = vadd.xlane.f32.xlu0 %v3057_v18 }
 0xf0c   :  { %v3050_v21 = vpop.xlane.xlu0 %3049 }
 0xf0d   :  { %v3060_v4 = vmul.f32 %v3050_v21, %v6064_v62 }
 0xf0f   :  { %v3064_v17 = vadd.f32 1e-05, %v3060_v4  ;;  %v6735_v4 = vld [vmem:[%s5254_s24 + $0x18] sm:$0xff] }
 0xf10   :  { %3197 = vmatpush.msra.mxu0 %v6735_v4 }
 0xf11   :  { %4577 = vrsqrt.f32 %v3064_v17  ;;  %vm3074_vm7 = vweird.f32 %v3064_v17 }
 0xf14   :  { %v3053_v11 = vpop.xlane.xlu1 %3052 }
 0xf15   :  { %v3061_v53 = vmul.f32 %v3053_v11, %v6064_v62 }
 0xf17   :  { %v4578_v60 = vpop.eup %4577  ;;  %v3065_v15 = vadd.f32 1e-05, %v3061_v53 }
 0xf18   :  { %v3069_v24 = vmul.f32 %v4578_v60, %v3064_v17  ;;  %vm3075_vm8 = vweird.f32 %v4578_v60 }
 0xf19   :  { %4579 = vrsqrt.f32 %v3065_v15  ;;  %vm3076_vm9 = vmor %vm3074_vm7, %vm3075_vm8  ;;  %vm3084_vm11 = vweird.f32 %v3065_v15 }
 0xf1a   :  { %v3070_v26 = vmul.f32 %v4578_v60, %v3069_v24 }
 0xf1c   :  { %v3071_v47 = vmul.f32 0.5, %v3070_v26  ;;  %v3056_v13 = vpop.xlane.xlu2 %3055 }
 0xf1d   :  { %v3062_v31 = vmul.f32 %v3056_v13, %v6064_v62 }
 0xf1e   :  { %v3072_v54 = vsub.f32 1.5, %v3071_v47 }
 0xf1f   :  { %v4580_v42 = vpop.eup %4579  ;;  %v3066_v61 = vadd.f32 1e-05, %v3062_v31 }
 0xf20   :  { %v3073_v1 = vmul.f32 %v4578_v60, %v3072_v54  ;;  %v3079_v46 = vmul.f32 %v4580_v42, %v3065_v15  ;;  %vm3085_vm10 = vweird.f32 %v4580_v42 }
 0xf21   :  { %4581 = vrsqrt.f32 %v3066_v61  ;;  %vm3086_vm12 = vmor %vm3084_vm11, %vm3085_vm10  ;;  %vm3094_vm1 = vweird.f32 %v3066_v61 }
 0xf22   :  { %v3077_v40 = vsel %vm3076_vm9, %v4578_v60, %v3073_v1  ;;  %v3080_v6 = vmul.f32 %v4580_v42, %v3079_v46 }
 0xf23   :  { %v3108_v19 = vmul.f32 %v3077_v40, %v3040_v36 }
 0xf24   :  { %v3081_v23 = vmul.f32 0.5, %v3080_v6  ;;  %v3059_v36 = vpop.xlane.xlu0 %3058 }
 0xf25   :  { %v3113_v45 = vmul.f32 %v6707_v10, %v3108_v19  ;;  %v3063_v49 = vmul.f32 %v3059_v36, %v6064_v62 }
 0xf26   :  { %v3082_v44 = vsub.f32 1.5, %v3081_v23  ;;  %v6752_v23 = vld [vmem:[%s5254_s24 + $0x10] sm:$0xff] }
 0xf27   :  { %v4582_v20 = vpop.eup %4581  ;;  %v6724_v55 = vadd.f32 %v6710_v28, %v3113_v45  ;;  %v3067_v21 = vadd.f32 1e-05, %v3063_v49  ;;  %v6755_v45 = vld [vmem:[%s5254_s24 + $0x8] sm:$0xff]  ;;  %3198 = vmatpush.msra.mxu0 %v6752_v23 }
 0xf28   :  { %v3083_v35 = vmul.f32 %v4580_v42, %v3082_v44  ;;  %v3089_v25 = vmul.f32 %v4582_v20, %v3066_v61  ;;  %vm3095_vm13 = vweird.f32 %v4582_v20  ;;  %v6759_v44 = vld [vmem:[%s5254_s24] sm:$0xff]  ;;  %s4045_s24 = sshll.u32 %s5264_s5, 4  ;;  %s4046_s24 = int_to_ptr.hbm [resolvable:$true] %s4045_s24 }
 0xf29   :  { %4272 = vmatmul.msk.f32.vlgmr.msrb.gmra.mxu3 %vm400_vm0, %v6724_v55  ;;  %4583 = vrsqrt.f32 %v3067_v21  ;;  %vm3096_vm14 = vmor %vm3094_vm1, %vm3095_vm13  ;;  %vm3104_vm2 = vweird.f32 %v3067_v21  ;;  %3199 = vmatpush.msra.mxu0 %v6755_v45  ;;  %s5000_s8 = sshra.s32 %s4046_s24, 4  ;;  %s5001_s8 = int_to_ptr.hbm [resolvable:$true] %s5000_s8 }
 0xf2a   :  { %v3087_v59 = vsel %vm3086_vm12, %v4580_v42, %v3083_v35  ;;  %v3090_v18 = vmul.f32 %v4582_v20, %v3089_v25  ;;  %s5002_s12 = scalar_lea.hbm %s5001_s8, 32  ;;  %p5005_p1 = scmp.lt.s32.totalorder %s5001_s8, %s5264_s5 }
 0xf2b   :  { %v3109_v17 = vmul.f32 %v3087_v59, %v6672_v3  ;;  %3200 = vmatpush.msra.mxu0 %v6759_v44  ;;  %p5003_p0 = scmp.ne.s32.totalorder %s5001_s8, %s5002_s12  ;;  %p5006_p2 = scmp.lt.s32.totalorder %s5004_s0, %s5002_s12 }
 0xf2c   :  { %v3091_v11 = vmul.f32 0.5, %v3090_v18 }
 0xf2d   :  { %v3114_v53 = vmul.f32 %v6707_v10, %v3109_v17  ;;  %p5007_p3 = por %p5006_p2, %p5005_p1 }
 0xf2e   :  { %v3092_v60 = vsub.f32 1.5, %v3091_v11 }
 0xf2f   :  { %v3119_v15 = vadd.f32 %v6710_v28, %v3114_v53  ;;  %v4584_v26 = vpop.eup %4583  ;;  %p5008_p4 = pnand %p5007_p3, %p5003_p0 }
 0xf30   :  { %v3093_v24 = vmul.f32 %v4582_v20, %v3092_v60  ;;  %v3099_v13 = vmul.f32 %v4584_v26, %v3067_v21  ;;  %vm3105_vm15 = vweird.f32 %v4584_v26 }
 0xf31   :  { %4273 = vmatmul.msk.f32.gmra.mxu3 %vm400_vm0, %v3119_v15  ;;  %vm3106_vm4 = vmor %vm3104_vm2, %vm3105_vm15 }
 0xf32   :  { %v3097_v47 = vsel %vm3096_vm14, %v4582_v20, %v3093_v24  ;;  %v3100_v31 = vmul.f32 %v4584_v26, %v3099_v13  ;;  %v4389_v20 = vld [vmem:[#allocation22] ss:$0 sm:$0xff]  ;;  %v4390_v24 = vld [vmem:[#allocation23] ss:$0 sm:$0xff] }
 0xf33   :  { %v3110_v3 = vmul.f32 %v3097_v47, %v6678_v5 }
 0xf34   :  { %v3101_v42 = vmul.f32 0.5, %v3100_v31 }
 0xf35   :  { %v3115_v54 = vmul.f32 %v6707_v10, %v3110_v3 }
 0xf36   :  { %v3102_v46 = vsub.f32 1.5, %v3101_v42 }
 0xf37   :  { %v3120_v1 = vadd.f32 %v6710_v28, %v3115_v54 }
 0xf38   :  { %v3103_v61 = vmul.f32 %v4584_v26, %v3102_v46 }
 0xf39   :  { %4274 = vmatmul.msk.f32.gmra.mxu3 %vm400_vm0, %v3120_v1 }
 0xf3a   :  { %v3107_v40 = vsel %vm3106_vm4, %v4584_v26, %v3103_v61 }
 0xf3b   :  { %v3111_v5 = vmul.f32 %v3107_v40, %v6684_v0 }
 0xf3d   :  { %v3116_v6 = vmul.f32 %v6707_v10, %v3111_v5 }
 0xf3f   :  { %v3121_v19 = vadd.f32 %v6710_v28, %v3116_v6 }
 0xf41   :  { %4275 = vmatmul.msk.f32.gmra.mxu3 %vm400_vm0, %v3121_v19 }
 0xfac   :  { %v3154_v0 = vpop.f32.mrf.mxu3 }
 0xfad   :  { %v3155_v36 = vadd.f32 %v4389_v20, %v3154_v0 }
 0xfaf   :  { %v3166_v35 = vmax.f32 %v3155_v36, 0.0 }
 0xfb1   :  { %4276 = vmatmul.msk.f32.vlgmr.msra.gmra.mxu0 %vm1905_vm3, %v3166_v35 }
 0xfb4   :  { %v3157_v25 = vpop.f32.mrf.mxu3 }
 0xfb5   :  { %v3158_v49 = vadd.f32 %v4389_v20, %v3157_v25 }
 0xfb7   :  { %v3167_v59 = vmax.f32 %v3158_v49, 0.0 }
 0xfb9   :  { %4277 = vmatmul.msk.f32.gmra.mxu0 %vm1905_vm3, %v3167_v59 }
 0xfbc   :  { %v3160_v18 = vpop.f32.mrf.mxu3 }
 0xfbd   :  { %v3161_v21 = vadd.f32 %v4389_v20, %v3160_v18 }
 0xfbf   :  { %v3168_v17 = vmax.f32 %v3161_v21, 0.0 }
 0xfc1   :  { %4278 = vmatmul.msk.f32.gmra.mxu0 %vm1905_vm3, %v3168_v17 }
 0xfc4   :  { %v3163_v11 = vpop.f32.mrf.mxu3 }
 0xfc5   :  { %v3164_v53 = vadd.f32 %v4389_v20, %v3163_v11 }
 0xfc7   :  { %v3169_v60 = vmax.f32 %v3164_v53, 0.0 }
 0xfc9   :  { %4279 = vmatmul.msk.f32.gmra.mxu0 %vm1905_vm3, %v3169_v60 }
0x102e   :  { %v3202_v26 = vpop.f32.mrf.mxu0 }
0x102f   :  { %v3203_v47 = vadd.f32 %v4390_v24, %v3202_v26 }
0x1031   :  { %v3214_v3 = vadd.f32 %v3203_v47, %v6724_v55 }
0x1033   :  { %v3218_v13 = vsel %vm400_vm0, %v3214_v3, 0.0 }
0x1034   :  { %3219 = vadd.xlane.f32.xlu1 %v3218_v13 }
0x1036   :  { %v3205_v31 = vpop.f32.mrf.mxu0 }
0x1037   :  { %v3206_v54 = vadd.f32 %v4390_v24, %v3205_v31 }
0x1039   :  { %v3215_v42 = vadd.f32 %v3206_v54, %v3119_v15 }
0x103b   :  { %v3221_v46 = vsel %vm400_vm0, %v3215_v42, 0.0 }
0x103c   :  { %3222 = vadd.xlane.f32.xlu2 %v3221_v46 }
0x103e   :  { %v3208_v61 = vpop.f32.mrf.mxu0 }
0x103f   :  { %v3209_v40 = vadd.f32 %v4390_v24, %v3208_v61 }
0x1041   :  { %v3216_v5 = vadd.f32 %v3209_v40, %v3120_v1 }
0x1043   :  { %v3224_v6 = vsel %vm400_vm0, %v3216_v5, 0.0 }
0x1044   :  { %3225 = vadd.xlane.f32.xlu0 %v3224_v6 }
0x1046   :  { %v3211_v20 = vpop.f32.mrf.mxu0 }
0x1047   :  { %v3212_v0 = vadd.f32 %v4390_v24, %v3211_v20 }
0x1049   :  { %v3217_v36 = vadd.f32 %v3212_v0, %v3121_v19 }
0x104b   :  { %v3227_v55 = vsel %vm400_vm0, %v3217_v36, 0.0 }
0x104c   :  { %3228 = vadd.xlane.f32.xlu1 %v3227_v55 }
0x10a7   :  { %v3220_v35 = vpop.xlane.xlu1 %3219 }
0x10a8   :  { %v3230_v25 = vmul.f32 %v3220_v35, %v6064_v62 }
0x10aa   :  { %v3234_v49 = vsub.f32 %v3214_v3, %v3230_v25 }
0x10ac   :  { %v3238_v15 = vmul.f32 %v3234_v49, %v3234_v49 }
0x10ae   :  { %v3242_v59 = vsel %vm400_vm0, %v3238_v15, 0.0 }
0x10af   :  { %3243 = vadd.xlane.f32.xlu2 %v3242_v59  ;;  %v3223_v18 = vpop.xlane.xlu2 %3222 }
0x10b0   :  { %v3231_v1 = vmul.f32 %v3223_v18, %v6064_v62 }
0x10b2   :  { %v3235_v21 = vsub.f32 %v3215_v42, %v3231_v1 }
0x10b4   :  { %v3239_v17 = vmul.f32 %v3235_v21, %v3235_v21 }
0x10b6   :  { %v3245_v11 = vsel %vm400_vm0, %v3239_v17, 0.0 }
0x10b7   :  { %v3226_v53 = vpop.xlane.xlu0 %3225  ;;  %3246 = vadd.xlane.f32.xlu0 %v3245_v11  ;;  %v6792_v11 = vperm.slane %v6704_v32, 2 }
0x10b8   :  { %v3232_v19 = vmul.f32 %v3226_v53, %v6064_v62 }
0x10ba   :  { %v6777_v60 = vsub.f32 %v3216_v5, %v3232_v19 }
0x10bc   :  { %v3240_v24 = vmul.f32 %v6777_v60, %v6777_v60 }
0x10be   :  { %v3248_v26 = vsel %vm400_vm0, %v3240_v24, 0.0  ;;  %v6795_v24 = vperm.slane %v6704_v32, 3 }
0x10bf   :  { %3249 = vadd.xlane.f32.xlu1 %v3248_v26  ;;  %v3229_v47 = vpop.xlane.xlu1 %3228 }
0x10c0   :  { %v3233_v3 = vmul.f32 %v3229_v47, %v6064_v62 }
0x10c2   :  { %v6783_v13 = vsub.f32 %v3217_v36, %v3233_v3 }
0x10c4   :  { %v3241_v31 = vmul.f32 %v6783_v13, %v6783_v13 }
0x10c6   :  { %v3251_v54 = vsel %vm400_vm0, %v3241_v31, 0.0 }
0x10c7   :  { %3252 = vadd.xlane.f32.xlu2 %v3251_v54 }
0x1122   :  { %v3244_v42 = vpop.xlane.xlu2 %3243 }
0x1123   :  { %v3254_v46 = vmul.f32 %v3244_v42, %v6064_v62 }
0x1125   :  { %v3258_v61 = vadd.f32 1e-05, %v3254_v46 }
0x1127   :  { %4585 = vrsqrt.f32 %v3258_v61  ;;  %vm3268_vm6 = vweird.f32 %v3258_v61 }
0x112a   :  { %v3247_v40 = vpop.xlane.xlu0 %3246 }
0x112b   :  { %v3255_v5 = vmul.f32 %v3247_v40, %v6064_v62 }
0x112d   :  { %v4586_v6 = vpop.eup %4585  ;;  %v3259_v20 = vadd.f32 1e-05, %v3255_v5 }
0x112e   :  { %v3263_v0 = vmul.f32 %v4586_v6, %v3258_v61  ;;  %vm3269_vm5 = vweird.f32 %v4586_v6 }
0x112f   :  { %4587 = vrsqrt.f32 %v3259_v20  ;;  %vm3270_vm8 = vmor %vm3268_vm6, %vm3269_vm5  ;;  %vm3278_vm9 = vweird.f32 %v3259_v20 }
0x1130   :  { %v3264_v36 = vmul.f32 %v4586_v6, %v3263_v0 }
0x1132   :  { %v3265_v55 = vmul.f32 0.5, %v3264_v36  ;;  %v3250_v35 = vpop.xlane.xlu1 %3249 }
0x1133   :  { %v3256_v25 = vmul.f32 %v3250_v35, %v6064_v62 }
0x1134   :  { %v3266_v15 = vsub.f32 1.5, %v3265_v55 }
0x1135   :  { %v4588_v59 = vpop.eup %4587  ;;  %v3260_v18 = vadd.f32 1e-05, %v3256_v25 }
0x1136   :  { %v3267_v1 = vmul.f32 %v4586_v6, %v3266_v15  ;;  %v3273_v17 = vmul.f32 %v4588_v59, %v3259_v20  ;;  %vm3279_vm7 = vweird.f32 %v4588_v59 }
0x1137   :  { %4589 = vrsqrt.f32 %v3260_v18  ;;  %vm3280_vm10 = vmor %vm3278_vm9, %vm3279_vm7  ;;  %vm3288_vm12 = vweird.f32 %v3260_v18 }
0x1138   :  { %v3271_v53 = vsel %vm3270_vm8, %v4586_v6, %v3267_v1  ;;  %v3274_v19 = vmul.f32 %v4588_v59, %v3273_v17 }
0x1139   :  { %v3302_v26 = vmul.f32 %v3271_v53, %v3234_v49 }
0x113a   :  { %v3275_v47 = vmul.f32 0.5, %v3274_v19  ;;  %v3253_v46 = vpop.xlane.xlu2 %3252 }
0x113b   :  { %v3307_v3 = vmul.f32 %v6792_v11, %v3302_v26  ;;  %v3257_v5 = vmul.f32 %v3253_v46, %v6064_v62 }
0x113c   :  { %v3276_v31 = vsub.f32 1.5, %v3275_v47 }
0x113d   :  { %v4590_v54 = vpop.eup %4589  ;;  %v3312_v42 = vadd.f32 %v6795_v24, %v3307_v3  ;;  %v3261_v6 = vadd.f32 1e-05, %v3257_v5 }
0x113e   :  { %v3277_v61 = vmul.f32 %v4588_v59, %v3276_v31  ;;  %v3283_v40 = vmul.f32 %v4590_v54, %v3260_v18  ;;  %vm3289_vm11 = vweird.f32 %v4590_v54 }
0x113f   :  { %4033 = vst.msk [vmem:[#allocation25] sm:$0xff] %vm400_vm0, %v3312_v42  ;;  %4282 = vmatmul.msk.f32.vlgmr.msrb.gmra.mxu1 %vm400_vm0, %v3312_v42  ;;  %4591 = vrsqrt.f32 %v3261_v6  ;;  %vm3290_vm13 = vmor %vm3288_vm12, %vm3289_vm11  ;;  %vm3298_vm14 = vweird.f32 %v3261_v6  ;;  %v3333_v42 = vpop.f32.mrf.mxu1 }
0x1140   :  { %v3281_v32 = vsel %vm3280_vm10, %v4588_v59, %v3277_v61  ;;  %v3284_v49 = vmul.f32 %v4590_v54, %v3283_v40 }
0x1141   :  { %v3303_v0 = vmul.f32 %v3281_v32, %v3235_v21 }
0x1142   :  { %v3285_v36 = vmul.f32 0.5, %v3284_v49  ;;  %v4647_v49 = vld [vmem:[#allocation16] ss:$0 sm:$0xff] }
0x1143   :  { %v3308_v55 = vmul.f32 %v6792_v11, %v3303_v0 }
0x1144   :  { %v3286_v35 = vsub.f32 1.5, %v3285_v36 }
0x1145   :  { %v3313_v20 = vadd.f32 %v6795_v24, %v3308_v55  ;;  %v4592_v15 = vpop.eup %4591 }
0x1146   :  { %v3287_v25 = vmul.f32 %v4590_v54, %v3286_v35  ;;  %v3293_v21 = vmul.f32 %v4592_v15, %v3261_v6  ;;  %vm3299_vm1 = vweird.f32 %v4592_v15 }
0x1147   :  { %4283 = vmatmul.msk.f32.gmra.mxu1 %vm400_vm0, %v3313_v20  ;;  %4034 = vst.msk [vmem:[#allocation25 + $0x8] sm:$0xff] %vm400_vm0, %v3313_v20  ;;  %vm3300_vm15 = vmor %vm3298_vm14, %vm3299_vm1  ;;  %v3336_v46 = vpop.f32.mrf.mxu1 }
0x1148   :  { %v3291_v59 = vsel %vm3290_vm13, %v4590_v54, %v3287_v25  ;;  %v3294_v17 = vmul.f32 %v4592_v15, %v3293_v21 }
0x1149   :  { %v3304_v1 = vmul.f32 %v3291_v59, %v6777_v60  ;;  %v4648_v59 = vld [vmem:[#allocation14] ss:$0 sm:$0xff] }
0x114a   :  { %v3295_v19 = vmul.f32 0.5, %v3294_v17 }
0x114b   :  { %v3309_v53 = vmul.f32 %v6792_v11, %v3304_v1  ;;  %v3334_v1 = vadd.f32 %v4648_v59, %v3333_v42 }
0x114c   :  { %v3296_v47 = vsub.f32 1.5, %v3295_v19 }
0x114d   :  { %v3314_v26 = vadd.f32 %v6795_v24, %v3309_v53  ;;  %v3475_v19 = vmul.f32 %v3334_v1, %v5423_v51 }
0x114e   :  { %v3297_v18 = vmul.f32 %v4592_v15, %v3296_v47  ;;  %v3730_v47 = vmul.f32 %v3334_v1, %v5571_v34 }
0x114f   :  { %4284 = vmatmul.msk.f32.gmra.mxu1 %vm400_vm0, %v3314_v26  ;;  %4035 = vst.msk [vmem:[#allocation25 + $0x10] sm:$0xff] %vm400_vm0, %v3314_v26 }
0x1150   :  { %v3301_v3 = vsel %vm3300_vm15, %v4592_v15, %v3297_v18 }
0x1151   :  { %v3305_v31 = vmul.f32 %v3301_v3, %v6783_v13 }
0x1153   :  { %v3310_v60 = vmul.f32 %v6792_v11, %v3305_v31  ;;  %v3337_v31 = vadd.f32 %v4648_v59, %v3336_v46 }
0x1155   :  { %v3315_v54 = vadd.f32 %v6795_v24, %v3310_v60  ;;  %v3381_v42 = vmul.f32 %v3337_v31, %v5449_v63  ;;  %v3476_v46 = vmul.f32 %v3337_v31, %v5423_v51  ;;  %v3616_v51 = vmul.f32 %v3334_v1, %v5551_v27 }
0x1157   :  { %4285 = vmatmul.msk.f32.gmra.mxu1 %vm400_vm0, %v3315_v54  ;;  %4036 = vst.msk [vmem:[#allocation25 + $0x18] sm:$0xff] %vm400_vm0, %v3315_v54 }
0x11bc   :  { %v3368_v61 = vpop.f32.mrf.mxu1 }
0x11bd   :  { %v3369_v55 = vadd.f32 %v4647_v49, %v3368_v61  ;;  %v3731_v61 = vmul.f32 %v3337_v31, %v5571_v34  ;;  %v359_v34 = vld [vmem:[#allocation7] sm:$0xff] }
0x11bf   :  { %v3554_v25 = vmul.f32 %v3369_v55, %v6279_v37  ;;  %v3695_v18 = vmul.f32 %v3369_v55, %v6289_v2  ;;  %v3471_v60 = vmul.f32 %v3369_v55, %v6281_v52 }
0x11c4   :  { %v3371_v40 = vpop.f32.mrf.mxu1 }
0x11c5   :  { %v3372_v36 = vadd.f32 %v4647_v49, %v3371_v40 }
0x11c7   :  { %v3555_v20 = vmul.f32 %v3372_v36, %v6279_v37  ;;  %v3696_v53 = vmul.f32 %v3372_v36, %v6289_v2  ;;  %v3472_v3 = vmul.f32 %v3372_v36, %v6281_v52 }
0x11cc   :  { %v3374_v5 = vpop.f32.mrf.mxu1 }
0x11cd   :  { %v3375_v0 = vadd.f32 %v4647_v49, %v3374_v5 }
0x11cf   :  { %v3556_v35 = vmul.f32 %v3375_v0, %v6279_v37  ;;  %v3697_v21 = vmul.f32 %v3375_v0, %v6289_v2  ;;  %v3473_v26 = vmul.f32 %v3375_v0, %v6281_v52 }
0x11d4   :  { %v3377_v32 = vpop.f32.mrf.mxu1 }
0x11d5   :  { %v3378_v6 = vadd.f32 %v4647_v49, %v3377_v32 }
0x11d7   :  { %4286 = vmatpush.xpose.msk.msra.mxu2 %vm400_vm0, %v3378_v6  ;;  %4292 = vmatpush.xpose.msk.msra.mxu3 %vm400_vm0, %v3378_v6  ;;  %v3557_v13 = vmul.f32 %v3378_v6, %v6279_v37  ;;  %v3698_v15 = vmul.f32 %v3378_v6, %v6289_v2  ;;  %v3474_v17 = vmul.f32 %v3378_v6, %v6281_v52 }
0x11d8   :  { %4310 = vmatpush.xpose.msk.msra.mxu1 %vm400_vm0, %v3378_v6  ;;  %v3380_v37 = vmul.f32 %v3334_v1, %v5449_v63  ;;  %v3812_v54 = vmul.f32 %v3378_v6, %v6293_v29  ;;  %v3811_v2 = vmul.f32 %v3375_v0, %v6293_v29  ;;  %v3810_v52 = vmul.f32 %v3372_v36, %v6293_v29 }
0x11d9   :  { %3576 = vmatpush.msrb.mxu0 %v3557_v13  ;;  %v3617_v63 = vmul.f32 %v3337_v31, %v5551_v27  ;;  %v360_v27 = vld [vmem:[#allocation7 + $0x8] sm:$0xff] }
0x11db   :  { %4287 = vmatpush.xpose.msk.msra.mxu2 %vm400_vm0, %v3375_v0  ;;  %4293 = vmatpush.xpose.msk.msra.mxu3 %vm400_vm0, %v3375_v0 }
0x11dc   :  { %3577 = vmatpush.msrb.mxu0 %v3556_v35  ;;  %4311 = vmatpush.xpose.msk.msra.mxu1 %vm400_vm0, %v3375_v0 }
0x11de   :  { %3578 = vmatpush.msrb.mxu0 %v3555_v20 }
0x11df   :  { %4288 = vmatpush.xpose.msk.msra.mxu2 %vm400_vm0, %v3372_v36  ;;  %4294 = vmatpush.xpose.msk.msra.mxu3 %vm400_vm0, %v3372_v36 }
0x11e0   :  { %3579 = vmatpush.msrb.mxu0 %v3554_v25  ;;  %4312 = vmatpush.xpose.msk.msra.mxu1 %vm400_vm0, %v3372_v36 }
0x11e2   :  { %3717 = vmatpush.msra.mxu0 %v3698_v15 }
0x11e3   :  { %4289 = vmatpush.xpose.msk.msra.mxu2 %vm400_vm0, %v3369_v55  ;;  %4295 = vmatpush.xpose.msk.msra.mxu3 %vm400_vm0, %v3369_v55 }
0x11e4   :  { %3718 = vmatpush.msra.mxu0 %v3697_v21  ;;  %4313 = vmatpush.xpose.msk.msra.mxu1 %vm400_vm0, %v3369_v55 }
0x11e6   :  { %3719 = vmatpush.msra.mxu0 %v3696_v53  ;;  %4290 = vmatmul.msk.f32.vlgmr.msra.gmra.mxu2 %vm400_vm0, %v3380_v37 }
0x11e7   :  { %3605 = vmatpush.msrb.mxu2 %v3474_v17  ;;  %4302 = vmatpush.xpose.msk.msrb.mxu3 %vm400_vm0, %v3378_v6 }
0x11e8   :  { %4296 = vmatmul.msk.f32.vlgmr.msra.gmra.mxu3 %vm400_vm0, %v3475_v19  ;;  %3720 = vmatpush.msra.mxu0 %v3695_v18 }
0x11e9   :  { %3606 = vmatpush.msrb.mxu2 %v3473_v26  ;;  %4314 = vmatmul.msk.f32.vlgmr.msra.gmra.mxu1 %vm400_vm0, %v3730_v47 }
0x11ea   :  { %3968 = vmatpush.msrb.mxu1 %v6713_v41  ;;  %v3809_v41 = vmul.f32 %v3369_v55, %v6293_v29 }
0x11eb   :  { %3607 = vmatpush.msrb.mxu2 %v3472_v3  ;;  %4303 = vmatpush.xpose.msk.msrb.mxu3 %vm400_vm0, %v3375_v0 }
0x11ec   :  { %3969 = vmatpush.msrb.mxu1 %v6716_v56 }
0x11ed   :  { %3608 = vmatpush.msrb.mxu2 %v3471_v60 }
0x11ee   :  { %3970 = vmatpush.msrb.mxu1 %v6721_v12  ;;  %4291 = vmatmul.msk.f32.gmra.mxu2 %vm400_vm0, %v3381_v42 }
0x11ef   :  { %3831 = vmatpush.msra.mxu2 %v3812_v54  ;;  %4304 = vmatpush.xpose.msk.msrb.mxu3 %vm400_vm0, %v3372_v36 }
0x11f0   :  { %4297 = vmatmul.msk.f32.gmra.mxu3 %vm400_vm0, %v3476_v46  ;;  %3971 = vmatpush.msrb.mxu1 %v6729_v9 }
0x11f1   :  { %3832 = vmatpush.msra.mxu2 %v3811_v2  ;;  %4315 = vmatmul.msk.f32.gmra.mxu1 %vm400_vm0, %v3731_v61 }
0x11f2   :  { %3972 = vmatpush.msrb.mxu1 %v6735_v4 }
0x11f3   :  { %3833 = vmatpush.msra.mxu2 %v3810_v52  ;;  %4305 = vmatpush.xpose.msk.msrb.mxu3 %vm400_vm0, %v3369_v55 }
0x11f4   :  { %3973 = vmatpush.msrb.mxu1 %v6752_v23 }
0x11f5   :  { %3834 = vmatpush.msra.mxu2 %v3809_v41 }
0x11f6   :  { %3974 = vmatpush.msrb.mxu1 %v6755_v45 }
0x11f7   :  { %3858 = vmatpush.msra.mxu3 %v6616_v39 }
0x11f8   :  { %4306 = vmatmul.msk.f32.vlgmr.msrb.gmra.mxu3 %vm400_vm0, %v3616_v51  ;;  %3975 = vmatpush.msrb.mxu1 %v6759_v44 }
0x11f9   :  { %3859 = vmatpush.msra.mxu3 %v6619_v7 }
0x11fb   :  { %3860 = vmatpush.msra.mxu3 %v6623_v58 }
0x11fd   :  { %3861 = vmatpush.msra.mxu3 %v6627_v22 }
0x11ff   :  { %3862 = vmatpush.msra.mxu3 %v6632_v38 }
0x1200   :  { %4307 = vmatmul.msk.f32.gmra.mxu3 %vm400_vm0, %v3617_v63 }
0x1201   :  { %3863 = vmatpush.msra.mxu3 %v6637_v16 }
0x1203   :  { %3864 = vmatpush.msra.mxu3 %v6646_v30 }
0x1205   :  { %3865 = vmatpush.msra.mxu3 %v6649_v43 }
0x1266   :  { %v3755_v56 = vpop.f32.mrf.mxu1 }
0x1267   :  { %v3756_v16 = vadd.f32 %v3755_v56, %v359_v34 }
0x1269   :  { %v3417_v29 = vpop.f32.mrf.mxu2  ;;  %v3761_v43 = vsel %vm400_vm0, %v3756_v16, -inf }
0x126a   :  { %v3418_v39 = vadd.f32 %v3417_v29, %v359_v34 }
0x126b   :  { %v3500_v7 = vpop.f32.mrf.mxu3 }
0x126c   :  { %v3501_v58 = vadd.f32 %v3500_v7, %v359_v34  ;;  %v3423_v22 = vsel %vm400_vm0, %v3418_v39, -inf }
0x126d   :  { %3424 = vmax.xlane.f32.xlu0 %v3423_v22 }
0x126e   :  { %v3506_v38 = vsel %vm400_vm0, %v3501_v58, -inf  ;;  %v3758_v44 = vpop.f32.mrf.mxu1 }
0x126f   :  { %3507 = vmax.xlane.f32.xlu1 %v3506_v38  ;;  %v3759_v40 = vadd.f32 %v3758_v44, %v360_v27 }
0x1271   :  { %v3420_v12 = vpop.f32.mrf.mxu2  ;;  %v3764_v6 = vsel %vm400_vm0, %v3759_v40, -inf }
0x1272   :  { %v3421_v9 = vadd.f32 %v3420_v12, %v360_v27 }
0x1273   :  { %v3503_v30 = vpop.f32.mrf.mxu3 }
0x1274   :  { %v3504_v4 = vadd.f32 %v3503_v30, %v360_v27  ;;  %v3426_v23 = vsel %vm400_vm0, %v3421_v9, -inf }
0x1275   :  { %3427 = vmax.xlane.f32.xlu2 %v3426_v23 }
0x1276   :  { %v3509_v45 = vsel %vm400_vm0, %v3504_v4, -inf }
0x1277   :  { %3762 = vmax.xlane.f32.xlu1 %v3761_v43  ;;  %3510 = vmax.xlane.f32.xlu0 %v3509_v45 }
0x127b   :  { %v3641_v5 = vpop.f32.mrf.mxu3 }
0x127c   :  { %v3642_v32 = vadd.f32 %v3641_v5, %v359_v34 }
0x127e   :  { %v3647_v49 = vsel %vm400_vm0, %v3642_v32, -inf }
0x127f   :  { %3648 = vmax.xlane.f32.xlu2 %v3647_v49  ;;  %3765 = vmax.xlane.f32.xlu0 %v3764_v6 }
0x1283   :  { %v3644_v0 = vpop.f32.mrf.mxu3 }
0x1284   :  { %v3645_v13 = vadd.f32 %v3644_v0, %v360_v27 }
0x1286   :  { %v3650_v36 = vsel %vm400_vm0, %v3645_v13, -inf }
0x1287   :  { %3651 = vmax.xlane.f32.xlu1 %v3650_v36 }
0x12e0   :  { %v3425_v55 = vpop.xlane.xlu0 %3424 }
0x12e1   :  { %v3429_v20 = vsub.f32 %v3418_v39, %v3425_v55 }
0x12e2   :  { %v3508_v35 = vpop.xlane.xlu1 %3507 }
0x12e3   :  { %v3512_v25 = vsub.f32 %v3501_v58, %v3508_v35  ;;  %v3431_v15 = vmul.f32 1.442695, %v3429_v20 }
0x12e5   :  { %v3514_v59 = vmul.f32 1.442695, %v3512_v25  ;;  %4593 = vpow2.f32 %v3431_v15 }
0x12e7   :  { %4595 = vpow2.f32 %v3514_v59 }
0x12e8   :  { %v3428_v21 = vpop.xlane.xlu2 %3427 }
0x12e9   :  { %v3430_v37 = vsub.f32 %v3421_v9, %v3428_v21 }
0x12ea   :  { %v3763_v1 = vpop.xlane.xlu1 %3762  ;;  %v3511_v53 = vpop.xlane.xlu0 %3510 }
0x12eb   :  { %v3767_v17 = vsub.f32 %v3756_v16, %v3763_v1  ;;  %v6888_v19 = vpop.eup %4593  ;;  %v3513_v26 = vsub.f32 %v3504_v4, %v3511_v53  ;;  %v3433_v3 = vmul.f32 1.442695, %v3430_v37 }
0x12ec   :  { %v3435_v31 = vsel %vm400_vm0, %v6888_v19, 0.0 }
0x12ed   :  { %v6890_v47 = vpop.eup %4595  ;;  %v3769_v18 = vmul.f32 1.442695, %v3767_v17  ;;  %v3516_v60 = vmul.f32 1.442695, %v3513_v26  ;;  %3436 = vadd.xlane.f32.xlu2 %v3435_v31 }
0x12ee   :  { %v3518_v54 = vsel %vm400_vm0, %v6890_v47, 0.0 }
0x12ef   :  { %4597 = vpow2.f32 %v3769_v18  ;;  %3519 = vadd.xlane.f32.xlu0 %v3518_v54 }
0x12f0   :  { %4599 = vpow2.f32 %v3433_v3 }
0x12f1   :  { %4601 = vpow2.f32 %v3516_v60 }
0x12f2   :  { %v3649_v2 = vpop.xlane.xlu2 %3648  ;;  %v3766_v46 = vpop.xlane.xlu0 %3765 }
0x12f3   :  { %v3653_v42 = vsub.f32 %v3642_v32, %v3649_v2  ;;  %v3768_v61 = vsub.f32 %v3759_v40, %v3766_v46 }
0x12f5   :  { %v6896_v52 = vpop.eup %4597  ;;  %v3655_v41 = vmul.f32 1.442695, %v3653_v42  ;;  %v3771_v63 = vmul.f32 1.442695, %v3768_v61 }
0x12f6   :  { %v6898_v51 = vpop.eup %4599  ;;  %v3773_v34 = vsel %vm400_vm0, %v6896_v52, 0.0 }
0x12f7   :  { %v6902_v29 = vpop.eup %4601  ;;  %4603 = vpow2.f32 %v3655_v41  ;;  %v3438_v39 = vsel %vm400_vm0, %v6898_v51, 0.0  ;;  %3774 = vadd.xlane.f32.xlu0 %v3773_v34 }
0x12f8   :  { %4605 = vpow2.f32 %v3771_v63  ;;  %3439 = vadd.xlane.f32.xlu1 %v3438_v39  ;;  %v3521_v7 = vsel %vm400_vm0, %v6902_v29, 0.0 }
0x12f9   :  { %3522 = vadd.xlane.f32.xlu2 %v3521_v7 }
0x12fa   :  { %v3652_v58 = vpop.xlane.xlu1 %3651 }
0x12fb   :  { %v3654_v22 = vsub.f32 %v3645_v13, %v3652_v58 }
0x12fd   :  { %v6908_v56 = vpop.eup %4603  ;;  %v3657_v38 = vmul.f32 1.442695, %v3654_v22 }
0x12fe   :  { %v6910_v16 = vpop.eup %4605  ;;  %v3659_v27 = vsel %vm400_vm0, %v6908_v56, 0.0 }
0x12ff   :  { %4607 = vpow2.f32 %v3657_v38  ;;  %v3776_v12 = vsel %vm400_vm0, %v6910_v16, 0.0 }
0x1300   :  { %3660 = vadd.xlane.f32.xlu1 %v3659_v27 }
0x1301   :  { %3777 = vadd.xlane.f32.xlu2 %v3776_v12 }
0x1305   :  { %v6916_v30 = vpop.eup %4607 }
0x1306   :  { %v3662_v9 = vsel %vm400_vm0, %v6916_v30, 0.0 }
0x1307   :  { %3663 = vadd.xlane.f32.xlu0 %v3662_v9 }
0x1360   :  { %v3437_v4 = vpop.xlane.xlu2 %3436 }
0x1361   :  { %4609 = vrcp.f32 %v3437_v4  ;;  %v3450_v6 = vand.u32 2147483647, %v3437_v4  ;;  %v3452_v0 = vand.u32 2147483648, %v3437_v4  ;;  %vm3446_vm5 = vweird.f32 %v3437_v4 }
0x1362   :  { %v3520_v43 = vpop.xlane.xlu0 %3519 }
0x1363   :  { %4611 = vrcp.f32 %v3520_v43  ;;  %v3535_v35 = vand.u32 2147483648, %v3520_v43  ;;  %v3533_v25 = vand.u32 2147483647, %v3520_v43  ;;  %v3453_v59 = vor.u32 1.1754944e-38, %v3452_v0 }
0x1364   :  { %vm3529_vm8 = vweird.f32 %v3520_v43  ;;  %vm3451_vm7 = vcmp.eq.f32.partialorder %v3450_v6, 8.507059e+37 }
0x1365   :  { %v3536_v37 = vor.u32 1.1754944e-38, %v3535_v35  ;;  %vm3534_vm10 = vcmp.eq.f32.partialorder %v3533_v25, 8.507059e+37 }
0x1367   :  { %v4610_v23 = vpop.eup %4609 }
0x1368   :  { %v3442_v44 = vmul.f32 %v4610_v23, %v3437_v4  ;;  %vm3447_vm2 = vweird.f32 %v4610_v23 }
0x1369   :  { %v4612_v45 = vpop.eup %4611  ;;  %vm3448_vm6 = vmor %vm3446_vm5, %vm3447_vm2 }
0x136a   :  { %v3525_v40 = vmul.f32 %v4612_v45, %v3520_v43  ;;  %v6920_v5 = vpop.xlane.xlu0 %3774  ;;  %v3443_v32 = vsub.f32 1.0, %v3442_v44  ;;  %vm3530_vm4 = vweird.f32 %v4612_v45 }
0x136b   :  { %v6922_v49 = vpop.xlane.xlu1 %3439  ;;  %4613 = vrcp.f32 %v6920_v5  ;;  %vm3531_vm9 = vmor %vm3529_vm8, %vm3530_vm4  ;;  %vm3784_vm12 = vweird.f32 %v6920_v5  ;;  %v3788_v27 = vand.u32 2147483647, %v6920_v5  ;;  %v3790_v44 = vand.u32 2147483648, %v6920_v5 }
0x136c   :  { %v3526_v13 = vsub.f32 1.0, %v3525_v40  ;;  %4615 = vrcp.f32 %v6922_v49  ;;  %v6926_v36 = vpop.xlane.xlu2 %3522  ;;  %v3444_v55 = vmul.f32 %v4610_v23, %v3443_v32  ;;  %v3467_v7 = vand.u32 2147483648, %v6922_v49 }
0x136d   :  { %4617 = vrcp.f32 %v6926_v36  ;;  %v3548_v58 = vand.u32 2147483647, %v6926_v36  ;;  %v3550_v22 = vand.u32 2147483648, %v6926_v36  ;;  %vm3461_vm1 = vweird.f32 %v6922_v49 }
0x136e   :  { %v3527_v20 = vmul.f32 %v4612_v45, %v3526_v13  ;;  %v3445_v15 = vadd.f32 %v4610_v23, %v3444_v55  ;;  %vm3544_vm14 = vweird.f32 %v6926_v36 }
0x136f   :  { %vm3549_vm2 = vcmp.eq.f32.partialorder %v3548_v58, 8.507059e+37 }
0x1370   :  { %v3528_v1 = vadd.f32 %v4612_v45, %v3527_v20  ;;  %v3449_v17 = vsel %vm3448_vm6, %v4610_v23, %v3445_v15  ;;  %v3468_v23 = vor.u32 1.1754944e-38, %v3467_v7 }
0x1371   :  { %v6929_v21 = vpop.eup %4613  ;;  %v3454_v26 = vsel %vm3451_vm7, %v3453_v59, %v3449_v17 }
0x1372   :  { %v6931_v53 = vpop.eup %4615  ;;  %v3532_v18 = vsel %vm3531_vm9, %v4612_v45, %v3528_v1  ;;  %v3780_v3 = vmul.f32 %v6929_v21, %v6920_v5  ;;  %v3455_v60 = vmul.f32 %v6888_v19, %v3454_v26  ;;  %v3551_v45 = vor.u32 1.1754944e-38, %v3550_v22 }
0x1373   :  { %v4618_v31 = vpop.eup %4617  ;;  %v3537_v54 = vsel %vm3534_vm10, %v3536_v37, %v3532_v18  ;;  %v3457_v2 = vmul.f32 %v6931_v53, %v6922_v49  ;;  %v6938_v42 = vpop.xlane.xlu1 %3660  ;;  %vm3462_vm13 = vweird.f32 %v6931_v53  ;;  %vm3785_vm5 = vweird.f32 %v6929_v21 }
0x1374   :  { %v3538_v46 = vmul.f32 %v6890_v47, %v3537_v54  ;;  %v3540_v61 = vmul.f32 %v4618_v31, %v6926_v36  ;;  %v6942_v41 = vpop.xlane.xlu2 %3777  ;;  %v3781_v34 = vsub.f32 1.0, %v3780_v3  ;;  %4619 = vrcp.f32 %v6938_v42  ;;  %4300 = vmatmul.msk.f32.vlgmr.msrb.gmra.mxu2 %vm400_vm0, %v3455_v60  ;;  %vm3463_vm4 = vmor %vm3461_vm1, %vm3462_vm13 }
0x1375   :  { %v3458_v63 = vsub.f32 1.0, %v3457_v2  ;;  %4621 = vrcp.f32 %v6942_v41  ;;  %vm3545_vm11 = vweird.f32 %v4618_v31  ;;  %v3676_v36 = vand.u32 2147483648, %v6938_v42  ;;  %vm6983_vm8 = vmor %vm3784_vm12, %vm3785_vm5 }
0x1376   :  { %v3541_v39 = vsub.f32 1.0, %v3540_v61  ;;  %4298 = vmatmul.msk.f32.vlgmr.msrb.gmra.mxu0 %vm400_vm0, %v3538_v46  ;;  %v3782_v38 = vmul.f32 %v6929_v21, %v3781_v34  ;;  %vm3546_vm15 = vmor %vm3544_vm14, %vm3545_vm11  ;;  %v3791_v37 = vor.u32 1.1754944e-38, %v3790_v44  ;;  %vm3670_vm9 = vweird.f32 %v6938_v42 }
0x1377   :  { %v3459_v19 = vmul.f32 %v6931_v53, %v3458_v63  ;;  %3941 = vmatpush.msrb.mxu0 %v6689_v14  ;;  %v3465_v14 = vand.u32 2147483647, %v6922_v49  ;;  %vm3789_vm10 = vcmp.eq.f32.partialorder %v3788_v27, 8.507059e+37  ;;  %vm3799_vm14 = vweird.f32 %v6942_v41 }
0x1378   :  { %v3542_v47 = vmul.f32 %v4618_v31, %v3541_v39  ;;  %v3783_v32 = vadd.f32 %v6929_v21, %v3782_v38  ;;  %v3805_v46 = vand.u32 2147483648, %v6942_v41  ;;  %v3803_v34 = vand.u32 2147483647, %v6942_v41 }
0x1379   :  { %3942 = vmatpush.msrb.mxu0 %v6692_v33  ;;  %v3460_v12 = vadd.f32 %v6931_v53, %v3459_v19  ;;  %vm3466_vm6 = vcmp.eq.f32.partialorder %v3465_v14, 8.507059e+37 }
0x137a   :  { %v3543_v9 = vadd.f32 %v4618_v31, %v3542_v47  ;;  %v6960_v4 = vpop.xlane.xlu0 %3663  ;;  %v4620_v43 = vpop.eup %4619  ;;  %v3787_v17 = vsel %vm6983_vm8, %v6929_v21, %v3783_v32  ;;  %v3806_v7 = vor.u32 1.1754944e-38, %v3805_v46 }
0x137b   :  { %4623 = vrcp.f32 %v6960_v4  ;;  %3943 = vmatpush.msrb.mxu0 %v6695_v57  ;;  %v6966_v33 = vpop.eup %4621  ;;  %v3666_v40 = vmul.f32 %v4620_v43, %v6938_v42  ;;  %v3464_v13 = vsel %vm3463_vm4, %v6931_v53, %v3460_v12  ;;  %vm3671_vm7 = vweird.f32 %v4620_v43 }
0x137c   :  { %v3795_v57 = vmul.f32 %v6966_v33, %v6942_v41  ;;  %v3547_v49 = vsel %vm3546_vm15, %v4618_v31, %v3543_v9  ;;  %v3469_v20 = vsel %vm3466_vm6, %v3468_v23, %v3464_v13  ;;  %vm3672_vm11 = vmor %vm3670_vm9, %vm3671_vm7  ;;  %v3792_v26 = vsel %vm3789_vm10, %v3791_v37, %v3787_v17 }
0x137d   :  { %3944 = vmatpush.msrb.mxu0 %v6698_v50  ;;  %v3667_v6 = vsub.f32 1.0, %v3666_v40  ;;  %v3552_v0 = vsel %vm3549_vm2, %v3551_v45, %v3547_v49  ;;  %v3674_v50 = vand.u32 2147483647, %v6938_v42  ;;  %v3470_v59 = vmul.f32 %v6898_v51, %v3469_v20 }
0x137e   :  { %v3796_v55 = vsub.f32 1.0, %v3795_v57  ;;  %v3553_v35 = vmul.f32 %v6902_v29, %v3552_v0  ;;  %v3677_v51 = vor.u32 1.1754944e-38, %v3676_v36  ;;  %vm3800_vm13 = vweird.f32 %v6966_v33  ;;  %v4649_v57 = vld [vmem:[#allocation17] ss:$0 sm:$0xff] }
0x137f   :  { %v3668_v15 = vmul.f32 %v4620_v43, %v3667_v6  ;;  %4301 = vmatmul.msk.f32.gmra.mxu2 %vm400_vm0, %v3470_v59  ;;  %vm3675_vm12 = vcmp.eq.f32.partialorder %v3674_v50, 8.507059e+37  ;;  %v3689_v31 = vand.u32 2147483647, %v6960_v4  ;;  %v3691_v60 = vand.u32 2147483648, %v6960_v4  ;;  %vm7005_vm15 = vmor %vm3799_vm14, %vm3800_vm13 }
0x1380   :  { %4299 = vmatmul.msk.f32.gmra.mxu0 %vm400_vm0, %v3553_v35  ;;  %v3797_v5 = vmul.f32 %v6966_v33, %v3796_v55  ;;  %v3793_v61 = vmul.f32 %v6896_v52, %v3792_v26  ;;  %vm3685_vm2 = vweird.f32 %v6960_v4  ;;  %vm3804_vm6 = vcmp.eq.f32.partialorder %v3803_v34, 8.507059e+37 }
0x1381   :  { %v4624_v1 = vpop.eup %4623  ;;  %v3669_v29 = vadd.f32 %v4620_v43, %v3668_v15  ;;  %vm3690_vm5 = vcmp.eq.f32.partialorder %v3689_v31, 8.507059e+37 }
0x1382   :  { %v3681_v53 = vmul.f32 %v4624_v1, %v6960_v4  ;;  %v3798_v2 = vadd.f32 %v6966_v33, %v3797_v5  ;;  %vm3686_vm1 = vweird.f32 %v4624_v1 }
0x1383   :  { %v3673_v18 = vsel %vm3672_vm11, %v4620_v43, %v3669_v29  ;;  %vm3687_vm4 = vmor %vm3685_vm2, %vm3686_vm1 }
0x1384   :  { %v3682_v3 = vsub.f32 1.0, %v3681_v53  ;;  %v3678_v21 = vsel %vm3675_vm12, %v3677_v51, %v3673_v18  ;;  %v3802_v52 = vsel %vm7005_vm15, %v6966_v33, %v3798_v2 }
0x1385   :  { %v3679_v54 = vmul.f32 %v6908_v56, %v3678_v21  ;;  %v3692_v56 = vor.u32 1.1754944e-38, %v3691_v60  ;;  %v3807_v58 = vsel %vm3804_vm6, %v3806_v7, %v3802_v52 }
0x1386   :  { %v3683_v42 = vmul.f32 %v4624_v1, %v3682_v3  ;;  %v3808_v22 = vmul.f32 %v6910_v16, %v3807_v58 }
0x1387   :  { %4316 = vmatmul.msk.f32.vlgmr.msra.gmra.mxu2 %vm400_vm0, %v3793_v61 }
0x1388   :  { %v3684_v39 = vadd.f32 %v4624_v1, %v3683_v42  ;;  %4308 = vmatmul.msk.f32.vlgmr.msra.gmra.mxu0 %vm400_vm0, %v3679_v54 }
0x138a   :  { %v3688_v19 = vsel %vm3687_vm4, %v4624_v1, %v3684_v39 }
0x138b   :  { %v3693_v47 = vsel %vm3690_vm5, %v3692_v56, %v3688_v19 }
0x138c   :  { %v3694_v41 = vmul.f32 %v6916_v30, %v3693_v47 }
0x138f   :  { %4317 = vmatmul.msk.f32.gmra.mxu2 %vm400_vm0, %v3808_v22 }
0x1390   :  { %4309 = vmatmul.msk.f32.gmra.mxu0 %vm400_vm0, %v3694_v41 }
0x13f3   :  { %v3581_v38 = vpop.f32.mrf.mxu0 }
0x13f7   :  { %v3610_v27 = vpop.f32.mrf.mxu2 }
0x13f8   :  { %v3611_v4 = vadd.f32 %v3610_v27, %v3581_v38  ;;  %v4650_v27 = vld [vmem:[#allocation22] ss:$0 sm:$0xff] }
0x13fd   :  { %v3584_v12 = vpop.f32.mrf.mxu0 }
0x1402   :  { %v3613_v14 = vpop.f32.mrf.mxu2 }
0x1403   :  { %v3614_v30 = vadd.f32 %v3613_v14, %v3584_v12 }
0x1405   :  { %v3722_v9 = vpop.f32.mrf.mxu0 }
0x1406   :  { %v3728_v43 = vadd.f32 %v3722_v9, %v3611_v4 }
0x140a   :  { %v3836_v23 = vpop.f32.mrf.mxu2 }
0x140b   :  { %v3842_v33 = vadd.f32 %v3836_v23, %v3728_v43 }
0x140d   :  { %4318 = vmatmul.msk.f32.vlgmr.msra.gmra.mxu3 %vm1905_vm3, %v3842_v33  ;;  %v3725_v45 = vpop.f32.mrf.mxu0  ;;  %v4651_v33 = vld [vmem:[#allocation23] ss:$0 sm:$0xff] }
0x140e   :  { %v3729_v44 = vadd.f32 %v3725_v45, %v3614_v30 }
0x1412   :  { %v3839_v40 = vpop.f32.mrf.mxu2 }
0x1413   :  { %v3843_v16 = vadd.f32 %v3839_v40, %v3729_v44 }
0x1415   :  { %4319 = vmatmul.msk.f32.gmra.mxu3 %vm1905_vm3, %v3843_v16 }
0x1490   :  { %v3867_v32 = vpop.f32.mrf.mxu3 }
0x1491   :  { %v3868_v49 = vadd.f32 %v4649_v57, %v3867_v32 }
0x1493   :  { %v3873_v6 = vadd.f32 %v3868_v49, %v6242_v48 }
0x1495   :  { %v3875_v0 = vsel %vm400_vm0, %v3873_v6, 0.0 }
0x1496   :  { %3876 = vadd.xlane.f32.xlu1 %v3875_v0 }
0x1498   :  { %v3870_v13 = vpop.f32.mrf.mxu3 }
0x1499   :  { %v3871_v36 = vadd.f32 %v4649_v57, %v3870_v13 }
0x149b   :  { %v3874_v55 = vadd.f32 %v3871_v36, %v6251_v8 }
0x149d   :  { %v3878_v35 = vsel %vm400_vm0, %v3874_v55, 0.0 }
0x149e   :  { %3879 = vadd.xlane.f32.xlu2 %v3878_v35 }
0x1509   :  { %v3877_v20 = vpop.xlane.xlu1 %3876 }
0x150a   :  { %v3881_v25 = vmul.f32 %v3877_v20, %v6064_v62 }
0x150c   :  { %v3883_v15 = vsub.f32 %v3873_v6, %v3881_v25 }
0x150e   :  { %v3885_v50 = vmul.f32 %v3883_v15, %v3883_v15 }
0x1510   :  { %v3887_v59 = vsel %vm400_vm0, %v3885_v50, 0.0 }
0x1511   :  { %3888 = vadd.xlane.f32.xlu0 %v3887_v59  ;;  %v3880_v1 = vpop.xlane.xlu2 %3879 }
0x1512   :  { %v3882_v48 = vmul.f32 %v3880_v1, %v6064_v62 }
0x1514   :  { %v3884_v17 = vsub.f32 %v3874_v55, %v3882_v48 }
0x1516   :  { %v3886_v37 = vmul.f32 %v3884_v17, %v3884_v17 }
0x1518   :  { %v3890_v29 = vsel %vm400_vm0, %v3886_v37, 0.0 }
0x1519   :  { %3891 = vadd.xlane.f32.xlu1 %v3890_v29 }
0x1584   :  { %v3889_v8 = vpop.xlane.xlu0 %3888 }
0x1585   :  { %v3893_v5 = vmul.f32 %v3889_v8, %v6064_v62 }
0x1587   :  { %v3895_v53 = vadd.f32 1e-05, %v3893_v5 }
0x1589   :  { %4625 = vrsqrt.f32 %v3895_v53  ;;  %vm3903_vm7 = vweird.f32 %v3895_v53 }
0x158c   :  { %v3892_v51 = vpop.xlane.xlu1 %3891 }
0x158d   :  { %v3894_v26 = vmul.f32 %v3892_v51, %v6064_v62 }
0x158f   :  { %v4626_v18 = vpop.eup %4625  ;;  %v3896_v3 = vadd.f32 1e-05, %v3894_v26 }
0x1590   :  { %v3898_v21 = vmul.f32 %v4626_v18, %v3895_v53  ;;  %vm3904_vm8 = vweird.f32 %v4626_v18 }
0x1591   :  { %4627 = vrsqrt.f32 %v3896_v3  ;;  %vm3905_vm9 = vmor %vm3903_vm7, %vm3904_vm8  ;;  %vm3913_vm11 = vweird.f32 %v3896_v3 }
0x1592   :  { %v3899_v31 = vmul.f32 %v4626_v18, %v3898_v21 }
0x1594   :  { %v3900_v60 = vmul.f32 0.5, %v3899_v31 }
0x1596   :  { %v3901_v54 = vsub.f32 1.5, %v3900_v60 }
0x1597   :  { %v4628_v2 = vpop.eup %4627 }
0x1598   :  { %v3902_v42 = vmul.f32 %v4626_v18, %v3901_v54  ;;  %v3908_v46 = vmul.f32 %v4628_v2, %v3896_v3  ;;  %vm3914_vm10 = vweird.f32 %v4628_v2 }
0x1599   :  { %vm3915_vm12 = vmor %vm3913_vm11, %vm3914_vm10 }
0x159a   :  { %v3906_v61 = vsel %vm3905_vm9, %v4626_v18, %v3902_v42  ;;  %v3909_v63 = vmul.f32 %v4628_v2, %v3908_v46 }
0x159b   :  { %v3917_v34 = vmul.f32 %v3906_v61, %v3883_v15 }
0x159c   :  { %v3910_v39 = vmul.f32 0.5, %v3909_v63 }
0x159d   :  { %v3919_v56 = vmul.f32 %v3917_v34, %v6707_v10 }
0x159e   :  { %v3911_v19 = vsub.f32 1.5, %v3910_v39 }
0x159f   :  { %v3921_v52 = vadd.f32 %v3919_v56, %v6710_v28 }
0x15a0   :  { %v3912_v7 = vmul.f32 %v4628_v2, %v3911_v19 }
0x15a1   :  { %4320 = vmatmul.msk.f32.vlgmr.msrb.gmra.mxu0 %vm400_vm0, %v3921_v52 }
0x15a2   :  { %v3916_v47 = vsel %vm3915_vm12, %v4628_v2, %v3912_v7 }
0x15a3   :  { %v3918_v41 = vmul.f32 %v3916_v47, %v3884_v17 }
0x15a5   :  { %v3920_v58 = vmul.f32 %v3918_v41, %v6707_v10 }
0x15a7   :  { %v3922_v22 = vadd.f32 %v3920_v58, %v6710_v28 }
0x15a9   :  { %4321 = vmatmul.msk.f32.gmra.mxu0 %vm400_vm0, %v3922_v22 }
0x161e   :  { %v3946_v38 = vpop.f32.mrf.mxu0 }
0x161f   :  { %v3947_v12 = vadd.f32 %v4650_v27, %v3946_v38 }
0x1621   :  { %v3952_v14 = vmax.f32 %v3947_v12, 0.0 }
0x1623   :  { %4322 = vmatmul.msk.f32.vlgmr.msrb.gmra.mxu1 %vm1905_vm3, %v3952_v14 }
0x1626   :  { %v3949_v9 = vpop.f32.mrf.mxu0 }
0x1627   :  { %v3950_v4 = vadd.f32 %v4650_v27, %v3949_v9 }
0x1629   :  { %v3953_v43 = vmax.f32 %v3950_v4, 0.0 }
0x162b   :  { %4323 = vmatmul.msk.f32.gmra.mxu1 %vm1905_vm3, %v3953_v43 }
0x16a0   :  { %v3977_v23 = vpop.f32.mrf.mxu1 }
0x16a1   :  { %v3978_v45 = vadd.f32 %v4651_v33, %v3977_v23 }
0x16a3   :  { %v3983_v30 = vadd.f32 %v3978_v45, %v3921_v52 }
0x16a5   :  { %v3985_v10 = vsel %vm400_vm0, %v3983_v30, 0.0 }
0x16a6   :  { %3986 = vadd.xlane.f32.xlu2 %v3985_v10 }
0x16a8   :  { %v3980_v28 = vpop.f32.mrf.mxu1 }
0x16a9   :  { %v3981_v44 = vadd.f32 %v4651_v33, %v3980_v28 }
0x16ab   :  { %v3984_v40 = vadd.f32 %v3981_v44, %v3922_v22 }
0x16ad   :  { %v3988_v16 = vsel %vm400_vm0, %v3984_v40, 0.0 }
0x16ae   :  { %3989 = vadd.xlane.f32.xlu0 %v3988_v16 }
0x1719   :  { %v3987_v32 = vpop.xlane.xlu2 %3986 }
0x171a   :  { %v3991_v57 = vmul.f32 %v3987_v32, %v6064_v62 }
0x171c   :  { %v3993_v49 = vsub.f32 %v3983_v30, %v3991_v57 }
0x171e   :  { %v3995_v6 = vmul.f32 %v3993_v49, %v3993_v49 }
0x1720   :  { %v3997_v0 = vsel %vm400_vm0, %v3995_v6, 0.0 }
0x1721   :  { %v3990_v13 = vpop.xlane.xlu0 %3989  ;;  %3998 = vadd.xlane.f32.xlu1 %v3997_v0 }
0x1722   :  { %v3992_v36 = vmul.f32 %v3990_v13, %v6064_v62 }
0x1724   :  { %v3994_v55 = vsub.f32 %v3984_v40, %v3992_v36 }
0x1726   :  { %v3996_v35 = vmul.f32 %v3994_v55, %v3994_v55 }
0x1728   :  { %v4000_v20 = vsel %vm400_vm0, %v3996_v35, 0.0 }
0x1729   :  { %4001 = vadd.xlane.f32.xlu2 %v4000_v20 }
0x172a   :  { %5011 = shalt.err (!%p5008_p4)
}
0x172b   :  { %4051 = dma.vmem_to_hbm [thread:$0]  %s4044_s30, 512, %s4046_s24, [#allocation4], %s5088_s7, %s5088_s7, %s5089_s10  }
0x172c   :  { %s5105_s5 = smov [#allocation26]   ;;  %s4058_s15 = sshll.u32 %s5269_s19, 4  ;;  %s4059_s15 = int_to_ptr.hbm [resolvable:$true] %s4058_s15 }
0x172d   :  { %s4056_s29 = sshll.u32 %s5105_s5, 4  ;;  %s5024_s4 = sshra.s32 %s4059_s15, 4  ;;  %s4057_s29 = int_to_ptr.vmem [resolvable:$true] %s4056_s29  ;;  %s5025_s4 = int_to_ptr.hbm [resolvable:$true] %s5024_s4 }
0x172e   :  { %s5026_s17 = scalar_lea.hbm %s5025_s4, 16  ;;  %s5028_s25 = scalar_lea.hbm %s5269_s19, 16 }
0x172f   :  { %p5027_p5 = scmp.ne.s32.totalorder %s5025_s4, %s5026_s17  ;;  %p5029_p6 = scmp.lt.s32.totalorder %s5025_s4, %s5269_s19 }
0x1730   :  { %p5030_p7 = scmp.lt.s32.totalorder %s5028_s25, %s5026_s17 }
0x1732   :  { %p5031_p8 = por %p5030_p7, %p5029_p6 }
0x1734   :  { %p5032_p9 = pnand %p5031_p8, %p5027_p5 }
0x1794   :  { %v3999_v25 = vpop.xlane.xlu1 %3998 }
0x1795   :  { %v4003_v15 = vmul.f32 %v3999_v25, %v6064_v62 }
0x1797   :  { %v4005_v50 = vadd.f32 1e-05, %v4003_v15 }
0x1799   :  { %4629 = vrsqrt.f32 %v4005_v50  ;;  %vm4013_vm13 = vweird.f32 %v4005_v50 }
0x179c   :  { %v4002_v59 = vpop.xlane.xlu2 %4001 }
0x179d   :  { %v4004_v1 = vmul.f32 %v4002_v59, %v6064_v62 }
0x179f   :  { %v4630_v48 = vpop.eup %4629  ;;  %v4006_v17 = vadd.f32 1e-05, %v4004_v1 }
0x17a0   :  { %v4008_v37 = vmul.f32 %v4630_v48, %v4005_v50  ;;  %vm4014_vm3 = vweird.f32 %v4630_v48 }
0x17a1   :  { %4631 = vrsqrt.f32 %v4006_v17  ;;  %vm4015_vm1 = vmor %vm4013_vm13, %vm4014_vm3  ;;  %vm4023_vm15 = vweird.f32 %v4006_v17 }
0x17a2   :  { %v4009_v29 = vmul.f32 %v4630_v48, %v4008_v37 }
0x17a4   :  { %v4010_v8 = vmul.f32 0.5, %v4009_v29 }
0x17a6   :  { %v4011_v5 = vsub.f32 1.5, %v4010_v8 }
0x17a7   :  { %v4632_v53 = vpop.eup %4631 }
0x17a8   :  { %v4012_v51 = vmul.f32 %v4630_v48, %v4011_v5  ;;  %v4018_v26 = vmul.f32 %v4632_v53, %v4006_v17  ;;  %vm4024_vm14 = vweird.f32 %v4632_v53 }
0x17a9   :  { %vm4025_vm2 = vmor %vm4023_vm15, %vm4024_vm14 }
0x17aa   :  { %v4016_v18 = vsel %vm4015_vm1, %v4630_v48, %v4012_v51  ;;  %v4019_v3 = vmul.f32 %v4632_v53, %v4018_v26 }
0x17ab   :  { %v4027_v21 = vmul.f32 %v4016_v18, %v3993_v49 }
0x17ac   :  { %v4020_v31 = vmul.f32 0.5, %v4019_v3 }
0x17ad   :  { %v4029_v62 = vmul.f32 %v4027_v21, %v6792_v11 }
0x17ae   :  { %v4021_v60 = vsub.f32 1.5, %v4020_v31 }
0x17af   :  { %v4031_v54 = vadd.f32 %v4029_v62, %v6795_v24 }
0x17b0   :  { %v4022_v2 = vmul.f32 %v4632_v53, %v4021_v60 }
0x17b1   :  { %4037 = vst.msk [vmem:[#allocation26] sm:$0xff] %vm400_vm0, %v4031_v54 }
0x17b2   :  { %v4026_v42 = vsel %vm4025_vm2, %v4632_v53, %v4022_v2 }
0x17b3   :  { %v4028_v46 = vmul.f32 %v4026_v42, %v3994_v55 }
0x17b5   :  { %v4030_v61 = vmul.f32 %v4028_v46, %v6792_v11 }
0x17b7   :  { %v4032_v63 = vadd.f32 %v4030_v61, %v6795_v24 }
0x17b9   :  { %4038 = vst.msk [vmem:[#allocation26 + $0x8] sm:$0xff] %vm400_vm0, %v4032_v63 }
0x17ba   :  { %5035 = shalt.err (!%p5032_p9)
}
0x17bb   :  { %4064 = dma.vmem_to_hbm [thread:$0]  %s4057_s29, 256, %s4059_s15, [#allocation27], %s5088_s7, %s5088_s7, %s5089_s10  }
0x17bc   :  { %5052 = dma.done.wait [#allocation4], 512  }
0x17bd   :  { %5053 = vsyncadd [#allocation4], 4294966784 }
0x17be   :  { %5054 = dma.done.wait [#allocation27], 256  }
0x17bf   :  { %5055 = vsyncadd [#allocation27], 4294967040 }
0x17c0   :  { %4073 = vsyncpa [#allocation3], 1 }
0x17c1   :  { %4074 = vsyncpa [#allocation6], 1 }
0x17c2   :  { %4075 = vsyncpa [#allocation9], 1 }
0x17c3   :  { %4076 = vsyncpa [#allocation12], 1 }
0x17c4   :  { %4077 = vsyncpa [#allocation15], 1 }
0x17c5   :  { %4078 = vsyncpa [#allocation18], 1 }
0x17c6   :  { %4079 = vsyncpa [#allocation21], 1 }
0x17c7   :  { %4080 = vsyncpa [#allocation24], 1 }
0x17c8   :  { %4081 = vsyncpa [#allocation4], 1 }
0x17c9   :  { %4082 = vsyncpa [#allocation27], 1 }

</bundles_post_ra>
